<compile_context>
chip_gen: v5e
topology: v5e:2x2
jax: 0.10.0
libtpu: 0.0.40
codegen_flags: <defaults>
</compile_context>

<pallas_src>
import jax
import jax.numpy as jnp
from jax.experimental import pallas as pl
from jax.experimental.pallas import tpu as pltpu


def _round_up(x, m):
    return (x + m - 1) // m * m


def _pick_tn(ocp):
    """N tile: 128 on v5e and older (4x128^2 MXU), 256 on v6e/v7x (2x256^2)."""
    try:
        kind = jax.devices()[0].device_kind.lower()
    except Exception:
        kind = ""
    tn = 128 if any(v in kind for v in ("v2", "v3", "v4", "v5")) else 256
    tn = min(tn, ocp)
    if ocp % tn != 0:
        tn = 128
    return tn


# ----------------------------- Pallas kernels ------------------------------

def _matmul_bias_relu_kernel(p_ref, w_ref, b_ref, o_ref):
    # p_ref: (tm, Kp) bf16 patches, w_ref: (Kp, tn) bf16, b_ref: (1, tn) f32.
    acc = jnp.dot(p_ref[...], w_ref[...], preferred_element_type=jnp.float32)
    o_ref[...] = jnp.maximum(acc + b_ref[...], 0.0)


def _maxpool_kernel(w_ref, o_ref):
    # w_ref: (KK, tm, C) stacked pooling windows.  Unrolled pairwise VPU max
    # over the window axis: each w_ref[t] is a dense, lane-aligned (tm, C)
    # slab, so no cross-sublane reduce and no single-sublane partial vregs.
    acc = w_ref[0]
    for t in range(1, w_ref.shape[0]):
        acc = jnp.maximum(acc, w_ref[t])
    o_ref[...] = acc


# ------------------------------ JAX wrappers -------------------------------

def _matmul_bias_relu(patches, w_t, bias, *, tm, tn):
    mp, kp = patches.shape
    _, ocp = w_t.shape
    grid = (mp // tm, ocp // tn)
    flops = 2 * mp * kp * ocp
    bytes_accessed = patches.size * 2 + w_t.size * 2 + bias.size * 4 + mp * ocp * 4
    return pl.pallas_call(
        _matmul_bias_relu_kernel,
        out_shape=jax.ShapeDtypeStruct((mp, ocp), jnp.float32),
        grid=grid,
        in_specs=[
            # patch tile stays VMEM-resident across the OC axis
            pl.BlockSpec((tm, kp), lambda i, j: (i, 0)),
            pl.BlockSpec((kp, tn), lambda i, j: (0, j)),
            pl.BlockSpec((1, tn), lambda i, j: (0, j)),
        ],
        out_specs=pl.BlockSpec((tm, tn), lambda i, j: (i, j)),
        compiler_params=pltpu.CompilerParams(
            dimension_semantics=("parallel", "parallel"),
            vmem_limit_bytes=32 * 1024 * 1024),
        cost_estimate=pl.CostEstimate(flops=flops, transcendentals=0,
                                      bytes_accessed=bytes_accessed),
    )(patches, w_t, bias)


def _im2col_nhwc(x, kh, kw, stride, pad):
    # x: (N, H, W, C) -> (N*OH*OW, KH*KW*C), per-row ordering (kh, kw, c).
    # TODO(synk): for non-toy inputs, build patch tiles in VMEM inside the
    # matmul kernel (manual DMA of input rows) instead of materializing the
    # full im2col matrix in HBM.
    n, h, w, c = x.shape
    xp = jnp.pad(x, ((0, 0), (pad, pad), (pad, pad), (0, 0)))
    oh = (h + 2 * pad - kh) // stride + 1
    ow = (w + 2 * pad - kw) // stride + 1
    cols = []
    for dh in range(kh):
        for dw in range(kw):
            cols.append(xp[:, dh:dh + stride * (oh - 1) + 1:stride,
                           dw:dw + stride * (ow - 1) + 1:stride, :])
    p = jnp.stack(cols, axis=3)                  # (N, OH, OW, KH*KW, C)
    return p.reshape(n * oh * ow, kh * kw * c), oh, ow


def conv2d_relu_nhwc(x, w, b, *, stride, pad, tm=256):
    """Conv2d + ReLU on NHWC activations via im2col + tiled MXU matmul.

    Output is NHWC with channels zero-padded to a multiple of 128 (lane-dense).
    Padded channels are exactly zero (zero weights + zero bias -> relu(0)=0).
    Incoming lane-padding channels from a previous stage are sliced off before
    im2col so they never inflate the contraction dimension.
    """
    oc, cin, kh, kw = w.shape
    if x.shape[3] > cin:                          # drop upstream lane padding
        x = x[..., :cin]
    n = x.shape[0]
    ocp = _round_up(oc, 128)                      # lane-dense output channels
    if ocp > oc:
        w = jnp.pad(w, ((0, ocp - oc), (0, 0), (0, 0), (0, 0)))
        b = jnp.pad(b, (0, ocp - oc))

    patches, oh, ow = _im2col_nhwc(x, kh, kw, stride, pad)
    m, k = patches.shape
    kp = _round_up(k, 128)                        # MXU-friendly contraction dim
    tm = min(tm, _round_up(m, 8))
    mpad = _round_up(m, tm)
    patches = jnp.pad(patches, ((0, mpad - m), (0, kp - k))).astype(jnp.bfloat16)

    w_t = w.transpose(2, 3, 1, 0).reshape(kh * kw * cin, ocp)   # (kh,kw,cin) rows
    w_t = jnp.pad(w_t, ((0, kp - k), (0, 0))).astype(jnp.bfloat16)
    bias = b.reshape(1, ocp).astype(jnp.float32)

    out = _matmul_bias_relu(patches, w_t, bias, tm=tm, tn=_pick_tn(ocp))
    return out[:m].reshape(n, oh, ow, ocp)        # NHWC, no transpose needed


def maxpool2d_nhwc(x, *, k=3, stride=2):
    # PyTorch MaxPool2d(kernel_size=3, stride=2), floor mode, NHWC layout.
    # Channel dim is already a multiple of 128 (lane aligned).
    n, h, w, c = x.shape
    oh = (h - k) // stride + 1
    ow = (w - k) // stride + 1
    wins = [x[:, dh:dh + stride * (oh - 1) + 1:stride,
              dw:dw + stride * (ow - 1) + 1:stride, :]
            for dh in range(k) for dw in range(k)]
    m = n * oh * ow
    wins = jnp.stack(wins, axis=0).reshape(k * k, m, c)   # (KK, M, C)
    tm = min(256, _round_up(m, 8))
    mpad = _round_up(m, tm)
    wins = jnp.pad(wins, ((0, 0), (0, mpad - m), (0, 0)))
    out = pl.pallas_call(
        _maxpool_kernel,
        out_shape=jax.ShapeDtypeStruct((mpad, c), x.dtype),
        grid=(mpad // tm,),
        in_specs=[pl.BlockSpec((k * k, tm, c), lambda i: (0, i, 0))],
        out_specs=pl.BlockSpec((tm, c), lambda i: (i, 0)),
        compiler_params=pltpu.CompilerParams(
            dimension_semantics=("parallel",),
            vmem_limit_bytes=32 * 1024 * 1024),
    )(wins)
    return out[:m].reshape(n, oh, ow, c)


# ------------------------- extractor forward pass --------------------------

def alexnet_extractor_forward(params, x):
    # AlexNetVGG16Extractor.forward with extracted_layer=2 (< 6) and
    # net_model='alexnet': features[:6] only (no avgpool / classifier).
    # TODO(synk): extracted_layer >= 6 branch (avgpool + Linear classifier
    # prefix) is a different config path and is not exercised here.
    oc_final = params["w2"].shape[0]
    x = jnp.transpose(x, (0, 2, 3, 1))            # NCHW -> NHWC once
    x = conv2d_relu_nhwc(x, params["w1"], params["b1"], stride=4, pad=2)
    x = maxpool2d_nhwc(x)
    x = conv2d_relu_nhwc(x, params["w2"], params["b2"], stride=1, pad=2)
    x = maxpool2d_nhwc(x)
    x = x[..., :oc_final]                         # drop lane-padding channels
    return jnp.transpose(x, (0, 3, 1, 2))         # NCHW at the module boundary


def init_params(key):
    k1, k2, k3, k4 = jax.random.split(key, 4)
    return {
        "w1": jax.random.normal(k1, (64, 3, 11, 11), jnp.float32) * 0.05,
        "b1": jax.random.normal(k2, (64,), jnp.float32) * 0.05,
        "w2": jax.random.normal(k3, (192, 64, 5, 5), jnp.float32) * 0.05,
        "b2": jax.random.normal(k4, (192,), jnp.float32) * 0.05,
    }


if __name__ == "__main__":
    key = jax.random.PRNGKey(0)
    pkey, xkey = jax.random.split(key)
    params = init_params(pkey)
    # Small NCHW input: 67x67 is the minimum-ish spatial size that survives
    # the 11x11/stride-4 conv and two 3x3/stride-2 pools.
    x = jax.random.normal(xkey, (2, 3, 67, 67), jnp.float32)

    fwd = jax.jit(alexnet_extractor_forward)
    out = fwd(params, x)
    out = jax.block_until_ready(out)
    assert out.shape == (2, 192, 3, 3), out.shape
    print("KERNEL_OK")
</pallas_src>

<mosaic_0001>
module attributes {stable_mosaic.version = 11 : i64} {
  func.func @_matmul_bias_relu_kernel(%arg0: i32, %arg1: i32, %arg2: memref<256x384xbf16, #tpu.memory_space<vmem>>, %arg3: memref<384x128xbf16, #tpu.memory_space<vmem>>, %arg4: memref<1x128xf32, #tpu.memory_space<vmem>>, %arg5: memref<256x128xf32, #tpu.memory_space<vmem>>) attributes {dimension_semantics = [#tpu.dimension_semantics<parallel>, #tpu.dimension_semantics<parallel>], iteration_bounds = array<i64: 2, 1>, scalar_prefetch = 0 : i64, scratch_operands = 0 : i64, tpu.core_type = #tpu.core_type<tc>, window_params = [{transform_indices = @transform_0, window_bounds = array<i64: 256, 384>}, {transform_indices = @transform_1, window_bounds = array<i64: 384, 128>}, {transform_indices = @transform_2, window_bounds = array<i64: 1, 128>}, {transform_indices = @transform_3, window_bounds = array<i64: 256, 128>}]} {
    %c0 = arith.constant 0 : index
    %c0_0 = arith.constant 0 : index
    %0 = vector.load %arg2[%c0, %c0_0] : memref<256x384xbf16, #tpu.memory_space<vmem>>, vector<256x384xbf16>
    %c0_1 = arith.constant 0 : index
    %c0_2 = arith.constant 0 : index
    %1 = vector.load %arg3[%c0_1, %c0_2] : memref<384x128xbf16, #tpu.memory_space<vmem>>, vector<384x128xbf16>
    %cst = arith.constant dense<0.000000e+00> : vector<256x128xf32>
    %2 = tpu.matmul %0, %1, %cst {dimension_numbers = #tpu.dot_dimension_numbers<[1], [0], [0], [1], [0, 0, 1, 1], [], []>} : vector<256x384xbf16>, vector<384x128xbf16>, vector<256x128xf32> -> vector<256x128xf32>
    %c0_3 = arith.constant 0 : index
    %c0_4 = arith.constant 0 : index
    %3 = vector.load %arg4[%c0_3, %c0_4] : memref<1x128xf32, #tpu.memory_space<vmem>>, vector<1x128xf32>
    %4 = vector.broadcast %3 : vector<1x128xf32> to vector<256x128xf32>
    %5 = arith.addf %2, %4 : vector<256x128xf32>
    %cst_5 = arith.constant 0.000000e+00 : f32
    %6 = vector.broadcast %cst_5 : f32 to vector<256x128xf32>
    %7 = arith.maximumf %5, %6 : vector<256x128xf32>
    %c0_6 = arith.constant 0 : index
    %c0_7 = arith.constant 0 : index
    %8 = vector.load %arg5[%c0_6, %c0_7] : memref<256x128xf32, #tpu.memory_space<vmem>>, vector<256x128xf32>
    tpu.vector_store %arg5[%c0_6, %c0_7], %7 {strides = array<i32>} : memref<256x128xf32, #tpu.memory_space<vmem>>, vector<256x128xf32>,
    return
  }
  func.func @transform_0(%arg0: i32, %arg1: i32) -> (i32, i32) {
    %c0_i32 = arith.constant 0 : i32
    %c0_i32_0 = arith.constant 0 : i32
    return %arg0, %c0_i32 : i32, i32
  }
  func.func @transform_1(%arg0: i32, %arg1: i32) -> (i32, i32) {
    %c0_i32 = arith.constant 0 : i32
    %c0_i32_0 = arith.constant 0 : i32
    return %c0_i32, %arg1 : i32, i32
  }
  func.func @transform_2(%arg0: i32, %arg1: i32) -> (i32, i32) {
    %c0_i32 = arith.constant 0 : i32
    %c0_i32_0 = arith.constant 0 : i32
    return %c0_i32, %arg1 : i32, i32
  }
  func.func @transform_3(%arg0: i32, %arg1: i32) -> (i32, i32) {
    %c0_i32 = arith.constant 0 : i32
    return %arg0, %arg1 : i32, i32
  }
}

module attributes {stable_mosaic.version = 11 : i64} {
  func.func @_maxpool_kernel(%arg0: i32, %arg1: memref<9x104x128xf32, #tpu.memory_space<vmem>>, %arg2: memref<104x128xf32, #tpu.memory_space<vmem>>) attributes {dimension_semantics = [#tpu.dimension_semantics<parallel>], iteration_bounds = array<i64: 1>, scalar_prefetch = 0 : i64, scratch_operands = 0 : i64, tpu.core_type = #tpu.core_type<tc>, window_params = [{transform_indices = @transform_0, window_bounds = array<i64: 9, 104, 128>}, {transform_indices = @transform_1, window_bounds = array<i64: 104, 128>}]} {
    %c0 = arith.constant 0 : index
    %c0_0 = arith.constant 0 : index
    %c0_1 = arith.constant 0 : index
    %0 = vector.load %arg1[%c0, %c0_0, %c0_1] : memref<9x104x128xf32, #tpu.memory_space<vmem>>, vector<1x104x128xf32>
    %1 = vector.shape_cast %0 : vector<1x104x128xf32> to vector<104x128xf32>
    %c1 = arith.constant 1 : index
    %c0_2 = arith.constant 0 : index
    %c0_3 = arith.constant 0 : index
    %2 = vector.load %arg1[%c1, %c0_2, %c0_3] : memref<9x104x128xf32, #tpu.memory_space<vmem>>, vector<1x104x128xf32>
    %3 = vector.shape_cast %2 : vector<1x104x128xf32> to vector<104x128xf32>
    %4 = arith.maximumf %1, %3 : vector<104x128xf32>
    %c2 = arith.constant 2 : index
    %c0_4 = arith.constant 0 : index
    %c0_5 = arith.constant 0 : index
    %5 = vector.load %arg1[%c2, %c0_4, %c0_5] : memref<9x104x128xf32, #tpu.memory_space<vmem>>, vector<1x104x128xf32>
    %6 = vector.shape_cast %5 : vector<1x104x128xf32> to vector<104x128xf32>
    %7 = arith.maximumf %4, %6 : vector<104x128xf32>
    %c3 = arith.constant 3 : index
    %c0_6 = arith.constant 0 : index
    %c0_7 = arith.constant 0 : index
    %8 = vector.load %arg1[%c3, %c0_6, %c0_7] : memref<9x104x128xf32, #tpu.memory_space<vmem>>, vector<1x104x128xf32>
    %9 = vector.shape_cast %8 : vector<1x104x128xf32> to vector<104x128xf32>
    %10 = arith.maximumf %7, %9 : vector<104x128xf32>
    %c4 = arith.constant 4 : index
    %c0_8 = arith.constant 0 : index
    %c0_9 = arith.constant 0 : index
    %11 = vector.load %arg1[%c4, %c0_8, %c0_9] : memref<9x104x128xf32, #tpu.memory_space<vmem>>, vector<1x104x128xf32>
    %12 = vector.shape_cast %11 : vector<1x104x128xf32> to vector<104x128xf32>
    %13 = arith.maximumf %10, %12 : vector<104x128xf32>
    %c5 = arith.constant 5 : index
    %c0_10 = arith.constant 0 : index
    %c0_11 = arith.constant 0 : index
    %14 = vector.load %arg1[%c5, %c0_10, %c0_11] : memref<9x104x128xf32, #tpu.memory_space<vmem>>, vector<1x104x128xf32>
    %15 = vector.shape_cast %14 : vector<1x104x128xf32> to vector<104x128xf32>
    %16 = arith.maximumf %13, %15 : vector<104x128xf32>
    %c6 = arith.constant 6 : index
    %c0_12 = arith.constant 0 : index
    %c0_13 = arith.constant 0 : index
    %17 = vector.load %arg1[%c6, %c0_12, %c0_13] : memref<9x104x128xf32, #tpu.memory_space<vmem>>, vector<1x104x128xf32>
    %18 = vector.shape_cast %17 : vector<1x104x128xf32> to vector<104x128xf32>
    %19 = arith.maximumf %16, %18 : vector<104x128xf32>
    %c7 = arith.constant 7 : index
    %c0_14 = arith.constant 0 : index
    %c0_15 = arith.constant 0 : index
    %20 = vector.load %arg1[%c7, %c0_14, %c0_15] : memref<9x104x128xf32, #tpu.memory_space<vmem>>, vector<1x104x128xf32>
    %21 = vector.shape_cast %20 : vector<1x104x128xf32> to vector<104x128xf32>
    %22 = arith.maximumf %19, %21 : vector<104x128xf32>
    %c8 = arith.constant 8 : index
    %c0_16 = arith.constant 0 : index
    %c0_17 = arith.constant 0 : index
    %23 = vector.load %arg1[%c8, %c0_16, %c0_17] : memref<9x104x128xf32, #tpu.memory_space<vmem>>, vector<1x104x128xf32>
    %24 = vector.shape_cast %23 : vector<1x104x128xf32> to vector<104x128xf32>
    %25 = arith.maximumf %22, %24 : vector<104x128xf32>
    %c0_18 = arith.constant 0 : index
    %c0_19 = arith.constant 0 : index
    %26 = vector.load %arg2[%c0_18, %c0_19] : memref<104x128xf32, #tpu.memory_space<vmem>>, vector<104x128xf32>
    tpu.vector_store %arg2[%c0_18, %c0_19], %25 {strides = array<i32>} : memref<104x128xf32, #tpu.memory_space<vmem>>, vector<104x128xf32>,
    return
  }
  func.func @transform_0(%arg0: i32) -> (i32, i32, i32) {
    %c0_i32 = arith.constant 0 : i32
    %c0_i32_0 = arith.constant 0 : i32
    %c0_i32_1 = arith.constant 0 : i32
    return %c0_i32, %arg0, %c0_i32_0 : i32, i32, i32
  }
  func.func @transform_1(%arg0: i32) -> (i32, i32) {
    %c0_i32 = arith.constant 0 : i32
    %c0_i32_0 = arith.constant 0 : i32
    return %arg0, %c0_i32 : i32, i32
  }
}

module attributes {stable_mosaic.version = 11 : i64} {
  func.func @_matmul_bias_relu_kernel(%arg0: i32, %arg1: i32, %arg2: memref<104x1664xbf16, #tpu.memory_space<vmem>>, %arg3: memref<1664x256xbf16, #tpu.memory_space<vmem>>, %arg4: memref<1x256xf32, #tpu.memory_space<vmem>>, %arg5: memref<104x256xf32, #tpu.memory_space<vmem>>) attributes {dimension_semantics = [#tpu.dimension_semantics<parallel>, #tpu.dimension_semantics<parallel>], iteration_bounds = array<i64: 1, 1>, scalar_prefetch = 0 : i64, scratch_operands = 0 : i64, tpu.core_type = #tpu.core_type<tc>, window_params = [{transform_indices = @transform_0, window_bounds = array<i64: 104, 1664>}, {transform_indices = @transform_1, window_bounds = array<i64: 1664, 256>}, {transform_indices = @transform_2, window_bounds = array<i64: 1, 256>}, {transform_indices = @transform_3, window_bounds = array<i64: 104, 256>}]} {
    %c0 = arith.constant 0 : index
    %c0_0 = arith.constant 0 : index
    %0 = vector.load %arg2[%c0, %c0_0] : memref<104x1664xbf16, #tpu.memory_space<vmem>>, vector<104x1664xbf16>
    %c0_1 = arith.constant 0 : index
    %c0_2 = arith.constant 0 : index
    %1 = vector.load %arg3[%c0_1, %c0_2] : memref<1664x256xbf16, #tpu.memory_space<vmem>>, vector<1664x256xbf16>
    %cst = arith.constant dense<0.000000e+00> : vector<104x256xf32>
    %2 = tpu.matmul %0, %1, %cst {dimension_numbers = #tpu.dot_dimension_numbers<[1], [0], [0], [1], [0, 0, 1, 1], [], []>} : vector<104x1664xbf16>, vector<1664x256xbf16>, vector<104x256xf32> -> vector<104x256xf32>
    %c0_3 = arith.constant 0 : index
    %c0_4 = arith.constant 0 : index
    %3 = vector.load %arg4[%c0_3, %c0_4] : memref<1x256xf32, #tpu.memory_space<vmem>>, vector<1x256xf32>
    %4 = vector.broadcast %3 : vector<1x256xf32> to vector<104x256xf32>
    %5 = arith.addf %2, %4 : vector<104x256xf32>
    %cst_5 = arith.constant 0.000000e+00 : f32
    %6 = vector.broadcast %cst_5 : f32 to vector<104x256xf32>
    %7 = arith.maximumf %5, %6 : vector<104x256xf32>
    %c0_6 = arith.constant 0 : index
    %c0_7 = arith.constant 0 : index
    %8 = vector.load %arg5[%c0_6, %c0_7] : memref<104x256xf32, #tpu.memory_space<vmem>>, vector<104x256xf32>
    tpu.vector_store %arg5[%c0_6, %c0_7], %7 {strides = array<i32>} : memref<104x256xf32, #tpu.memory_space<vmem>>, vector<104x256xf32>,
    return
  }
  func.func @transform_0(%arg0: i32, %arg1: i32) -> (i32, i32) {
    %c0_i32 = arith.constant 0 : i32
    %c0_i32_0 = arith.constant 0 : i32
    return %arg0, %c0_i32 : i32, i32
  }
  func.func @transform_1(%arg0: i32, %arg1: i32) -> (i32, i32) {
    %c0_i32 = arith.constant 0 : i32
    %c0_i32_0 = arith.constant 0 : i32
    return %c0_i32, %arg1 : i32, i32
  }
  func.func @transform_2(%arg0: i32, %arg1: i32) -> (i32, i32) {
    %c0_i32 = arith.constant 0 : i32
    %c0_i32_0 = arith.constant 0 : i32
    return %c0_i32, %arg1 : i32, i32
  }
  func.func @transform_3(%arg0: i32, %arg1: i32) -> (i32, i32) {
    %c0_i32 = arith.constant 0 : i32
    return %arg0, %arg1 : i32, i32
  }
}

module attributes {stable_mosaic.version = 11 : i64} {
  func.func @_maxpool_kernel(%arg0: i32, %arg1: memref<9x24x256xf32, #tpu.memory_space<vmem>>, %arg2: memref<24x256xf32, #tpu.memory_space<vmem>>) attributes {dimension_semantics = [#tpu.dimension_semantics<parallel>], iteration_bounds = array<i64: 1>, scalar_prefetch = 0 : i64, scratch_operands = 0 : i64, tpu.core_type = #tpu.core_type<tc>, window_params = [{transform_indices = @transform_0, window_bounds = array<i64: 9, 24, 256>}, {transform_indices = @transform_1, window_bounds = array<i64: 24, 256>}]} {
    %c0 = arith.constant 0 : index
    %c0_0 = arith.constant 0 : index
    %c0_1 = arith.constant 0 : index
    %0 = vector.load %arg1[%c0, %c0_0, %c0_1] : memref<9x24x256xf32, #tpu.memory_space<vmem>>, vector<1x24x256xf32>
    %1 = vector.shape_cast %0 : vector<1x24x256xf32> to vector<24x256xf32>
    %c1 = arith.constant 1 : index
    %c0_2 = arith.constant 0 : index
    %c0_3 = arith.constant 0 : index
    %2 = vector.load %arg1[%c1, %c0_2, %c0_3] : memref<9x24x256xf32, #tpu.memory_space<vmem>>, vector<1x24x256xf32>
    %3 = vector.shape_cast %2 : vector<1x24x256xf32> to vector<24x256xf32>
    %4 = arith.maximumf %1, %3 : vector<24x256xf32>
    %c2 = arith.constant 2 : index
    %c0_4 = arith.constant 0 : index
    %c0_5 = arith.constant 0 : index
    %5 = vector.load %arg1[%c2, %c0_4, %c0_5] : memref<9x24x256xf32, #tpu.memory_space<vmem>>, vector<1x24x256xf32>
    %6 = vector.shape_cast %5 : vector<1x24x256xf32> to vector<24x256xf32>
    %7 = arith.maximumf %4, %6 : vector<24x256xf32>
    %c3 = arith.constant 3 : index
    %c0_6 = arith.constant 0 : index
    %c0_7 = arith.constant 0 : index
    %8 = vector.load %arg1[%c3, %c0_6, %c0_7] : memref<9x24x256xf32, #tpu.memory_space<vmem>>, vector<1x24x256xf32>
    %9 = vector.shape_cast %8 : vector<1x24x256xf32> to vector<24x256xf32>
    %10 = arith.maximumf %7, %9 : vector<24x256xf32>
    %c4 = arith.constant 4 : index
    %c0_8 = arith.constant 0 : index
    %c0_9 = arith.constant 0 : index
    %11 = vector.load %arg1[%c4, %c0_8, %c0_9] : memref<9x24x256xf32, #tpu.memory_space<vmem>>, vector<1x24x256xf32>
    %12 = vector.shape_cast %11 : vector<1x24x256xf32> to vector<24x256xf32>
    %13 = arith.maximumf %10, %12 : vector<24x256xf32>
    %c5 = arith.constant 5 : index
    %c0_10 = arith.constant 0 : index
    %c0_11 = arith.constant 0 : index
    %14 = vector.load %arg1[%c5, %c0_10, %c0_11] : memref<9x24x256xf32, #tpu.memory_space<vmem>>, vector<1x24x256xf32>
    %15 = vector.shape_cast %14 : vector<1x24x256xf32> to vector<24x256xf32>
    %16 = arith.maximumf %13, %15 : vector<24x256xf32>
    %c6 = arith.constant 6 : index
    %c0_12 = arith.constant 0 : index
    %c0_13 = arith.constant 0 : index
    %17 = vector.load %arg1[%c6, %c0_12, %c0_13] : memref<9x24x256xf32, #tpu.memory_space<vmem>>, vector<1x24x256xf32>
    %18 = vector.shape_cast %17 : vector<1x24x256xf32> to vector<24x256xf32>
    %19 = arith.maximumf %16, %18 : vector<24x256xf32>
    %c7 = arith.constant 7 : index
    %c0_14 = arith.constant 0 : index
    %c0_15 = arith.constant 0 : index
    %20 = vector.load %arg1[%c7, %c0_14, %c0_15] : memref<9x24x256xf32, #tpu.memory_space<vmem>>, vector<1x24x256xf32>
    %21 = vector.shape_cast %20 : vector<1x24x256xf32> to vector<24x256xf32>
    %22 = arith.maximumf %19, %21 : vector<24x256xf32>
    %c8 = arith.constant 8 : index
    %c0_16 = arith.constant 0 : index
    %c0_17 = arith.constant 0 : index
    %23 = vector.load %arg1[%c8, %c0_16, %c0_17] : memref<9x24x256xf32, #tpu.memory_space<vmem>>, vector<1x24x256xf32>
    %24 = vector.shape_cast %23 : vector<1x24x256xf32> to vector<24x256xf32>
    %25 = arith.maximumf %22, %24 : vector<24x256xf32>
    %c0_18 = arith.constant 0 : index
    %c0_19 = arith.constant 0 : index
    %26 = vector.load %arg2[%c0_18, %c0_19] : memref<24x256xf32, #tpu.memory_space<vmem>>, vector<24x256xf32>
    tpu.vector_store %arg2[%c0_18, %c0_19], %25 {strides = array<i32>} : memref<24x256xf32, #tpu.memory_space<vmem>>, vector<24x256xf32>,
    return
  }
  func.func @transform_0(%arg0: i32) -> (i32, i32, i32) {
    %c0_i32 = arith.constant 0 : i32
    %c0_i32_0 = arith.constant 0 : i32
    %c0_i32_1 = arith.constant 0 : i32
    return %c0_i32, %arg0, %c0_i32_0 : i32, i32, i32
  }
  func.func @transform_1(%arg0: i32) -> (i32, i32) {
    %c0_i32 = arith.constant 0 : i32
    %c0_i32_0 = arith.constant 0 : i32
    return %arg0, %c0_i32 : i32, i32
  }
}

</mosaic_0001>

<bundles_post_ra>
// kernel: alexnet_extractor_forward.4
= control target key start
LH: loop header
LB: loop body
LE: loop exit
PB: predicated region body
PF: predicated region fallthrough
CT: control target
= control target key end

     0   :  { %s1644_s12 = smov 0   ;;  %s1646_s13 = smov 0   ;;  %s2021_s0 = inlined_call_operand.vmem [shape: bf16[512,384], index: 0, kind: input, shape index: {}]   ;;  %s2022_s1 = inlined_call_operand.vmem [shape: bf16[384,128], index: 1, kind: input, shape index: {}]   ;;  %s2023_s2 = inlined_call_operand.vmem [shape: f32[1,128], index: 2, kind: input, shape index: {}]   ;;  %s2024_s3 = inlined_call_operand.vmem [shape: f32[512,128], index: 3, kind: output, shape index: {}]  }
   0x1   :  { %s1648_s14 = smov 0  }
   0x2 LB: > { %s25_s15 = sadd.s32 1, %s1618_s13  ;;  %p1183_p0 = scmp.ge.s32.totalorder %s1622_s14, 1  ;;  %s1622_s14 = sphi %s1648_s14, %s13_s14   ;;  %s1618_s13 = sphi %s1646_s13, %s2026_s13   ;;  %s1614_s12 = sphi %s1644_s12, %s2025_s12  }
   0x3   : > { %p27_p1 = scmp.ge.s32.totalorder %s25_s15, 2  ;;  %p170_p2 = scmp.lt.s32.totalorder %s1622_s14, 3 }
   0x5   : > { %s2028_s15 = smov (%p27_p1, %s25_s15), 0  ;;  %p171_p3 = pnand %p1183_p0, %p170_p2 }
   0x6   : > { %s1184_s7 = sshll.u32 (!%p171_p3), %s1614_s12, 5 }
   0x7   : > { %174 = sbr.rel (%p171_p3) target bundleno = 367 (0x16f), region = 32  ;;  %p206_p4 = scmp.lt.s32.totalorder (!%p171_p3), %s1184_s7, 63 }
   0xc   : > { %v1533_v0 = vld [vmem:[%s2022_s1 + $0x38] sm:$0xff]  ;;  %v1532_v3 = vld [vmem:[%s2022_s1 + $0x30] sm:$0xff]  ;;  %v1531_v6 = vld [vmem:[%s2022_s1 + $0x28] sm:$0xff]  ;;  %s2030_s7 = smov (!%p206_p4, %s1184_s7), 63 }
   0xd   : > { %v1670_v1 = vld [vmem:[%s2022_s1 + $0x78] sm:$0xff]  ;;  %744 = vmatpush.bf16.msra.mxu0 %v1533_v0  ;;  %1550 = vmatpush.bf16.msra.mxu3 %v1533_v0  ;;  %v1685_v4 = vld [vmem:[%s2022_s1 + $0x70] sm:$0xff]  ;;  %v1700_v7 = vld [vmem:[%s2022_s1 + $0x68] sm:$0xff]  ;;  %s1574_s25 = smul.u32 12, %s2030_s7  ;;  %s1187_s24 = sshll.u32 %s2030_s7, 3 }
   0xe   : > { %v1675_v2 = vld [vmem:[%s2022_s1 + $0xb8] sm:$0xff]  ;;  %833 = vmatpush.bf16.msra.mxu1 %v1670_v1  ;;  %v1690_v5 = vld [vmem:[%s2022_s1 + $0xb0] sm:$0xff]  ;;  %v1705_v8 = vld [vmem:[%s2022_s1 + $0xa8] sm:$0xff]  ;;  %s1877_s27 = scalar_lea.vmem %s2024_s3, %s1187_s24 }
   0xf   : > { %922 = vmatpush.bf16.msra.mxu2 %v1675_v2  ;;  %v1530_v9 = vld [vmem:[%s2022_s1 + $0x20] sm:$0xff]  ;;  %v1529_v12 = vld [vmem:[%s2022_s1 + $0x18] sm:$0xff]  ;;  %v1528_v15 = vld [vmem:[%s2022_s1 + $0x10] sm:$0xff]  ;;  %s1757_s8 = scalar_lea.vmem %s2021_s0, %s1574_s25 }
  0x10   : > { %v1716_v10 = vld [vmem:[%s2022_s1 + $0x60] sm:$0xff]  ;;  %v1537_v13 = vld [vmem:[%s2022_s1 + $0x58] sm:$0xff]  ;;  %v1536_v16 = vld [vmem:[%s2022_s1 + $0x50] sm:$0xff] }
  0x11   : > { %745 = vmatpush.bf16.msra.mxu0 %v1532_v3  ;;  %1551 = vmatpush.bf16.msra.mxu3 %v1532_v3  ;;  %v1721_v11 = vld [vmem:[%s2022_s1 + $0xa0] sm:$0xff]  ;;  %v1736_v14 = vld [vmem:[%s2022_s1 + $0x98] sm:$0xff]  ;;  %v1749_v17 = vld [vmem:[%s2022_s1 + $0x90] sm:$0xff] }
  0x12   : > { %834 = vmatpush.bf16.msra.mxu1 %v1685_v4  ;;  %v1527_v18 = vld [vmem:[%s2022_s1 + $0x8] sm:$0xff]  ;;  %v1526_v21 = vld [vmem:[%s2022_s1] sm:$0xff]  ;;  %v1192_v29 = vld [vmem:[%s1757_s8 + $0xc] sm:$0xf0] }
  0x13   : > { %923 = vmatpush.bf16.msra.mxu2 %v1690_v5  ;;  %v1535_v19 = vld [vmem:[%s2022_s1 + $0x48] sm:$0xff]  ;;  %v1534_v22 = vld [vmem:[%s2022_s1 + $0x40] sm:$0xff]  ;;  %v1480_v31 = vld [vmem:[%s1757_s8 + $0x10] sm:$0xf0] }
  0x14   : > { %v1766_v20 = vld [vmem:[%s2022_s1 + $0x88] sm:$0xff]  ;;  %v1777_v23 = vld [vmem:[%s2022_s1 + $0x80] sm:$0xff]  ;;  %v1202_v36 = vld [vmem:[%s1757_s8 + $0x18] sm:$0xf] }
  0x15   : > { %746 = vmatpush.bf16.msra.mxu0 %v1531_v6  ;;  %1552 = vmatpush.bf16.msra.mxu3 %v1531_v6  ;;  %v1190_v24 = vld [vmem:[%s1757_s8] sm:$0xf]  ;;  %v1479_v25 = vld [vmem:[%s1757_s8 + $0x8] sm:$0xf0]  ;;  %v1478_v28 = vld [vmem:[%s1757_s8 + $0x4] sm:$0xf] }
  0x16   : > { %835 = vmatpush.bf16.msra.mxu1 %v1700_v7  ;;  %v1334_v26 = vld [vmem:[%s1757_s8 + $0x120] sm:$0xf]  ;;  %v1515_v27 = vld [vmem:[%s1757_s8 + $0x128] sm:$0xf0]  ;;  %v1198_v30 = vld [vmem:[%s1757_s8 + $0x8] sm:$0xf]  ;;  %v1191_v32 = vor.u32 %v1479_v25, %v1190_v24  ;;  %v1195_v34 = vor.u32 %v1478_v28, %v1192_v29 }
  0x17   : > { %924 = vmatpush.bf16.msra.mxu2 %v1705_v8  ;;  %v1335_v33 = vor.u32 %v1515_v27, %v1334_v26  ;;  %v1199_v35 = vor.u32 %v1480_v31, %v1198_v30  ;;  %v1482_v37 = vld [vmem:[%s1757_s8 + $0x20] sm:$0xf0]  ;;  %v1346_v38 = vld [vmem:[%s1757_s8 + $0x138] sm:$0xf]  ;;  %v1481_v40 = vld [vmem:[%s1757_s8 + $0x1c] sm:$0xf] }
  0x18   : > { %v1518_v39 = vld [vmem:[%s1757_s8 + $0x140] sm:$0xf0]  ;;  %v1204_v41 = vld [vmem:[%s1757_s8 + $0x24] sm:$0xf0]  ;;  %v1210_v42 = vld [vmem:[%s1757_s8 + $0x20] sm:$0xf]  ;;  %v1203_v44 = vor.u32 %v1482_v37, %v1202_v36 }
  0x19   : > { %747 = vmatpush.bf16.msra.mxu0 %v1530_v9  ;;  %1553 = vmatpush.bf16.msra.mxu3 %v1530_v9  ;;  %v1483_v43 = vld [vmem:[%s1757_s8 + $0x28] sm:$0xf0]  ;;  %v1347_v45 = vor.u32 %v1518_v39, %v1346_v38  ;;  %v1207_v46 = vor.u32 %v1481_v40, %v1204_v41  ;;  %v1214_v48 = vld [vmem:[%s1757_s8 + $0x30] sm:$0xf]  ;;  %v1485_v49 = vld [vmem:[%s1757_s8 + $0x38] sm:$0xf0] }
  0x1a   : > { %836 = vmatpush.bf16.msra.mxu1 %v1716_v10  ;;  %v1211_v47 = vor.u32 %v1483_v43, %v1210_v42  ;;  %v1358_v50 = vld [vmem:[%s1757_s8 + $0x150] sm:$0xf]  ;;  %v1521_v51 = vld [vmem:[%s1757_s8 + $0x158] sm:$0xf0]  ;;  %v1484_v52 = vld [vmem:[%s1757_s8 + $0x34] sm:$0xf]  ;;  %v1215_v56 = vor.u32 %v1485_v49, %v1214_v48 }
  0x1b   : > { %925 = vmatpush.bf16.msra.mxu2 %v1721_v11  ;;  %v1216_v53 = vld [vmem:[%s1757_s8 + $0x3c] sm:$0xf0]  ;;  %v1222_v54 = vld [vmem:[%s1757_s8 + $0x38] sm:$0xf]  ;;  %v1486_v55 = vld [vmem:[%s1757_s8 + $0x40] sm:$0xf0]  ;;  %v1359_v57 = vor.u32 %v1521_v51, %v1358_v50 }
  0x1c   : > { %v1219_v58 = vor.u32 %v1484_v52, %v1216_v53  ;;  %v1223_v59 = vor.u32 %v1486_v55, %v1222_v54  ;;  %v1226_v60 = vld [vmem:[%s1757_s8 + $0x48] sm:$0xf]  ;;  %v1488_v61 = vld [vmem:[%s1757_s8 + $0x50] sm:$0xf0]  ;;  %v1487_v0 = vld [vmem:[%s1757_s8 + $0x4c] sm:$0xf] }
  0x1d   : > { %748 = vmatpush.bf16.msra.mxu0 %v1529_v12  ;;  %1554 = vmatpush.bf16.msra.mxu3 %v1529_v12  ;;  %v1370_v62 = vld [vmem:[%s1757_s8 + $0x168] sm:$0xf]  ;;  %v1524_v63 = vld [vmem:[%s1757_s8 + $0x170] sm:$0xf0]  ;;  %v1489_v3 = vld [vmem:[%s1757_s8 + $0x58] sm:$0xf0] }
  0x1e   : > { %837 = vmatpush.bf16.msra.mxu1 %v1537_v13  ;;  %v1491_v9 = vld [vmem:[%s1757_s8 + $0x68] sm:$0xf0]  ;;  %v1336_v12 = vld [vmem:[%s1757_s8 + $0x12c] sm:$0xf0]  ;;  %v1517_v24 = vld [vmem:[%s1757_s8 + $0x13c] sm:$0xf] }
  0x1f   : > { %926 = vmatpush.bf16.msra.mxu2 %v1736_v14  ;;  %v1348_v25 = vld [vmem:[%s1757_s8 + $0x144] sm:$0xf0]  ;;  %v1258_v26 = vld [vmem:[%s1757_s8 + $0x80] sm:$0xf]  ;;  %v1495_v27 = vld [vmem:[%s1757_s8 + $0x88] sm:$0xf0] }
  0x20   : > { %v1351_v29 = vor.u32 %v1517_v24, %v1348_v25  ;;  %v1259_v31 = vor.u32 %v1495_v27, %v1258_v26  ;;  %v1360_v36 = vld [vmem:[%s1757_s8 + $0x15c] sm:$0xf0]  ;;  %v1270_v38 = vld [vmem:[%s1757_s8 + $0x98] sm:$0xf]  ;;  %v1498_v39 = vld [vmem:[%s1757_s8 + $0xa0] sm:$0xf0] }
  0x21   : > { %749 = vmatpush.bf16.msra.mxu0 %v1528_v15  ;;  %1555 = vmatpush.bf16.msra.mxu3 %v1528_v15  ;;  %v1492_v15 = vld [vmem:[%s1757_s8 + $0x70] sm:$0xf0]  ;;  %v1264_v37 = vld [vmem:[%s1757_s8 + $0x9c] sm:$0xf0]  ;;  %v1271_v43 = vor.u32 %v1498_v39, %v1270_v38  ;;  %v1372_v48 = vld [vmem:[%s1757_s8 + $0x174] sm:$0xf0] }
  0x22   : > { %838 = vmatpush.bf16.msra.mxu1 %v1536_v16  ;;  %v1276_v49 = vld [vmem:[%s1757_s8 + $0xb4] sm:$0xf0]  ;;  %v1282_v50 = vld [vmem:[%s1757_s8 + $0xb0] sm:$0xf]  ;;  %v1501_v51 = vld [vmem:[%s1757_s8 + $0xb8] sm:$0xf0] }
  0x23   : > { %927 = vmatpush.bf16.msra.mxu2 %v1749_v17  ;;  %v1283_v55 = vor.u32 %v1501_v51, %v1282_v50  ;;  %v1507_v24 = vld [vmem:[%s1757_s8 + $0xe8] sm:$0xf0]  ;;  %v1318_v50 = vld [vmem:[%s1757_s8 + $0xf8] sm:$0xf]  ;;  %v1510_v51 = vld [vmem:[%s1757_s8 + $0x100] sm:$0xf0] }
  0x25   : > { %750 = vmatpush.bf16.msra.mxu0 %v1527_v18  ;;  %1556 = vmatpush.bf16.msra.mxu3 %v1527_v18 }
  0x26   : > { %839 = vmatpush.bf16.msra.mxu1 %v1535_v19 }
  0x27   : > { %928 = vmatpush.bf16.msra.mxu2 %v1766_v20 }
  0x29   : > { %751 = vmatpush.bf16.msra.mxu0 %v1526_v21  ;;  %1557 = vmatpush.bf16.msra.mxu3 %v1526_v21  ;;  %v1494_v21 = vld [vmem:[%s1757_s8 + $0x80] sm:$0xf0] }
  0x2a   : > { %840 = vmatpush.bf16.msra.mxu1 %v1534_v22 }
  0x2b   : > { %929 = vmatpush.bf16.msra.mxu2 %v1777_v23 }
  0x2c   : > { %752 = vmatmul.bf16.vlgmr.msra.gmra.mxu0 %v1191_v32  ;;  %812 = vmatmul.bf16.vlgmr.msra.gmra.mxu3 %v1335_v33  ;;  %v1262_v32 = vld [vmem:[%s1757_s8 + $0x90] sm:$0xf]  ;;  %v1497_v33 = vld [vmem:[%s1757_s8 + $0x98] sm:$0xf0] }
  0x2d   : > { %1558 = vmatpush.bf16.msrb.mxu3 %v1670_v1  ;;  %841 = vmatmul.bf16.vlgmr.msra.gmra.mxu1 %v1195_v34  ;;  %v1228_v1 = vld [vmem:[%s1757_s8 + $0x54] sm:$0xf0]  ;;  %v1496_v34 = vld [vmem:[%s1757_s8 + $0x94] sm:$0xf]  ;;  %v1263_v40 = vor.u32 %v1497_v33, %v1262_v32 }
  0x2e   : > { %930 = vmatmul.bf16.vlgmr.msra.gmra.mxu2 %v1199_v35  ;;  %v1231_v6 = vor.u32 %v1487_v0, %v1228_v1  ;;  %v1520_v35 = vld [vmem:[%s1757_s8 + $0x154] sm:$0xf]  ;;  %v1267_v42 = vor.u32 %v1496_v34, %v1264_v37 }
  0x2f   : > { %v1363_v41 = vor.u32 %v1520_v35, %v1360_v36  ;;  %v1504_v0 = vld [vmem:[%s1757_s8 + $0xd0] sm:$0xf0] }
  0x31   : > { %1559 = vmatpush.bf16.msrb.mxu3 %v1685_v4  ;;  %v1227_v4 = vor.u32 %v1488_v61, %v1226_v60  ;;  %v1342_v60 = vld [vmem:[%s1757_s8 + $0x128] sm:$0xf]  ;;  %v1516_v61 = vld [vmem:[%s1757_s8 + $0x130] sm:$0xf0] }
  0x35   : > { %1560 = vmatpush.bf16.msrb.mxu3 %v1700_v7 }
  0x39   : > { %1561 = vmatpush.bf16.msrb.mxu3 %v1716_v10  ;;  %v1490_v10 = vld [vmem:[%s1757_s8 + $0x64] sm:$0xf] }
  0x3c   : > { %757 = vmatmul.bf16.gmra.mxu0 %v1203_v44  ;;  %817 = vmatmul.bf16.gmra.mxu3 %v1347_v45  ;;  %v1274_v44 = vld [vmem:[%s1757_s8 + $0xa8] sm:$0xf]  ;;  %v1500_v45 = vld [vmem:[%s1757_s8 + $0xb0] sm:$0xf0] }
  0x3d   : > { %1562 = vmatpush.bf16.msrb.mxu3 %v1537_v13  ;;  %846 = vmatmul.bf16.gmra.mxu1 %v1207_v46  ;;  %v1240_v13 = vld [vmem:[%s1757_s8 + $0x6c] sm:$0xf0]  ;;  %v1499_v46 = vld [vmem:[%s1757_s8 + $0xac] sm:$0xf]  ;;  %v1275_v52 = vor.u32 %v1500_v45, %v1274_v44  ;;  %v1509_v45 = vld [vmem:[%s1757_s8 + $0xf8] sm:$0xf0] }
  0x3e   : > { %935 = vmatmul.bf16.gmra.mxu2 %v1211_v47  ;;  %v1243_v18 = vor.u32 %v1490_v10, %v1240_v13  ;;  %v1523_v47 = vld [vmem:[%s1757_s8 + $0x16c] sm:$0xf]  ;;  %v1279_v54 = vor.u32 %v1499_v46, %v1276_v49  ;;  %v1310_v44 = vld [vmem:[%s1757_s8 + $0xf0] sm:$0xf]  ;;  %v1508_v46 = vld [vmem:[%s1757_s8 + $0xf4] sm:$0xf] }
  0x3f   : > { %v1375_v53 = vor.u32 %v1523_v47, %v1372_v48  ;;  %v1366_v47 = vld [vmem:[%s1757_s8 + $0x158] sm:$0xf]  ;;  %v1522_v48 = vld [vmem:[%s1757_s8 + $0x160] sm:$0xf0]  ;;  %v1312_v49 = vld [vmem:[%s1757_s8 + $0xfc] sm:$0xf0] }
  0x41   : > { %1563 = vmatpush.bf16.msrb.mxu3 %v1536_v16 }
  0x45   : > { %1564 = vmatpush.bf16.msrb.mxu3 %v1535_v19 }
  0x49   : > { %1565 = vmatpush.bf16.msrb.mxu3 %v1534_v22  ;;  %v1493_v22 = vld [vmem:[%s1757_s8 + $0x7c] sm:$0xf] }
  0x4c   : > { %762 = vmatmul.bf16.gmra.mxu0 %v1215_v56  ;;  %822 = vmatmul.bf16.gmra.mxu3 %v1359_v57  ;;  %v1860_v56 = vld [vmem:[%s2023_s2] ss:$0 sm:$0xff] }
  0x4d   : > { %1566 = vmatpush.bf16.msra.mxu3 %v1675_v2  ;;  %851 = vmatmul.bf16.gmra.mxu1 %v1219_v58  ;;  %v1234_v2 = vld [vmem:[%s1757_s8 + $0x50] sm:$0xf]  ;;  %v1286_v57 = vld [vmem:[%s1757_s8 + $0xc0] sm:$0xf]  ;;  %v1503_v58 = vld [vmem:[%s1757_s8 + $0xc8] sm:$0xf0] }
  0x4e   : > { %940 = vmatmul.bf16.gmra.mxu2 %v1223_v59  ;;  %v1235_v7 = vor.u32 %v1489_v3, %v1234_v2  ;;  %v1502_v59 = vld [vmem:[%s1757_s8 + $0xc4] sm:$0xf]  ;;  %v1287_v1 = vor.u32 %v1503_v58, %v1286_v57  ;;  %v1343_v2 = vor.u32 %v1516_v61, %v1342_v60  ;;  %v1367_v57 = vor.u32 %v1522_v48, %v1366_v47 }
  0x4f   : > { %v1315_v60 = vor.u32 %v1508_v46, %v1312_v49  ;;  %v1319_v61 = vor.u32 %v1510_v51, %v1318_v50 }
  0x51   : > { %1567 = vmatpush.bf16.msra.mxu3 %v1690_v5  ;;  %v1371_v5 = vor.u32 %v1524_v63, %v1370_v62  ;;  %v1288_v62 = vld [vmem:[%s1757_s8 + $0xcc] sm:$0xf0]  ;;  %v1294_v63 = vld [vmem:[%s1757_s8 + $0xc8] sm:$0xf] }
  0x55   : > { %1568 = vmatpush.bf16.msra.mxu3 %v1705_v8  ;;  %v1238_v8 = vld [vmem:[%s1757_s8 + $0x60] sm:$0xf] }
  0x56   : > { %v1239_v16 = vor.u32 %v1491_v9, %v1238_v8 }
  0x59   : > { %1569 = vmatpush.bf16.msra.mxu3 %v1721_v11  ;;  %v1514_v11 = vld [vmem:[%s1757_s8 + $0x124] sm:$0xf] }
  0x5c   : > { %767 = vmatmul.bf16.gmra.mxu0 %v1227_v4  ;;  %827 = vmatmul.bf16.gmra.mxu3 %v1371_v5  ;;  %v1291_v4 = vor.u32 %v1502_v59, %v1288_v62  ;;  %v1295_v5 = vor.u32 %v1504_v0, %v1294_v63 }
  0x5d   : > { %1570 = vmatpush.bf16.msra.mxu3 %v1736_v14  ;;  %856 = vmatmul.bf16.gmra.mxu1 %v1231_v6  ;;  %v1246_v14 = vld [vmem:[%s1757_s8 + $0x68] sm:$0xf] }
  0x5e   : > { %945 = vmatmul.bf16.gmra.mxu2 %v1235_v7  ;;  %v1247_v19 = vor.u32 %v1492_v15, %v1246_v14 }
  0x61   : > { %1571 = vmatpush.bf16.msra.mxu3 %v1749_v17  ;;  %v1339_v17 = vor.u32 %v1514_v11, %v1336_v12 }
  0x65   : > { %1572 = vmatpush.bf16.msra.mxu3 %v1766_v20  ;;  %v1250_v20 = vld [vmem:[%s1757_s8 + $0x78] sm:$0xf] }
  0x66   : > { %v1251_v28 = vor.u32 %v1494_v21, %v1250_v20  ;;  %v1519_v20 = vld [vmem:[%s1757_s8 + $0x148] sm:$0xf0]  ;;  %v1300_v21 = vld [vmem:[%s1757_s8 + $0xe4] sm:$0xf0] }
  0x69   : > { %1573 = vmatpush.bf16.msra.mxu3 %v1777_v23  ;;  %v1252_v23 = vld [vmem:[%s1757_s8 + $0x84] sm:$0xf0] }
  0x6a   : > { %v1255_v30 = vor.u32 %v1493_v22, %v1252_v23  ;;  %v1306_v22 = vld [vmem:[%s1757_s8 + $0xe0] sm:$0xf] }
  0x6b   : > { %v1307_v32 = vor.u32 %v1507_v24, %v1306_v22 }
  0x6c   : > { %772 = vmatmul.bf16.gmra.mxu0 %v1239_v16  ;;  %901 = vmatmul.bf16.vlgmr.msrb.gmra.mxu3 %v1339_v17  ;;  %v1298_v16 = vld [vmem:[%s1757_s8 + $0xd8] sm:$0xf]  ;;  %v1506_v17 = vld [vmem:[%s1757_s8 + $0xe0] sm:$0xf0] }
  0x6d   : > { %861 = vmatmul.bf16.gmra.mxu1 %v1243_v18  ;;  %v1505_v18 = vld [vmem:[%s1757_s8 + $0xdc] sm:$0xf]  ;;  %v1299_v27 = vor.u32 %v1506_v17, %v1298_v16  ;;  %v1330_v16 = vld [vmem:[%s1757_s8 + $0x110] sm:$0xf] }
  0x6e   : > { %950 = vmatmul.bf16.gmra.mxu2 %v1247_v19  ;;  %v1354_v19 = vld [vmem:[%s1757_s8 + $0x140] sm:$0xf]  ;;  %v1513_v17 = vld [vmem:[%s1757_s8 + $0x118] sm:$0xf0] }
  0x7c   : > { %777 = vmatmul.bf16.gmra.mxu0 %v1251_v28  ;;  %906 = vmatmul.bf16.gmra.mxu3 %v1351_v29  ;;  %v1355_v28 = vor.u32 %v1519_v20, %v1354_v19 }
  0x7d   : > { %866 = vmatmul.bf16.gmra.mxu1 %v1255_v30 }
  0x7e   : > { %955 = vmatmul.bf16.gmra.mxu2 %v1259_v31  ;;  %v1303_v31 = vor.u32 %v1505_v18, %v1300_v21 }
  0x8c   : > { %782 = vmatmul.bf16.gmra.mxu0 %v1263_v40  ;;  %911 = vmatmul.bf16.gmra.mxu3 %v1363_v41 }
  0x8d   : > { %871 = vmatmul.bf16.gmra.mxu1 %v1267_v42 }
  0x8e   : > { %960 = vmatmul.bf16.gmra.mxu2 %v1271_v43 }
  0x9c   : > { %787 = vmatmul.bf16.gmra.mxu0 %v1275_v52  ;;  %916 = vmatmul.bf16.gmra.mxu3 %v1375_v53 }
  0x9d   : > { %876 = vmatmul.bf16.gmra.mxu1 %v1279_v54 }
  0x9e   : > { %965 = vmatmul.bf16.gmra.mxu2 %v1283_v55  ;;  %v1311_v55 = vor.u32 %v1509_v45, %v1310_v44 }
  0xa9   : > { %v753_v3 = vpop.f32.mrf.mxu0 }
  0xaa   : > { %v754_v6 = vadd.f32 %v1860_v56, %v753_v3  ;;  %v842_v7 = vpop.f32.mrf.mxu1 }
  0xac   : > { %792 = vmatmul.bf16.gmra.mxu0 %v1287_v1  ;;  %990 = vmatmul.bf16.vlgmr.msra.gmra.mxu3 %v1343_v2  ;;  %v843_v8 = vadd.f32 %v842_v7, %v754_v6 }
  0xad   : > { %881 = vmatmul.bf16.gmra.mxu1 %v1291_v4 }
  0xae   : > { %970 = vmatmul.bf16.gmra.mxu2 %v1295_v5 }
  0xaf   : > { %v1871_v9 = vpop.f32.mrf.mxu3 }
  0xb1   : > { %v931_v10 = vpop.f32.mrf.mxu2  ;;  %v755_v12 = vpop.f32.mrf.mxu0 }
  0xb2   : > { %v932_v11 = vadd.f32 %v931_v10, %v843_v8  ;;  %v844_v13 = vpop.f32.mrf.mxu1  ;;  %v756_v15 = vadd.f32 %v1860_v56, %v755_v12  ;;  %v1322_v10 = vld [vmem:[%s1757_s8 + $0x108] sm:$0xf]  ;;  %v1511_v12 = vld [vmem:[%s1757_s8 + $0x10c] sm:$0xf] }
  0xb4   : > { %v1011_v14 = vmax.f32 %v932_v11, 0.0  ;;  %v845_v25 = vadd.f32 %v844_v13, %v756_v15  ;;  %v1512_v11 = vld [vmem:[%s1757_s8 + $0x110] sm:$0xf0]  ;;  %v1378_v13 = vld [vmem:[%s1757_s8 + $0x170] sm:$0xf] }
  0xb5   : > { %v1324_v15 = vld [vmem:[%s1757_s8 + $0x114] sm:$0xf0]  ;;  %v1323_v21 = vor.u32 %v1512_v11, %v1322_v10 }
  0xb6   : > { %1043 = vst [vmem:[%s1877_s27] sm:$0xff] %v1011_v14  ;;  %v1525_v14 = vld [vmem:[%s1757_s8 + $0x178] sm:$0xf0] }
  0xb7   : > { %v1889_v23 = vpop.f32.mrf.mxu3  ;;  %v1379_v22 = vor.u32 %v1525_v14, %v1378_v13 }
  0xb9   : > { %v933_v26 = vpop.f32.mrf.mxu2  ;;  %v758_v30 = vpop.f32.mrf.mxu0 }
  0xba   : > { %v934_v29 = vadd.f32 %v933_v26, %v845_v25  ;;  %v759_v33 = vadd.f32 %v1860_v56, %v758_v30  ;;  %v847_v34 = vpop.f32.mrf.mxu1  ;;  %v1327_v26 = vor.u32 %v1511_v12, %v1324_v15 }
  0xbc   : > { %v1012_v35 = vmax.f32 %v934_v29, 0.0  ;;  %797 = vmatmul.bf16.gmra.mxu0 %v1299_v27  ;;  %995 = vmatmul.bf16.gmra.mxu3 %v1355_v28  ;;  %v848_v36 = vadd.f32 %v847_v34, %v759_v33  ;;  %v1331_v27 = vor.u32 %v1513_v17, %v1330_v16 }
  0xbd   : > { %886 = vmatmul.bf16.gmra.mxu1 %v1303_v31 }
  0xbe   : > { %1044 = vst [vmem:[%s1877_s27 + $0x8] sm:$0xff] %v1012_v35  ;;  %975 = vmatmul.bf16.gmra.mxu2 %v1307_v32 }
  0xbf   : > { %v1893_v37 = vpop.f32.mrf.mxu3 }
  0xc1   : > { %v936_v38 = vpop.f32.mrf.mxu2  ;;  %v760_v40 = vpop.f32.mrf.mxu0 }
  0xc2   : > { %v937_v39 = vadd.f32 %v936_v38, %v848_v36  ;;  %v849_v41 = vpop.f32.mrf.mxu1  ;;  %v761_v43 = vadd.f32 %v1860_v56, %v760_v40 }
  0xc4   : > { %v1013_v42 = vmax.f32 %v937_v39, 0.0  ;;  %v850_v52 = vadd.f32 %v849_v41, %v761_v43 }
  0xc6   : > { %1045 = vst [vmem:[%s1877_s27 + $0x10] sm:$0xff] %v1013_v42 }
  0xc7   : > { %v1905_v53 = vpop.f32.mrf.mxu3 }
  0xc9   : > { %v938_v54 = vpop.f32.mrf.mxu2  ;;  %v763_v59 = vpop.f32.mrf.mxu0 }
  0xca   : > { %v939_v58 = vadd.f32 %v938_v54, %v850_v52  ;;  %v764_v62 = vadd.f32 %v1860_v56, %v763_v59  ;;  %v852_v63 = vpop.f32.mrf.mxu1 }
  0xcc   : > { %v1014_v0 = vmax.f32 %v939_v58, 0.0  ;;  %802 = vmatmul.bf16.gmra.mxu0 %v1311_v55  ;;  %1000 = vmatmul.bf16.gmra.mxu3 %v1367_v57  ;;  %v853_v1 = vadd.f32 %v852_v63, %v764_v62 }
  0xcd   : > { %891 = vmatmul.bf16.gmra.mxu1 %v1315_v60 }
  0xce   : > { %1046 = vst [vmem:[%s1877_s27 + $0x18] sm:$0xff] %v1014_v0  ;;  %980 = vmatmul.bf16.gmra.mxu2 %v1319_v61 }
  0xcf   : > { %v1909_v2 = vpop.f32.mrf.mxu3 }
  0xd1   : > { %v941_v3 = vpop.f32.mrf.mxu2  ;;  %v765_v5 = vpop.f32.mrf.mxu0 }
  0xd2   : > { %v942_v4 = vadd.f32 %v941_v3, %v853_v1  ;;  %v854_v6 = vpop.f32.mrf.mxu1  ;;  %v766_v8 = vadd.f32 %v1860_v56, %v765_v5 }
  0xd4   : > { %v1015_v7 = vmax.f32 %v942_v4, 0.0  ;;  %v855_v18 = vadd.f32 %v854_v6, %v766_v8 }
  0xd6   : > { %1047 = vst [vmem:[%s1877_s27 + $0x20] sm:$0xff] %v1015_v7 }
  0xd7   : > { %v1921_v19 = vpop.f32.mrf.mxu3 }
  0xd9   : > { %v943_v20 = vpop.f32.mrf.mxu2  ;;  %v768_v25 = vpop.f32.mrf.mxu0 }
  0xda   : > { %v944_v24 = vadd.f32 %v943_v20, %v855_v18  ;;  %v769_v28 = vadd.f32 %v1860_v56, %v768_v25  ;;  %v857_v29 = vpop.f32.mrf.mxu1 }
  0xdc   : > { %v1016_v30 = vmax.f32 %v944_v24, 0.0  ;;  %807 = vmatmul.bf16.gmra.mxu0 %v1323_v21  ;;  %1005 = vmatmul.bf16.gmra.mxu3 %v1379_v22  ;;  %v858_v31 = vadd.f32 %v857_v29, %v769_v28 }
  0xdd   : > { %896 = vmatmul.bf16.gmra.mxu1 %v1327_v26 }
  0xde   : > { %1048 = vst [vmem:[%s1877_s27 + $0x28] sm:$0xff] %v1016_v30  ;;  %985 = vmatmul.bf16.gmra.mxu2 %v1331_v27 }
  0xdf   : > { %v1925_v32 = vpop.f32.mrf.mxu3 }
  0xe1   : > { %v946_v33 = vpop.f32.mrf.mxu2  ;;  %v770_v35 = vpop.f32.mrf.mxu0 }
  0xe2   : > { %v947_v34 = vadd.f32 %v946_v33, %v858_v31  ;;  %v859_v36 = vpop.f32.mrf.mxu1  ;;  %v771_v39 = vadd.f32 %v1860_v56, %v770_v35 }
  0xe4   : > { %v1017_v38 = vmax.f32 %v947_v34, 0.0  ;;  %v860_v40 = vadd.f32 %v859_v36, %v771_v39 }
  0xe6   : > { %1049 = vst [vmem:[%s1877_s27 + $0x30] sm:$0xff] %v1017_v38 }
  0xe7   : > { %v1929_v41 = vpop.f32.mrf.mxu3 }
  0xe9   : > { %v948_v42 = vpop.f32.mrf.mxu2  ;;  %v773_v44 = vpop.f32.mrf.mxu0 }
  0xea   : > { %v949_v43 = vadd.f32 %v948_v42, %v860_v40  ;;  %v774_v45 = vadd.f32 %v1860_v56, %v773_v44  ;;  %v862_v46 = vpop.f32.mrf.mxu1 }
  0xec   : > { %v1018_v47 = vmax.f32 %v949_v43, 0.0  ;;  %v863_v48 = vadd.f32 %v862_v46, %v774_v45 }
  0xee   : > { %1050 = vst [vmem:[%s1877_s27 + $0x38] sm:$0xff] %v1018_v47 }
  0xef   : > { %v1933_v49 = vpop.f32.mrf.mxu3 }
  0xf1   : > { %v951_v50 = vpop.f32.mrf.mxu2  ;;  %v775_v52 = vpop.f32.mrf.mxu0 }
  0xf2   : > { %v952_v51 = vadd.f32 %v951_v50, %v863_v48  ;;  %v864_v54 = vpop.f32.mrf.mxu1  ;;  %v776_v57 = vadd.f32 %v1860_v56, %v775_v52 }
  0xf4   : > { %v1019_v55 = vmax.f32 %v952_v51, 0.0  ;;  %v865_v58 = vadd.f32 %v864_v54, %v776_v57 }
  0xf6   : > { %1051 = vst [vmem:[%s1877_s27 + $0x40] sm:$0xff] %v1019_v55 }
  0xf7   : > { %v1937_v59 = vpop.f32.mrf.mxu3 }
  0xf9   : > { %v953_v60 = vpop.f32.mrf.mxu2  ;;  %v778_v62 = vpop.f32.mrf.mxu0 }
  0xfa   : > { %v954_v61 = vadd.f32 %v953_v60, %v865_v58  ;;  %v779_v63 = vadd.f32 %v1860_v56, %v778_v62  ;;  %v867_v0 = vpop.f32.mrf.mxu1 }
  0xfc   : > { %v1020_v1 = vmax.f32 %v954_v61, 0.0  ;;  %v868_v3 = vadd.f32 %v867_v0, %v779_v63  ;;  %v814_v61 = vadd.f32 %v1860_v56, %v1871_v9 }
  0xfe   : > { %1052 = vst [vmem:[%s1877_s27 + $0x48] sm:$0xff] %v1020_v1  ;;  %v903_v63 = vadd.f32 %v1933_v49, %v814_v61 }
  0xff   : > { %v1941_v4 = vpop.f32.mrf.mxu3 }
 0x101   : > { %v956_v5 = vpop.f32.mrf.mxu2  ;;  %v780_v7 = vpop.f32.mrf.mxu0 }
 0x102   : > { %v957_v6 = vadd.f32 %v956_v5, %v868_v3  ;;  %v869_v8 = vpop.f32.mrf.mxu1  ;;  %v781_v11 = vadd.f32 %v1860_v56, %v780_v7 }
 0x104   : > { %v1021_v10 = vmax.f32 %v957_v6, 0.0  ;;  %v870_v12 = vadd.f32 %v869_v8, %v781_v11 }
 0x106   : > { %1053 = vst [vmem:[%s1877_s27 + $0x50] sm:$0xff] %v1021_v10 }
 0x107   : > { %v1945_v13 = vpop.f32.mrf.mxu3 }
 0x109   : > { %v958_v14 = vpop.f32.mrf.mxu2  ;;  %v783_v16 = vpop.f32.mrf.mxu0 }
 0x10a   : > { %v959_v15 = vadd.f32 %v958_v14, %v870_v12  ;;  %v784_v17 = vadd.f32 %v1860_v56, %v783_v16  ;;  %v872_v18 = vpop.f32.mrf.mxu1  ;;  %v816_v12 = vadd.f32 %v1860_v56, %v1889_v23  ;;  %v819_v23 = vadd.f32 %v1860_v56, %v1893_v37 }
 0x10b   : > { %v821_v37 = vadd.f32 %v1860_v56, %v1905_v53  ;;  %v824_v53 = vadd.f32 %v1860_v56, %v1909_v2  ;;  %v826_v2 = vadd.f32 %v1860_v56, %v1921_v19 }
 0x10c   : > { %v1022_v20 = vmax.f32 %v959_v15, 0.0  ;;  %v873_v21 = vadd.f32 %v872_v18, %v784_v17  ;;  %v905_v9 = vadd.f32 %v1937_v59, %v816_v12  ;;  %v908_v59 = vadd.f32 %v1941_v4, %v819_v23 }
 0x10e   : > { %1054 = vst [vmem:[%s1877_s27 + $0x58] sm:$0xff] %v1022_v20 }
 0x10f   : > { %v1949_v22 = vpop.f32.mrf.mxu3 }
 0x111   : > { %v961_v24 = vpop.f32.mrf.mxu2  ;;  %v785_v26 = vpop.f32.mrf.mxu0 }
 0x112   : > { %v962_v25 = vadd.f32 %v961_v24, %v873_v21  ;;  %v874_v27 = vpop.f32.mrf.mxu1  ;;  %v786_v29 = vadd.f32 %v1860_v56, %v785_v26 }
 0x114   : > { %v1023_v28 = vmax.f32 %v962_v25, 0.0  ;;  %v875_v30 = vadd.f32 %v874_v27, %v786_v29 }
 0x116   : > { %1055 = vst [vmem:[%s1877_s27 + $0x60] sm:$0xff] %v1023_v28 }
 0x117   : > { %v1953_v31 = vpop.f32.mrf.mxu3 }
 0x119   : > { %v963_v33 = vpop.f32.mrf.mxu2  ;;  %v788_v35 = vpop.f32.mrf.mxu0 }
 0x11a   : > { %v964_v34 = vadd.f32 %v963_v33, %v875_v30  ;;  %v789_v36 = vadd.f32 %v1860_v56, %v788_v35  ;;  %v877_v38 = vpop.f32.mrf.mxu1 }
 0x11c   : > { %v1024_v39 = vmax.f32 %v964_v34, 0.0  ;;  %v878_v40 = vadd.f32 %v877_v38, %v789_v36 }
 0x11e   : > { %1056 = vst [vmem:[%s1877_s27 + $0x68] sm:$0xff] %v1024_v39  ;;  %v910_v39 = vadd.f32 %v1945_v13, %v821_v37  ;;  %v913_v13 = vadd.f32 %v1949_v22, %v824_v53 }
 0x11f   : > { %v1957_v42 = vpop.f32.mrf.mxu3 }
 0x121   : > { %v966_v43 = vpop.f32.mrf.mxu2  ;;  %v790_v45 = vpop.f32.mrf.mxu0 }
 0x122   : > { %v967_v44 = vadd.f32 %v966_v43, %v878_v40  ;;  %v879_v46 = vpop.f32.mrf.mxu1  ;;  %v791_v48 = vadd.f32 %v1860_v56, %v790_v45 }
 0x124   : > { %v1025_v47 = vmax.f32 %v967_v44, 0.0  ;;  %v880_v50 = vadd.f32 %v879_v46, %v791_v48 }
 0x126   : > { %1057 = vst [vmem:[%s1877_s27 + $0x70] sm:$0xff] %v1025_v47 }
 0x127   : > { %v1961_v51 = vpop.f32.mrf.mxu3 }
 0x129   : > { %v968_v52 = vpop.f32.mrf.mxu2  ;;  %v793_v55 = vpop.f32.mrf.mxu0 }
 0x12a   : > { %v969_v54 = vadd.f32 %v968_v52, %v880_v50  ;;  %v794_v57 = vadd.f32 %v1860_v56, %v793_v55  ;;  %v882_v58 = vpop.f32.mrf.mxu1 }
 0x12c   : > { %v1026_v60 = vmax.f32 %v969_v54, 0.0  ;;  %v883_v62 = vadd.f32 %v882_v58, %v794_v57 }
 0x12e   : > { %1058 = vst [vmem:[%s1877_s27 + $0x78] sm:$0xff] %v1026_v60 }
 0x12f   : > { %v991_v0 = vpop.f32.mrf.mxu3 }
 0x130   : > { %v992_v3 = vadd.f32 %v991_v0, %v903_v63 }
 0x131   : > { %v971_v1 = vpop.f32.mrf.mxu2  ;;  %v795_v6 = vpop.f32.mrf.mxu0 }
 0x132   : > { %v972_v5 = vadd.f32 %v971_v1, %v883_v62  ;;  %v1035_v7 = vmax.f32 %v992_v3, 0.0  ;;  %v884_v8 = vpop.f32.mrf.mxu1  ;;  %v796_v11 = vadd.f32 %v1860_v56, %v795_v6  ;;  %v915_v3 = vadd.f32 %v1953_v31, %v826_v2 }
 0x134   : > { %v1027_v10 = vmax.f32 %v972_v5, 0.0  ;;  %1067 = vst [vmem:[%s1877_s27 + $0xc0] sm:$0xff] %v1035_v7  ;;  %v885_v49 = vadd.f32 %v884_v8, %v796_v11 }
 0x136   : > { %1059 = vst [vmem:[%s1877_s27 + $0x80] sm:$0xff] %v1027_v10 }
 0x137   : > { %v993_v14 = vpop.f32.mrf.mxu3 }
 0x138   : > { %v994_v16 = vadd.f32 %v993_v14, %v905_v9 }
 0x139   : > { %v973_v15 = vpop.f32.mrf.mxu2  ;;  %v798_v18 = vpop.f32.mrf.mxu0 }
 0x13a   : > { %v974_v17 = vadd.f32 %v973_v15, %v885_v49  ;;  %v1036_v20 = vmax.f32 %v994_v16, 0.0  ;;  %v799_v21 = vadd.f32 %v1860_v56, %v798_v18  ;;  %v887_v24 = vpop.f32.mrf.mxu1  ;;  %v829_v49 = vadd.f32 %v1860_v56, %v1925_v32 }
 0x13b   : > { %v831_v32 = vadd.f32 %v1860_v56, %v1929_v41 }
 0x13c   : > { %v1028_v25 = vmax.f32 %v974_v17, 0.0  ;;  %1068 = vst [vmem:[%s1877_s27 + $0xc8] sm:$0xff] %v1036_v20  ;;  %v888_v26 = vadd.f32 %v887_v24, %v799_v21  ;;  %v918_v31 = vadd.f32 %v1957_v42, %v829_v49 }
 0x13d   : > { %v920_v23 = vadd.f32 %v1961_v51, %v831_v32 }
 0x13e   : > { %1060 = vst [vmem:[%s1877_s27 + $0x88] sm:$0xff] %v1028_v25 }
 0x13f   : > { %v996_v27 = vpop.f32.mrf.mxu3 }
 0x140   : > { %v997_v29 = vadd.f32 %v996_v27, %v908_v59 }
 0x141   : > { %v976_v28 = vpop.f32.mrf.mxu2  ;;  %v800_v33 = vpop.f32.mrf.mxu0 }
 0x142   : > { %v977_v30 = vadd.f32 %v976_v28, %v888_v26  ;;  %v1037_v34 = vmax.f32 %v997_v29, 0.0  ;;  %v889_v35 = vpop.f32.mrf.mxu1  ;;  %v801_v38 = vadd.f32 %v1860_v56, %v800_v33 }
 0x144   : > { %v1029_v36 = vmax.f32 %v977_v30, 0.0  ;;  %1069 = vst [vmem:[%s1877_s27 + $0xd0] sm:$0xff] %v1037_v34  ;;  %v890_v4 = vadd.f32 %v889_v35, %v801_v38 }
 0x146   : > { %1061 = vst [vmem:[%s1877_s27 + $0x90] sm:$0xff] %v1029_v36 }
 0x147   : > { %v998_v40 = vpop.f32.mrf.mxu3 }
 0x148   : > { %v999_v44 = vadd.f32 %v998_v40, %v910_v39 }
 0x149   : > { %v978_v43 = vpop.f32.mrf.mxu2  ;;  %v803_v46 = vpop.f32.mrf.mxu0 }
 0x14a   : > { %v979_v45 = vadd.f32 %v978_v43, %v890_v4  ;;  %v1038_v47 = vmax.f32 %v999_v44, 0.0  ;;  %v804_v48 = vadd.f32 %v1860_v56, %v803_v46  ;;  %v892_v50 = vpop.f32.mrf.mxu1 }
 0x14c   : > { %v1030_v52 = vmax.f32 %v979_v45, 0.0  ;;  %1070 = vst [vmem:[%s1877_s27 + $0xd8] sm:$0xff] %v1038_v47  ;;  %v893_v54 = vadd.f32 %v892_v50, %v804_v48 }
 0x14e   : > { %1062 = vst [vmem:[%s1877_s27 + $0x98] sm:$0xff] %v1030_v52 }
 0x14f   : > { %v1001_v55 = vpop.f32.mrf.mxu3 }
 0x150   : > { %v1002_v58 = vadd.f32 %v1001_v55, %v913_v13 }
 0x151   : > { %v981_v57 = vpop.f32.mrf.mxu2  ;;  %v805_v61 = vpop.f32.mrf.mxu0 }
 0x152   : > { %v982_v60 = vadd.f32 %v981_v57, %v893_v54  ;;  %v1039_v62 = vmax.f32 %v1002_v58, 0.0  ;;  %v894_v63 = vpop.f32.mrf.mxu1  ;;  %v806_v1 = vadd.f32 %v1860_v56, %v805_v61 }
 0x154   : > { %v1031_v0 = vmax.f32 %v982_v60, 0.0  ;;  %1071 = vst [vmem:[%s1877_s27 + $0xe0] sm:$0xff] %v1039_v62  ;;  %v895_v22 = vadd.f32 %v894_v63, %v806_v1 }
 0x156   : > { %1063 = vst [vmem:[%s1877_s27 + $0xa0] sm:$0xff] %v1031_v0 }
 0x157   : > { %v1003_v5 = vpop.f32.mrf.mxu3 }
 0x158   : > { %v1004_v7 = vadd.f32 %v1003_v5, %v915_v3 }
 0x159   : > { %v983_v6 = vpop.f32.mrf.mxu2  ;;  %v808_v10 = vpop.f32.mrf.mxu0 }
 0x15a   : > { %v984_v8 = vadd.f32 %v983_v6, %v895_v22  ;;  %v1040_v11 = vmax.f32 %v1004_v7, 0.0  ;;  %v809_v12 = vadd.f32 %v1860_v56, %v808_v10  ;;  %v897_v19 = vpop.f32.mrf.mxu1 }
 0x15c   : > { %v1032_v9 = vmax.f32 %v984_v8, 0.0  ;;  %1072 = vst [vmem:[%s1877_s27 + $0xe8] sm:$0xff] %v1040_v11  ;;  %v898_v14 = vadd.f32 %v897_v19, %v809_v12 }
 0x15e   : > { %1064 = vst [vmem:[%s1877_s27 + $0xa8] sm:$0xff] %v1032_v9 }
 0x15f   : > { %v1006_v15 = vpop.f32.mrf.mxu3 }
 0x160   : > { %v1007_v17 = vadd.f32 %v1006_v15, %v918_v31 }
 0x161   : > { %v986_v16 = vpop.f32.mrf.mxu2  ;;  %v810_v20 = vpop.f32.mrf.mxu0 }
 0x162   : > { %v987_v18 = vadd.f32 %v986_v16, %v898_v14  ;;  %v1041_v21 = vmax.f32 %v1007_v17, 0.0  ;;  %v811_v25 = vadd.f32 %v1860_v56, %v810_v20  ;;  %v899_v26 = vpop.f32.mrf.mxu1 }
 0x164   : > { %v1033_v24 = vmax.f32 %v987_v18, 0.0  ;;  %1073 = vst [vmem:[%s1877_s27 + $0xf0] sm:$0xff] %v1041_v21  ;;  %v900_v42 = vadd.f32 %v899_v26, %v811_v25 }
 0x166   : > { %1065 = vst [vmem:[%s1877_s27 + $0xb0] sm:$0xff] %v1033_v24 }
 0x167   : > { %v1008_v59 = vpop.f32.mrf.mxu3 }
 0x168   : > { %v1009_v28 = vadd.f32 %v1008_v59, %v920_v23 }
 0x169   : > { %v988_v27 = vpop.f32.mrf.mxu2 }
 0x16a   : > { %v989_v29 = vadd.f32 %v988_v27, %v900_v42  ;;  %v1042_v30 = vmax.f32 %v1009_v28, 0.0 }
 0x16c   : > { %v1034_v33 = vmax.f32 %v989_v29, 0.0  ;;  %1074 = vst [vmem:[%s1877_s27 + $0xf8] sm:$0xff] %v1042_v30 }
 0x16e   : > { %1066 = vst [vmem:[%s1877_s27 + $0xb8] sm:$0xff] %v1034_v33 }
 0x16f PF: > { %s13_s14 = sadd.s32 1, %s1622_s14   ;;  %s2025_s12 = smov %s1618_s13 }
 0x170   : > { %p10_p5 = scmp.ge.s32.totalorder %s13_s14, 4   ;;  %s2026_s13 = smov %s2028_s15 }
 0x172   :  { %12 = sbr.rel (!%p10_p5) target bundleno = 2 (0x2), region = 68 }

// kernel: alexnet_extractor_forward.5
= control target key start
LH: loop header
LB: loop body
LE: loop exit
PB: predicated region body
PF: predicated region fallthrough
CT: control target
= control target key end

     0   :  { %s758_s0 = inlined_call_operand.vmem [shape: f32[9,104,128], index: 0, kind: input, shape index: {}]   ;;  %s759_s1 = inlined_call_operand.vmem [shape: f32[104,128], index: 1, kind: output, shape index: {}]  }
   0x1   :  { %v8_v0 = vld [vmem:[%s758_s0] sm:$0xff]  ;;  %v254_v1 = vld [vmem:[%s758_s0 + $0x68] sm:$0xff]  ;;  %v267_v2 = vld [vmem:[%s758_s0 + $0xd0] sm:$0xff] }
   0x2   :  { %v35_v3 = vmax.f32 %v8_v0, %v254_v1  ;;  %v280_v4 = vld [vmem:[%s758_s0 + $0x138] sm:$0xff]  ;;  %v9_v6 = vld [vmem:[%s758_s0 + $0x8] sm:$0xff]  ;;  %v255_v7 = vld [vmem:[%s758_s0 + $0x70] sm:$0xff] }
   0x3   :  { %v268_v8 = vld [vmem:[%s758_s0 + $0xd8] sm:$0xff]  ;;  %v293_v9 = vld [vmem:[%s758_s0 + $0x1a0] sm:$0xff]  ;;  %v36_v10 = vmax.f32 %v9_v6, %v255_v7  ;;  %v306_v12 = vld [vmem:[%s758_s0 + $0x208] sm:$0xff] }
   0x4   :  { %v62_v5 = vmax.f32 %v35_v3, %v267_v2  ;;  %v281_v13 = vld [vmem:[%s758_s0 + $0x140] sm:$0xff]  ;;  %v10_v15 = vld [vmem:[%s758_s0 + $0x10] sm:$0xff]  ;;  %v256_v16 = vld [vmem:[%s758_s0 + $0x78] sm:$0xff] }
   0x5   :  { %v63_v14 = vmax.f32 %v36_v10, %v268_v8  ;;  %v269_v17 = vld [vmem:[%s758_s0 + $0xe0] sm:$0xff]  ;;  %v294_v19 = vld [vmem:[%s758_s0 + $0x1a8] sm:$0xff]  ;;  %v37_v20 = vmax.f32 %v10_v15, %v256_v16  ;;  %v319_v21 = vld [vmem:[%s758_s0 + $0x270] sm:$0xff] }
   0x6   :  { %v89_v11 = vmax.f32 %v62_v5, %v280_v4  ;;  %v307_v23 = vld [vmem:[%s758_s0 + $0x210] sm:$0xff]  ;;  %v282_v24 = vld [vmem:[%s758_s0 + $0x148] sm:$0xff]  ;;  %v11_v27 = vld [vmem:[%s758_s0 + $0x18] sm:$0xff] }
   0x7   :  { %v90_v22 = vmax.f32 %v63_v14, %v281_v13  ;;  %v64_v26 = vmax.f32 %v37_v20, %v269_v17  ;;  %v257_v28 = vld [vmem:[%s758_s0 + $0x80] sm:$0xff]  ;;  %v270_v29 = vld [vmem:[%s758_s0 + $0xe8] sm:$0xff]  ;;  %v332_v30 = vld [vmem:[%s758_s0 + $0x2d8] sm:$0xff] }
   0x8   :  { %v116_v18 = vmax.f32 %v89_v11, %v293_v9  ;;  %v345_v31 = vld [vmem:[%s758_s0 + $0x340] sm:$0xff]  ;;  %v295_v33 = vld [vmem:[%s758_s0 + $0x1b0] sm:$0xff]  ;;  %v38_v34 = vmax.f32 %v11_v27, %v257_v28  ;;  %v320_v36 = vld [vmem:[%s758_s0 + $0x278] sm:$0xff] }
   0x9   :  { %v117_v32 = vmax.f32 %v90_v22, %v294_v19  ;;  %v91_v37 = vmax.f32 %v64_v26, %v282_v24  ;;  %v308_v38 = vld [vmem:[%s758_s0 + $0x218] sm:$0xff]  ;;  %v283_v39 = vld [vmem:[%s758_s0 + $0x150] sm:$0xff]  ;;  %v12_v42 = vld [vmem:[%s758_s0 + $0x20] sm:$0xff] }
   0xa   :  { %v143_v25 = vmax.f32 %v116_v18, %v306_v12  ;;  %v65_v41 = vmax.f32 %v38_v34, %v270_v29  ;;  %v258_v43 = vld [vmem:[%s758_s0 + $0x88] sm:$0xff]  ;;  %v271_v44 = vld [vmem:[%s758_s0 + $0xf0] sm:$0xff]  ;;  %v333_v46 = vld [vmem:[%s758_s0 + $0x2e0] sm:$0xff] }
   0xb   :  { %v144_v40 = vmax.f32 %v117_v32, %v307_v23  ;;  %v346_v47 = vld [vmem:[%s758_s0 + $0x348] sm:$0xff]  ;;  %v118_v48 = vmax.f32 %v91_v37, %v295_v33  ;;  %v296_v49 = vld [vmem:[%s758_s0 + $0x1b8] sm:$0xff]  ;;  %v39_v50 = vmax.f32 %v12_v42, %v258_v43  ;;  %v321_v52 = vld [vmem:[%s758_s0 + $0x280] sm:$0xff] }
   0xc   :  { %v170_v35 = vmax.f32 %v143_v25, %v319_v21  ;;  %v92_v53 = vmax.f32 %v65_v41, %v283_v39  ;;  %v309_v54 = vld [vmem:[%s758_s0 + $0x220] sm:$0xff]  ;;  %v284_v55 = vld [vmem:[%s758_s0 + $0x158] sm:$0xff]  ;;  %v13_v59 = vld [vmem:[%s758_s0 + $0x28] sm:$0xff] }
   0xd   :  { %v171_v51 = vmax.f32 %v144_v40, %v320_v36  ;;  %v145_v57 = vmax.f32 %v118_v48, %v308_v38  ;;  %v66_v58 = vmax.f32 %v39_v50, %v271_v44  ;;  %v259_v60 = vld [vmem:[%s758_s0 + $0x90] sm:$0xff]  ;;  %v272_v61 = vld [vmem:[%s758_s0 + $0xf8] sm:$0xff]  ;;  %v334_v63 = vld [vmem:[%s758_s0 + $0x2e8] sm:$0xff] }
   0xe   :  { %v197_v45 = vmax.f32 %v170_v35, %v332_v30  ;;  %v347_v0 = vld [vmem:[%s758_s0 + $0x350] sm:$0xff]  ;;  %v119_v1 = vmax.f32 %v92_v53, %v296_v49  ;;  %v297_v2 = vld [vmem:[%s758_s0 + $0x1c0] sm:$0xff]  ;;  %v40_v3 = vmax.f32 %v13_v59, %v259_v60  ;;  %v322_v5 = vld [vmem:[%s758_s0 + $0x288] sm:$0xff] }
   0xf   :  { %v198_v62 = vmax.f32 %v171_v51, %v333_v46  ;;  %v172_v4 = vmax.f32 %v145_v57, %v321_v52  ;;  %v93_v6 = vmax.f32 %v66_v58, %v284_v55  ;;  %v310_v7 = vld [vmem:[%s758_s0 + $0x228] sm:$0xff]  ;;  %v285_v8 = vld [vmem:[%s758_s0 + $0x160] sm:$0xff]  ;;  %v14_v12 = vld [vmem:[%s758_s0 + $0x30] sm:$0xff] }
  0x10   :  { %v224_v56 = vmax.f32 %v197_v45, %v345_v31  ;;  %v146_v10 = vmax.f32 %v119_v1, %v309_v54  ;;  %v67_v11 = vmax.f32 %v40_v3, %v272_v61  ;;  %v260_v13 = vld [vmem:[%s758_s0 + $0x98] sm:$0xff]  ;;  %v273_v14 = vld [vmem:[%s758_s0 + $0x100] sm:$0xff]  ;;  %v335_v16 = vld [vmem:[%s758_s0 + $0x2f0] sm:$0xff] }
  0x11   :  { %v225_v9 = vmax.f32 %v198_v62, %v346_v47  ;;  %v199_v15 = vmax.f32 %v172_v4, %v334_v63  ;;  %v348_v17 = vld [vmem:[%s758_s0 + $0x358] sm:$0xff]  ;;  %v120_v18 = vmax.f32 %v93_v6, %v297_v2  ;;  %v298_v19 = vld [vmem:[%s758_s0 + $0x1c8] sm:$0xff]  ;;  %v41_v20 = vmax.f32 %v14_v12, %v260_v13  ;;  %v323_v22 = vld [vmem:[%s758_s0 + $0x290] sm:$0xff] }
  0x12   :  { %237 = vst [vmem:[%s759_s1] sm:$0xff] %v224_v56  ;;  %v173_v21 = vmax.f32 %v146_v10, %v322_v5  ;;  %v94_v23 = vmax.f32 %v67_v11, %v285_v8  ;;  %v311_v24 = vld [vmem:[%s758_s0 + $0x230] sm:$0xff]  ;;  %v286_v25 = vld [vmem:[%s758_s0 + $0x168] sm:$0xff]  ;;  %v15_v29 = vld [vmem:[%s758_s0 + $0x38] sm:$0xff] }
  0x13   :  { %238 = vst [vmem:[%s759_s1 + $0x8] sm:$0xff] %v225_v9  ;;  %v226_v26 = vmax.f32 %v199_v15, %v347_v0  ;;  %v147_v27 = vmax.f32 %v120_v18, %v310_v7  ;;  %v68_v28 = vmax.f32 %v41_v20, %v273_v14  ;;  %v261_v30 = vld [vmem:[%s758_s0 + $0xa0] sm:$0xff]  ;;  %v274_v31 = vld [vmem:[%s758_s0 + $0x108] sm:$0xff]  ;;  %v336_v33 = vld [vmem:[%s758_s0 + $0x2f8] sm:$0xff] }
  0x14   :  { %v200_v32 = vmax.f32 %v173_v21, %v335_v16  ;;  %v349_v34 = vld [vmem:[%s758_s0 + $0x360] sm:$0xff]  ;;  %v121_v35 = vmax.f32 %v94_v23, %v298_v19  ;;  %v299_v36 = vld [vmem:[%s758_s0 + $0x1d0] sm:$0xff]  ;;  %v42_v37 = vmax.f32 %v15_v29, %v261_v30  ;;  %v324_v39 = vld [vmem:[%s758_s0 + $0x298] sm:$0xff] }
  0x15   :  { %239 = vst [vmem:[%s759_s1 + $0x10] sm:$0xff] %v226_v26  ;;  %v174_v38 = vmax.f32 %v147_v27, %v323_v22  ;;  %v95_v40 = vmax.f32 %v68_v28, %v286_v25  ;;  %v312_v41 = vld [vmem:[%s758_s0 + $0x238] sm:$0xff]  ;;  %v287_v42 = vld [vmem:[%s758_s0 + $0x170] sm:$0xff]  ;;  %v16_v46 = vld [vmem:[%s758_s0 + $0x40] sm:$0xff] }
  0x16   :  { %v227_v43 = vmax.f32 %v200_v32, %v348_v17  ;;  %v148_v44 = vmax.f32 %v121_v35, %v311_v24  ;;  %v69_v45 = vmax.f32 %v42_v37, %v274_v31  ;;  %v262_v47 = vld [vmem:[%s758_s0 + $0xa8] sm:$0xff]  ;;  %v275_v48 = vld [vmem:[%s758_s0 + $0x110] sm:$0xff]  ;;  %v337_v50 = vld [vmem:[%s758_s0 + $0x300] sm:$0xff] }
  0x17   :  { %v201_v49 = vmax.f32 %v174_v38, %v336_v33  ;;  %v350_v51 = vld [vmem:[%s758_s0 + $0x368] sm:$0xff]  ;;  %v122_v52 = vmax.f32 %v95_v40, %v299_v36  ;;  %v300_v53 = vld [vmem:[%s758_s0 + $0x1d8] sm:$0xff]  ;;  %v43_v54 = vmax.f32 %v16_v46, %v262_v47  ;;  %v325_v56 = vld [vmem:[%s758_s0 + $0x2a0] sm:$0xff] }
  0x18   :  { %240 = vst [vmem:[%s759_s1 + $0x18] sm:$0xff] %v227_v43  ;;  %v175_v55 = vmax.f32 %v148_v44, %v324_v39  ;;  %v96_v57 = vmax.f32 %v69_v45, %v287_v42  ;;  %v313_v58 = vld [vmem:[%s758_s0 + $0x240] sm:$0xff]  ;;  %v288_v59 = vld [vmem:[%s758_s0 + $0x178] sm:$0xff]  ;;  %v17_v63 = vld [vmem:[%s758_s0 + $0x48] sm:$0xff] }
  0x19   :  { %v228_v60 = vmax.f32 %v201_v49, %v349_v34  ;;  %v149_v61 = vmax.f32 %v122_v52, %v312_v41  ;;  %v70_v62 = vmax.f32 %v43_v54, %v275_v48  ;;  %v263_v0 = vld [vmem:[%s758_s0 + $0xb0] sm:$0xff]  ;;  %v276_v1 = vld [vmem:[%s758_s0 + $0x118] sm:$0xff]  ;;  %v338_v3 = vld [vmem:[%s758_s0 + $0x308] sm:$0xff] }
  0x1a   :  { %v202_v2 = vmax.f32 %v175_v55, %v337_v50  ;;  %v351_v4 = vld [vmem:[%s758_s0 + $0x370] sm:$0xff]  ;;  %v123_v5 = vmax.f32 %v96_v57, %v300_v53  ;;  %v301_v6 = vld [vmem:[%s758_s0 + $0x1e0] sm:$0xff]  ;;  %v44_v7 = vmax.f32 %v17_v63, %v263_v0  ;;  %v326_v9 = vld [vmem:[%s758_s0 + $0x2a8] sm:$0xff] }
  0x1b   :  { %241 = vst [vmem:[%s759_s1 + $0x20] sm:$0xff] %v228_v60  ;;  %v176_v8 = vmax.f32 %v149_v61, %v325_v56  ;;  %v97_v10 = vmax.f32 %v70_v62, %v288_v59  ;;  %v314_v11 = vld [vmem:[%s758_s0 + $0x248] sm:$0xff]  ;;  %v289_v12 = vld [vmem:[%s758_s0 + $0x180] sm:$0xff]  ;;  %v18_v16 = vld [vmem:[%s758_s0 + $0x50] sm:$0xff] }
  0x1c   :  { %v229_v13 = vmax.f32 %v202_v2, %v350_v51  ;;  %v150_v14 = vmax.f32 %v123_v5, %v313_v58  ;;  %v71_v15 = vmax.f32 %v44_v7, %v276_v1  ;;  %v264_v17 = vld [vmem:[%s758_s0 + $0xb8] sm:$0xff]  ;;  %v277_v18 = vld [vmem:[%s758_s0 + $0x120] sm:$0xff]  ;;  %v339_v20 = vld [vmem:[%s758_s0 + $0x310] sm:$0xff] }
  0x1d   :  { %v203_v19 = vmax.f32 %v176_v8, %v338_v3  ;;  %v352_v21 = vld [vmem:[%s758_s0 + $0x378] sm:$0xff]  ;;  %v124_v22 = vmax.f32 %v97_v10, %v301_v6  ;;  %v302_v23 = vld [vmem:[%s758_s0 + $0x1e8] sm:$0xff]  ;;  %v45_v24 = vmax.f32 %v18_v16, %v264_v17  ;;  %v327_v26 = vld [vmem:[%s758_s0 + $0x2b0] sm:$0xff] }
  0x1e   :  { %242 = vst [vmem:[%s759_s1 + $0x28] sm:$0xff] %v229_v13  ;;  %v177_v25 = vmax.f32 %v150_v14, %v326_v9  ;;  %v98_v27 = vmax.f32 %v71_v15, %v289_v12  ;;  %v315_v28 = vld [vmem:[%s758_s0 + $0x250] sm:$0xff]  ;;  %v290_v29 = vld [vmem:[%s758_s0 + $0x188] sm:$0xff]  ;;  %v19_v33 = vld [vmem:[%s758_s0 + $0x58] sm:$0xff] }
  0x1f   :  { %v230_v30 = vmax.f32 %v203_v19, %v351_v4  ;;  %v151_v31 = vmax.f32 %v124_v22, %v314_v11  ;;  %v72_v32 = vmax.f32 %v45_v24, %v277_v18  ;;  %v265_v34 = vld [vmem:[%s758_s0 + $0xc0] sm:$0xff]  ;;  %v278_v35 = vld [vmem:[%s758_s0 + $0x128] sm:$0xff]  ;;  %v340_v37 = vld [vmem:[%s758_s0 + $0x318] sm:$0xff] }
  0x20   :  { %v204_v36 = vmax.f32 %v177_v25, %v339_v20  ;;  %v353_v38 = vld [vmem:[%s758_s0 + $0x380] sm:$0xff]  ;;  %v125_v39 = vmax.f32 %v98_v27, %v302_v23  ;;  %v303_v40 = vld [vmem:[%s758_s0 + $0x1f0] sm:$0xff]  ;;  %v46_v41 = vmax.f32 %v19_v33, %v265_v34  ;;  %v328_v43 = vld [vmem:[%s758_s0 + $0x2b8] sm:$0xff] }
  0x21   :  { %243 = vst [vmem:[%s759_s1 + $0x30] sm:$0xff] %v230_v30  ;;  %v178_v42 = vmax.f32 %v151_v31, %v327_v26  ;;  %v99_v44 = vmax.f32 %v72_v32, %v290_v29  ;;  %v316_v45 = vld [vmem:[%s758_s0 + $0x258] sm:$0xff]  ;;  %v291_v46 = vld [vmem:[%s758_s0 + $0x190] sm:$0xff]  ;;  %v20_v50 = vld [vmem:[%s758_s0 + $0x60] sm:$0xff] }
  0x22   :  { %v231_v47 = vmax.f32 %v204_v36, %v352_v21  ;;  %v152_v48 = vmax.f32 %v125_v39, %v315_v28  ;;  %v73_v49 = vmax.f32 %v46_v41, %v278_v35  ;;  %v266_v51 = vld [vmem:[%s758_s0 + $0xc8] sm:$0xff]  ;;  %v279_v52 = vld [vmem:[%s758_s0 + $0x130] sm:$0xff]  ;;  %v341_v54 = vld [vmem:[%s758_s0 + $0x320] sm:$0xff] }
  0x23   :  { %v205_v53 = vmax.f32 %v178_v42, %v340_v37  ;;  %v126_v55 = vmax.f32 %v99_v44, %v303_v40  ;;  %v304_v56 = vld [vmem:[%s758_s0 + $0x1f8] sm:$0xff]  ;;  %v47_v57 = vmax.f32 %v20_v50, %v266_v51  ;;  %v329_v59 = vld [vmem:[%s758_s0 + $0x2c0] sm:$0xff]  ;;  %v354_v63 = vld [vmem:[%s758_s0 + $0x388] sm:$0xff] }
  0x24   :  { %244 = vst [vmem:[%s759_s1 + $0x38] sm:$0xff] %v231_v47  ;;  %v179_v58 = vmax.f32 %v152_v48, %v328_v43  ;;  %v100_v60 = vmax.f32 %v73_v49, %v291_v46  ;;  %v292_v61 = vld [vmem:[%s758_s0 + $0x198] sm:$0xff]  ;;  %v317_v1 = vld [vmem:[%s758_s0 + $0x260] sm:$0xff]  ;;  %v342_v4 = vld [vmem:[%s758_s0 + $0x328] sm:$0xff] }
  0x25   :  { %v232_v62 = vmax.f32 %v205_v53, %v353_v38  ;;  %v153_v0 = vmax.f32 %v126_v55, %v316_v45  ;;  %v74_v2 = vmax.f32 %v47_v57, %v279_v52  ;;  %v305_v6 = vld [vmem:[%s758_s0 + $0x200] sm:$0xff]  ;;  %v330_v8 = vld [vmem:[%s758_s0 + $0x2c8] sm:$0xff]  ;;  %v355_v11 = vld [vmem:[%s758_s0 + $0x390] sm:$0xff] }
  0x26   :  { %v206_v3 = vmax.f32 %v179_v58, %v341_v54  ;;  %v127_v5 = vmax.f32 %v100_v60, %v304_v56  ;;  %v318_v13 = vld [vmem:[%s758_s0 + $0x268] sm:$0xff]  ;;  %v343_v15 = vld [vmem:[%s758_s0 + $0x330] sm:$0xff]  ;;  %v356_v20 = vld [vmem:[%s758_s0 + $0x398] sm:$0xff] }
  0x27   :  { %245 = vst [vmem:[%s759_s1 + $0x40] sm:$0xff] %v232_v62  ;;  %v180_v7 = vmax.f32 %v153_v0, %v329_v59  ;;  %v101_v9 = vmax.f32 %v74_v2, %v292_v61  ;;  %v331_v18 = vld [vmem:[%s758_s0 + $0x2d0] sm:$0xff]  ;;  %v344_v23 = vld [vmem:[%s758_s0 + $0x338] sm:$0xff]  ;;  %v357_v26 = vld [vmem:[%s758_s0 + $0x3a0] sm:$0xff] }
  0x28   :  { %v233_v10 = vmax.f32 %v206_v3, %v354_v63  ;;  %v154_v12 = vmax.f32 %v127_v5, %v317_v1 }
  0x29   :  { %v207_v14 = vmax.f32 %v180_v7, %v342_v4  ;;  %v128_v16 = vmax.f32 %v101_v9, %v305_v6 }
  0x2a   :  { %246 = vst [vmem:[%s759_s1 + $0x48] sm:$0xff] %v233_v10  ;;  %v181_v17 = vmax.f32 %v154_v12, %v330_v8 }
  0x2b   :  { %v234_v19 = vmax.f32 %v207_v14, %v355_v11  ;;  %v155_v21 = vmax.f32 %v128_v16, %v318_v13 }
  0x2c   :  { %v208_v22 = vmax.f32 %v181_v17, %v343_v15 }
  0x2d   :  { %247 = vst [vmem:[%s759_s1 + $0x50] sm:$0xff] %v234_v19  ;;  %v182_v24 = vmax.f32 %v155_v21, %v331_v18 }
  0x2e   :  { %v235_v25 = vmax.f32 %v208_v22, %v356_v20 }
  0x2f   :  { %v209_v27 = vmax.f32 %v182_v24, %v344_v23 }
  0x30   :  { %248 = vst [vmem:[%s759_s1 + $0x58] sm:$0xff] %v235_v25 }
  0x31   :  { %v236_v28 = vmax.f32 %v209_v27, %v357_v26 }
  0x33   :  { %249 = vst [vmem:[%s759_s1 + $0x60] sm:$0xff] %v236_v28 }

// kernel: alexnet_extractor_forward.6
= control target key start
LH: loop header
LB: loop body
LE: loop exit
PB: predicated region body
PF: predicated region fallthrough
CT: control target
= control target key end

     0   :  { %s6891_s1 = inlined_call_operand.vmem [shape: bf16[1664,256], index: 1, kind: input, shape index: {}]   ;;  %s6892_s0 = inlined_call_operand.vmem [shape: bf16[104,1664], index: 0, kind: input, shape index: {}]   ;;  %s6893_s2 = inlined_call_operand.vmem [shape: f32[1,256], index: 2, kind: input, shape index: {}]   ;;  %s6894_s3 = inlined_call_operand.vmem [shape: f32[104,256], index: 3, kind: output, shape index: {}]  }
   0x1   :  { %v3345_v0 = vld [vmem:[%s6891_s1 + $0x70] sm:$0xf]  ;;  %v4212_v1 = vld [vmem:[%s6891_s1 + $0x74] sm:$0xf0]  ;;  %v3337_v5 = vld [vmem:[%s6891_s1 + $0x60] sm:$0xf] }
   0x2   :  { %v3409_v2 = vld [vmem:[%s6891_s1 + $0xf0] sm:$0xf]  ;;  %v3346_v3 = vor.u32 %v4212_v1, %v3345_v0  ;;  %v4228_v4 = vld [vmem:[%s6891_s1 + $0xf4] sm:$0xf0]  ;;  %v4210_v6 = vld [vmem:[%s6891_s1 + $0x64] sm:$0xf0] }
   0x3   :  { %v3410_v7 = vor.u32 %v4228_v4, %v3409_v2  ;;  %v3401_v8 = vld [vmem:[%s6891_s1 + $0xe0] sm:$0xf]  ;;  %v4226_v9 = vld [vmem:[%s6891_s1 + $0xe4] sm:$0xf0]  ;;  %v3338_v10 = vor.u32 %v4210_v6, %v3337_v5  ;;  %v3329_v12 = vld [vmem:[%s6891_s1 + $0x50] sm:$0xf] }
   0x4   :  { %1801 = vmatpush.bf16.msra.mxu0 %v3346_v3  ;;  %4405 = vmatpush.bf16.msra.mxu2 %v3346_v3  ;;  %v3402_v11 = vor.u32 %v4226_v9, %v3401_v8  ;;  %v4208_v13 = vld [vmem:[%s6891_s1 + $0x54] sm:$0xf0]  ;;  %v3393_v14 = vld [vmem:[%s6891_s1 + $0xd0] sm:$0xf]  ;;  %v3321_v18 = vld [vmem:[%s6891_s1 + $0x40] sm:$0xf] }
   0x5   :  { %1844 = vmatpush.bf16.msra.mxu1 %v3410_v7  ;;  %4413 = vmatpush.bf16.msra.mxu3 %v3410_v7  ;;  %v4224_v15 = vld [vmem:[%s6891_s1 + $0xd4] sm:$0xf0]  ;;  %v3330_v16 = vor.u32 %v4208_v13, %v3329_v12  ;;  %v4206_v19 = vld [vmem:[%s6891_s1 + $0x44] sm:$0xf0]  ;;  %v3385_v20 = vld [vmem:[%s6891_s1 + $0xc0] sm:$0xf] }
   0x6   :  { %v3394_v17 = vor.u32 %v4224_v15, %v3393_v14  ;;  %v4222_v21 = vld [vmem:[%s6891_s1 + $0xc4] sm:$0xf0]  ;;  %v3322_v22 = vor.u32 %v4206_v19, %v3321_v18  ;;  %v3313_v24 = vld [vmem:[%s6891_s1 + $0x30] sm:$0xf]  ;;  %v4204_v25 = vld [vmem:[%s6891_s1 + $0x34] sm:$0xf0] }
   0x7   :  { %v3386_v23 = vor.u32 %v4222_v21, %v3385_v20  ;;  %v3377_v26 = vld [vmem:[%s6891_s1 + $0xb0] sm:$0xf]  ;;  %v4220_v27 = vld [vmem:[%s6891_s1 + $0xb4] sm:$0xf0]  ;;  %v3314_v28 = vor.u32 %v4204_v25, %v3313_v24  ;;  %v3305_v30 = vld [vmem:[%s6891_s1 + $0x20] sm:$0xf] }
   0x8   :  { %1802 = vmatpush.bf16.msra.mxu0 %v3338_v10  ;;  %4406 = vmatpush.bf16.msra.mxu2 %v3338_v10  ;;  %v3378_v29 = vor.u32 %v4220_v27, %v3377_v26  ;;  %v4202_v31 = vld [vmem:[%s6891_s1 + $0x24] sm:$0xf0]  ;;  %v3369_v32 = vld [vmem:[%s6891_s1 + $0xa0] sm:$0xf]  ;;  %v3297_v36 = vld [vmem:[%s6891_s1 + $0x10] sm:$0xf] }
   0x9   :  { %1845 = vmatpush.bf16.msra.mxu1 %v3402_v11  ;;  %4414 = vmatpush.bf16.msra.mxu3 %v3402_v11  ;;  %v4218_v33 = vld [vmem:[%s6891_s1 + $0xa4] sm:$0xf0]  ;;  %v3306_v34 = vor.u32 %v4202_v31, %v3305_v30  ;;  %v4200_v37 = vld [vmem:[%s6891_s1 + $0x14] sm:$0xf0]  ;;  %v3361_v38 = vld [vmem:[%s6891_s1 + $0x90] sm:$0xf] }
   0xa   :  { %v3370_v35 = vor.u32 %v4218_v33, %v3369_v32  ;;  %v4216_v39 = vld [vmem:[%s6891_s1 + $0x94] sm:$0xf0]  ;;  %v3298_v40 = vor.u32 %v4200_v37, %v3297_v36  ;;  %v3289_v41 = vld [vmem:[%s6891_s1] sm:$0xf]  ;;  %v4198_v43 = vld [vmem:[%s6891_s1 + $0x4] sm:$0xf0] }
   0xb   :  { %v3362_v42 = vor.u32 %v4216_v39, %v3361_v38  ;;  %v3353_v44 = vld [vmem:[%s6891_s1 + $0x80] sm:$0xf]  ;;  %v4214_v45 = vld [vmem:[%s6891_s1 + $0x84] sm:$0xf0]  ;;  %v4125_v47 = vld [vmem:[%s6892_s0 + $0x30] sm:$0xf0]  ;;  %v3290_v54 = vor.u32 %v4198_v43, %v3289_v41 }
   0xc   :  { %1803 = vmatpush.bf16.msra.mxu0 %v3330_v16  ;;  %4407 = vmatpush.bf16.msra.mxu2 %v3330_v16  ;;  %v2977_v46 = vld [vmem:[%s6892_s0] sm:$0xf]  ;;  %v4177_v49 = vld [vmem:[%s6892_s0 + $0x1d0] sm:$0xf0]  ;;  %v3601_v50 = vld [vmem:[%s6891_s1 + $0x270] sm:$0xf]  ;;  %v3354_v58 = vor.u32 %v4214_v45, %v3353_v44 }
   0xd   :  { %1846 = vmatpush.bf16.msra.mxu1 %v3394_v17  ;;  %4415 = vmatpush.bf16.msra.mxu3 %v3394_v17  ;;  %v3185_v48 = vld [vmem:[%s6892_s0 + $0x1a0] sm:$0xf]  ;;  %v4276_v51 = vld [vmem:[%s6891_s1 + $0x274] sm:$0xf0]  ;;  %v3665_v52 = vld [vmem:[%s6891_s1 + $0x2f0] sm:$0xf]  ;;  %v4589_v3 = vor.u32 %v4125_v47, %v2977_v46 }
   0xe   :  { %v4292_v53 = vld [vmem:[%s6891_s1 + $0x2f4] sm:$0xf0]  ;;  %v4119_v55 = vld [vmem:[%s6892_s0 + $0x4] sm:$0xf]  ;;  %v3473_v60 = vld [vmem:[%s6891_s1 + $0x170] sm:$0xf]  ;;  %v3602_v62 = vor.u32 %v4276_v51, %v3601_v50  ;;  %v4591_v4 = vor.u32 %v4177_v49, %v3185_v48 }
   0xf   :  { %v2979_v56 = vld [vmem:[%s6892_s0 + $0x34] sm:$0xf0]  ;;  %v4171_v57 = vld [vmem:[%s6892_s0 + $0x1a4] sm:$0xf]  ;;  %v3666_v63 = vor.u32 %v4292_v53, %v3665_v52  ;;  %v3593_v0 = vld [vmem:[%s6891_s1 + $0x260] sm:$0xf] }
  0x10   :  { %1804 = vmatpush.bf16.msra.mxu0 %v3322_v22  ;;  %4408 = vmatpush.bf16.msra.mxu2 %v3322_v22  ;;  %v3187_v59 = vld [vmem:[%s6892_s0 + $0x1d4] sm:$0xf0]  ;;  %v3537_v1 = vld [vmem:[%s6891_s1 + $0x1f0] sm:$0xf]  ;;  %v4274_v5 = vld [vmem:[%s6891_s1 + $0x264] sm:$0xf0]  ;;  %v4602_v8 = vor.u32 %v4119_v55, %v2979_v56 }
  0x11   :  { %1847 = vmatpush.bf16.msra.mxu1 %v3386_v23  ;;  %4416 = vmatpush.bf16.msra.mxu3 %v3386_v23  ;;  %v4244_v61 = vld [vmem:[%s6891_s1 + $0x174] sm:$0xf0]  ;;  %v3657_v6 = vld [vmem:[%s6891_s1 + $0x2e0] sm:$0xf]  ;;  %v4290_v7 = vld [vmem:[%s6891_s1 + $0x2e4] sm:$0xf0]  ;;  %v4604_v9 = vor.u32 %v4171_v57, %v3187_v59  ;;  %v3594_v14 = vor.u32 %v4274_v5, %v3593_v0 }
  0x12   :  { %v4260_v2 = vld [vmem:[%s6891_s1 + $0x1f4] sm:$0xf0]  ;;  %v3474_v10 = vor.u32 %v4244_v61, %v3473_v60  ;;  %v3465_v12 = vld [vmem:[%s6891_s1 + $0x160] sm:$0xf]  ;;  %v4242_v13 = vld [vmem:[%s6891_s1 + $0x164] sm:$0xf0]  ;;  %v3658_v15 = vor.u32 %v4290_v7, %v3657_v6 }
  0x13   :  { %v3538_v11 = vor.u32 %v4260_v2, %v3537_v1  ;;  %v3529_v16 = vld [vmem:[%s6891_s1 + $0x1e0] sm:$0xf]  ;;  %v4258_v17 = vld [vmem:[%s6891_s1 + $0x1e4] sm:$0xf0]  ;;  %v3585_v18 = vld [vmem:[%s6891_s1 + $0x250] sm:$0xf]  ;;  %v3466_v22 = vor.u32 %v4242_v13, %v3465_v12 }
  0x14   :  { %1805 = vmatpush.bf16.msra.mxu0 %v3314_v28  ;;  %4409 = vmatpush.bf16.msra.mxu2 %v3314_v28  ;;  %v4272_v19 = vld [vmem:[%s6891_s1 + $0x254] sm:$0xf0]  ;;  %v3649_v20 = vld [vmem:[%s6891_s1 + $0x2d0] sm:$0xf]  ;;  %v3530_v23 = vor.u32 %v4258_v17, %v3529_v16  ;;  %v3577_v30 = vld [vmem:[%s6891_s1 + $0x240] sm:$0xf] }
  0x15   :  { %1848 = vmatpush.bf16.msra.mxu1 %v3378_v29  ;;  %4417 = vmatpush.bf16.msra.mxu3 %v3378_v29  ;;  %v4288_v21 = vld [vmem:[%s6891_s1 + $0x2d4] sm:$0xf0]  ;;  %v3457_v24 = vld [vmem:[%s6891_s1 + $0x150] sm:$0xf]  ;;  %v3586_v26 = vor.u32 %v4272_v19, %v3585_v18  ;;  %v4270_v31 = vld [vmem:[%s6891_s1 + $0x244] sm:$0xf0] }
  0x16   :  { %v4240_v25 = vld [vmem:[%s6891_s1 + $0x154] sm:$0xf0]  ;;  %v3650_v27 = vor.u32 %v4288_v21, %v3649_v20  ;;  %v3521_v28 = vld [vmem:[%s6891_s1 + $0x1d0] sm:$0xf]  ;;  %v3641_v32 = vld [vmem:[%s6891_s1 + $0x2c0] sm:$0xf] }
  0x17   :  { %v4256_v29 = vld [vmem:[%s6891_s1 + $0x1d4] sm:$0xf0]  ;;  %v4286_v33 = vld [vmem:[%s6891_s1 + $0x2c4] sm:$0xf0]  ;;  %v3449_v36 = vld [vmem:[%s6891_s1 + $0x140] sm:$0xf] }
  0x18   :  { %1806 = vmatpush.bf16.msra.mxu0 %v3306_v34  ;;  %4410 = vmatpush.bf16.msra.mxu2 %v3306_v34  ;;  %v3458_v34 = vor.u32 %v4240_v25, %v3457_v24  ;;  %v4238_v37 = vld [vmem:[%s6891_s1 + $0x144] sm:$0xf0]  ;;  %v4138_v39 = vld [vmem:[%s6892_s0 + $0x98] sm:$0xf0]  ;;  %v3642_v43 = vor.u32 %v4286_v33, %v3641_v32  ;;  %v3513_v44 = vld [vmem:[%s6891_s1 + $0x1c0] sm:$0xf] }
  0x19   :  { %1849 = vmatpush.bf16.msra.mxu1 %v3370_v35  ;;  %4418 = vmatpush.bf16.msra.mxu3 %v3370_v35  ;;  %v3522_v35 = vor.u32 %v4256_v29, %v3521_v28  ;;  %v3029_v38 = vld [vmem:[%s6892_s0 + $0x68] sm:$0xf]  ;;  %v4190_v41 = vld [vmem:[%s6892_s0 + $0x238] sm:$0xf0]  ;;  %v3569_v46 = vld [vmem:[%s6891_s1 + $0x230] sm:$0xf] }
  0x1a   :  { %v4254_v45 = vld [vmem:[%s6891_s1 + $0x1c4] sm:$0xf0]  ;;  %v4268_v47 = vld [vmem:[%s6891_s1 + $0x234] sm:$0xf0]  ;;  %v3633_v48 = vld [vmem:[%s6891_s1 + $0x2b0] sm:$0xf] }
  0x1b   :  { %v4284_v49 = vld [vmem:[%s6891_s1 + $0x2b4] sm:$0xf0]  ;;  %v4132_v50 = vld [vmem:[%s6892_s0 + $0x6c] sm:$0xf]  ;;  %v3031_v51 = vld [vmem:[%s6892_s0 + $0x9c] sm:$0xf0]  ;;  %v3514_v55 = vor.u32 %v4254_v45, %v3513_v44 }
  0x1c   :  { %1807 = vmatpush.bf16.msra.mxu0 %v3298_v40  ;;  %4411 = vmatpush.bf16.msra.mxu2 %v3298_v40  ;;  %v3237_v40 = vld [vmem:[%s6892_s0 + $0x208] sm:$0xf]  ;;  %v4184_v52 = vld [vmem:[%s6892_s0 + $0x20c] sm:$0xf]  ;;  %v3239_v53 = vld [vmem:[%s6892_s0 + $0x23c] sm:$0xf0]  ;;  %v3634_v59 = vor.u32 %v4284_v49, %v3633_v48  ;;  %v4734_v6 = vor.u32 %v4132_v50, %v3031_v51 }
  0x1d   :  { %1850 = vmatpush.bf16.msra.mxu1 %v3362_v42  ;;  %4419 = vmatpush.bf16.msra.mxu3 %v3362_v42  ;;  %v3578_v42 = vor.u32 %v4270_v31, %v3577_v30  ;;  %v3441_v56 = vld [vmem:[%s6891_s1 + $0x130] sm:$0xf]  ;;  %v4236_v57 = vld [vmem:[%s6891_s1 + $0x134] sm:$0xf0]  ;;  %v4723_v0 = vor.u32 %v4190_v41, %v3237_v40  ;;  %v4266_v1 = vld [vmem:[%s6891_s1 + $0x224] sm:$0xf0]  ;;  %v4736_v7 = vor.u32 %v4184_v52, %v3239_v53 }
  0x1e   :  { %v3505_v60 = vld [vmem:[%s6891_s1 + $0x1b0] sm:$0xf]  ;;  %v4252_v61 = vld [vmem:[%s6891_s1 + $0x1b4] sm:$0xf0]  ;;  %v3625_v2 = vld [vmem:[%s6891_s1 + $0x2a0] sm:$0xf] }
  0x1f   :  { %v4282_v5 = vld [vmem:[%s6891_s1 + $0x2a4] sm:$0xf0]  ;;  %v3433_v12 = vld [vmem:[%s6891_s1 + $0x120] sm:$0xf]  ;;  %v3553_v18 = vld [vmem:[%s6891_s1 + $0x210] sm:$0xf] }
  0x20   :  { %1808 = vmatpush.bf16.msra.mxu0 %v3290_v54  ;;  %4412 = vmatpush.bf16.msra.mxu2 %v3290_v54  ;;  %v3450_v54 = vor.u32 %v4238_v37, %v3449_v36  ;;  %v4234_v13 = vld [vmem:[%s6891_s1 + $0x124] sm:$0xf0]  ;;  %v3626_v17 = vor.u32 %v4282_v5, %v3625_v2  ;;  %v4264_v19 = vld [vmem:[%s6891_s1 + $0x214] sm:$0xf0]  ;;  %v3617_v20 = vld [vmem:[%s6891_s1 + $0x290] sm:$0xf] }
  0x21   :  { %1851 = vmatpush.bf16.msra.mxu1 %v3354_v58  ;;  %4420 = vmatpush.bf16.msra.mxu3 %v3354_v58  ;;  %v3570_v58 = vor.u32 %v4268_v47, %v3569_v46  ;;  %v3434_v21 = vor.u32 %v4234_v13, %v3433_v12  ;;  %v4232_v24 = vld [vmem:[%s6891_s1 + $0x114] sm:$0xf0]  ;;  %v3554_v28 = vor.u32 %v4264_v19, %v3553_v18  ;;  %v3545_v30 = vld [vmem:[%s6891_s1 + $0x200] sm:$0xf]  ;;  %v4262_v31 = vld [vmem:[%s6891_s1 + $0x204] sm:$0xf0] }
  0x22   :  { %v4280_v25 = vld [vmem:[%s6891_s1 + $0x294] sm:$0xf0]  ;;  %v3609_v32 = vld [vmem:[%s6891_s1 + $0x280] sm:$0xf]  ;;  %v4278_v33 = vld [vmem:[%s6891_s1 + $0x284] sm:$0xf0] }
  0x23   :  { %1809 = vmatmul.bf16.vlgmr.msra.gmra.mxu0 %v4589_v3  ;;  %1829 = vmatmul.bf16.vlgmr.msra.gmra.mxu2 %v4591_v4  ;;  %v3618_v29 = vor.u32 %v4280_v25, %v3617_v20  ;;  %v3417_v37 = vld [vmem:[%s6891_s1 + $0x100] sm:$0xf]  ;;  %v4246_v40 = vld [vmem:[%s6891_s1 + $0x184] sm:$0xf0]  ;;  %v3729_v41 = vld [vmem:[%s6891_s1 + $0x370] sm:$0xf] }
  0x24   :  { %1973 = vmatpush.bf16.msrb.mxu0 %v3602_v62  ;;  %1852 = vmatmul.bf16.vlgmr.msra.gmra.mxu1 %v4602_v8  ;;  %v3561_v62 = vld [vmem:[%s6891_s1 + $0x220] sm:$0xf]  ;;  %v4308_v45 = vld [vmem:[%s6891_s1 + $0x374] sm:$0xf0]  ;;  %v3793_v46 = vld [vmem:[%s6891_s1 + $0x3f0] sm:$0xf] }
  0x25   :  { %2016 = vmatpush.bf16.msrb.mxu1 %v3666_v63  ;;  %1872 = vmatmul.bf16.vlgmr.msra.gmra.mxu3 %v4604_v9  ;;  %v4721_v63 = vor.u32 %v4138_v39, %v3029_v38  ;;  %v3562_v16 = vor.u32 %v4266_v1, %v3561_v62  ;;  %v4230_v38 = vld [vmem:[%s6891_s1 + $0x104] sm:$0xf0]  ;;  %v3481_v39 = vld [vmem:[%s6891_s1 + $0x180] sm:$0xf]  ;;  %v4324_v47 = vld [vmem:[%s6891_s1 + $0x3f4] sm:$0xf0] }
  0x26   :  { %1887 = vmatpush.bf16.msrb.mxu2 %v3474_v10  ;;  %1930 = vmatpush.bf16.msrb.mxu3 %v3538_v11  ;;  %v3442_v10 = vor.u32 %v4236_v57, %v3441_v56  ;;  %v3506_v11 = vor.u32 %v4252_v61, %v3505_v60  ;;  %v3081_v48 = vld [vmem:[%s6892_s0 + $0xd0] sm:$0xf]  ;;  %v4151_v49 = vld [vmem:[%s6892_s0 + $0x100] sm:$0xf0]  ;;  %v4145_v51 = vld [vmem:[%s6892_s0 + $0xd4] sm:$0xf]  ;;  %v3418_v53 = vor.u32 %v4230_v38, %v3417_v37 }
  0x27   :  { %v3083_v52 = vld [vmem:[%s6892_s0 + $0x104] sm:$0xf0]  ;;  %v3794_v56 = vor.u32 %v4324_v47, %v3793_v46  ;;  %v4829_v57 = vor.u32 %v4151_v49, %v3081_v48  ;;  %v3857_v61 = vld [vmem:[%s6891_s1 + $0x470] sm:$0xf]  ;;  %v4340_v62 = vld [vmem:[%s6891_s1 + $0x474] sm:$0xf0] }
  0x28   :  { %1974 = vmatpush.bf16.msrb.mxu0 %v3594_v14  ;;  %v3497_v14 = vld [vmem:[%s6891_s1 + $0x1a0] sm:$0xf]  ;;  %v3921_v1 = vld [vmem:[%s6891_s1 + $0x4f0] sm:$0xf]  ;;  %v3858_v2 = vor.u32 %v4340_v62, %v3857_v61  ;;  %v4356_v5 = vld [vmem:[%s6891_s1 + $0x4f4] sm:$0xf0] }
  0x29   :  { %2017 = vmatpush.bf16.msrb.mxu1 %v3658_v15  ;;  %v4250_v15 = vld [vmem:[%s6891_s1 + $0x1a4] sm:$0xf0]  ;;  %v3922_v12 = vor.u32 %v4356_v5, %v3921_v1  ;;  %v3913_v19 = vld [vmem:[%s6891_s1 + $0x4e0] sm:$0xf]  ;;  %v4158_v25 = vld [vmem:[%s6892_s0 + $0x13c] sm:$0xf] }
  0x2a   :  { %1888 = vmatpush.bf16.msrb.mxu2 %v3466_v22  ;;  %1931 = vmatpush.bf16.msrb.mxu3 %v3530_v23  ;;  %v3498_v22 = vor.u32 %v4250_v15, %v3497_v14  ;;  %v3425_v23 = vld [vmem:[%s6891_s1 + $0x110] sm:$0xf]  ;;  %v3785_v14 = vld [vmem:[%s6891_s1 + $0x3e0] sm:$0xf]  ;;  %v4322_v15 = vld [vmem:[%s6891_s1 + $0x3e4] sm:$0xf0] }
  0x2b   :  { %v4338_v18 = vld [vmem:[%s6891_s1 + $0x464] sm:$0xf0]  ;;  %v3777_v37 = vld [vmem:[%s6891_s1 + $0x3d0] sm:$0xf]  ;;  %v4139_v48 = vld [vmem:[%s6892_s0 + $0xa0] sm:$0xf0] }
  0x2c   :  { %1975 = vmatpush.bf16.msrb.mxu0 %v3586_v26  ;;  %v3489_v26 = vld [vmem:[%s6891_s1 + $0x190] sm:$0xf]  ;;  %v4354_v20 = vld [vmem:[%s6891_s1 + $0x4e4] sm:$0xf0]  ;;  %v3705_v1 = vld [vmem:[%s6891_s1 + $0x340] sm:$0xf] }
  0x2d   :  { %2018 = vmatpush.bf16.msrb.mxu1 %v3650_v27  ;;  %v4248_v27 = vld [vmem:[%s6891_s1 + $0x194] sm:$0xf0]  ;;  %v3037_v47 = vld [vmem:[%s6892_s0 + $0x70] sm:$0xf]  ;;  %v3769_v5 = vld [vmem:[%s6891_s1 + $0x3c0] sm:$0xf] }
  0x2e   :  { %1889 = vmatpush.bf16.msrb.mxu2 %v3458_v34  ;;  %1932 = vmatpush.bf16.msrb.mxu3 %v3522_v35  ;;  %v98_v34 = vld [vmem:[%s6892_s0 + $0x270] sm:$0xff]  ;;  %v3426_v35 = vor.u32 %v4232_v24, %v3425_v23  ;;  %v3490_v36 = vor.u32 %v4248_v27, %v3489_v26  ;;  %v3133_v23 = vld [vmem:[%s6892_s0 + $0x138] sm:$0xf]  ;;  %v4164_v24 = vld [vmem:[%s6892_s0 + $0x168] sm:$0xf0] }
  0x2f   :  { %v566_v44 = vunpack.c.l.b16 %v98_v34  ;;  %v567_v50 = vunpack.c.h.b16 %v98_v34  ;;  %v2985_v26 = vld [vmem:[%s6892_s0 + $0x8] sm:$0xf]  ;;  %v4126_v27 = vld [vmem:[%s6892_s0 + $0x38] sm:$0xf0]  ;;  %v2993_v49 = vld [vmem:[%s6892_s0 + $0x10] sm:$0xf] }
  0x30   :  { %1976 = vmatpush.bf16.msrb.mxu0 %v3578_v42  ;;  %v3546_v42 = vor.u32 %v4262_v31, %v3545_v30  ;;  %v2987_v30 = vld [vmem:[%s6892_s0 + $0x3c] sm:$0xf0]  ;;  %v4901_v31 = vor.u32 %v4164_v24, %v3133_v23  ;;  %v4152_v23 = vld [vmem:[%s6892_s0 + $0x108] sm:$0xf0]  ;;  %v3045_v24 = vld [vmem:[%s6892_s0 + $0x78] sm:$0xf] }
  0x31   :  { %2019 = vmatpush.bf16.msrb.mxu1 %v3642_v43  ;;  %v3610_v43 = vor.u32 %v4278_v33, %v3609_v32  ;;  %v4835_v60 = vpack.c.b16 %v567_v50, %v567_v50  ;;  %v4903_v32 = vor.u32 %v4126_v27, %v2985_v26  ;;  %v4127_v50 = vld [vmem:[%s6892_s0 + $0x40] sm:$0xf0]  ;;  %v4134_v26 = vld [vmem:[%s6892_s0 + $0x7c] sm:$0xf]  ;;  %v3047_v27 = vld [vmem:[%s6892_s0 + $0xac] sm:$0xf0] }
  0x32   :  { %1890 = vmatpush.bf16.msrb.mxu2 %v3450_v54  ;;  %1933 = vmatpush.bf16.msrb.mxu3 %v3514_v55  ;;  %v3482_v54 = vor.u32 %v4246_v40, %v3481_v39  ;;  %v3730_v55 = vor.u32 %v4308_v45, %v3729_v41  ;;  %v4320_v39 = vld [vmem:[%s6891_s1 + $0x3d4] sm:$0xf0]  ;;  %v3841_v40 = vld [vmem:[%s6891_s1 + $0x450] sm:$0xf] }
  0x33   :  { %1814 = vmatmul.bf16.gmra.mxu0 %v4721_v63  ;;  %1834 = vmatmul.bf16.gmra.mxu2 %v4723_v0  ;;  %6945 = vst [vmem:[#allocation2_spill] sm:$0xff] %v4835_v60  ;;  %v4336_v41 = vld [vmem:[%s6891_s1 + $0x454] sm:$0xf0] }
  0x34   :  { %1977 = vmatpush.bf16.msrb.mxu0 %v3570_v58  ;;  %1857 = vmatmul.bf16.gmra.mxu1 %v4734_v6  ;;  %v4831_v58 = vpack.c.b16 %v566_v44, %v566_v44  ;;  %v3905_v44 = vld [vmem:[%s6891_s1 + $0x4d0] sm:$0xf]  ;;  %v4352_v45 = vld [vmem:[%s6891_s1 + $0x4d4] sm:$0xf0] }
  0x35   :  { %2020 = vmatpush.bf16.msrb.mxu1 %v3634_v59  ;;  %1877 = vmatmul.bf16.gmra.mxu3 %v4736_v7  ;;  %v4833_v59 = vor.u32 %v4145_v51, %v3083_v52  ;;  %v3906_v46 = vor.u32 %v4352_v45, %v3905_v44  ;;  %v4121_v51 = vld [vmem:[%s6892_s0 + $0x14] sm:$0xf]  ;;  %v2995_v52 = vld [vmem:[%s6892_s0 + $0x44] sm:$0xf0]  ;;  %v4348_v44 = vld [vmem:[%s6891_s1 + $0x4b4] sm:$0xf0] }
  0x36   :  { %1891 = vmatpush.bf16.msrb.mxu2 %v3442_v10  ;;  %1934 = vmatpush.bf16.msrb.mxu3 %v3506_v11  ;;  %v3721_v10 = vld [vmem:[%s6891_s1 + $0x360] sm:$0xf]  ;;  %v4306_v11 = vld [vmem:[%s6891_s1 + $0x364] sm:$0xf0]  ;;  %v4965_v61 = vor.u32 %v4121_v51, %v2995_v52  ;;  %v4147_v51 = vld [vmem:[%s6892_s0 + $0xe4] sm:$0xf] }
  0x37   :  { %v3722_v13 = vor.u32 %v4306_v11, %v3721_v10  ;;  %v4318_v11 = vld [vmem:[%s6891_s1 + $0x3c4] sm:$0xf0]  ;;  %v3099_v52 = vld [vmem:[%s6892_s0 + $0x114] sm:$0xf0] }
  0x38   :  { %1978 = vmatpush.bf16.msrb.mxu0 %v3562_v16  ;;  %v3849_v16 = vld [vmem:[%s6891_s1 + $0x460] sm:$0xf]  ;;  %6946 = vst [vmem:[#allocation3_spill] sm:$0xff] %v4965_v61 }
  0x39   :  { %2021 = vmatpush.bf16.msrb.mxu1 %v3626_v17  ;;  %v3786_v17 = vor.u32 %v4322_v15, %v3785_v14  ;;  %v3770_v14 = vor.u32 %v4318_v11, %v3769_v5  ;;  %v5085_v5 = vor.u32 %v4147_v51, %v3099_v52  ;;  %v3689_v11 = vld [vmem:[%s6891_s1 + $0x320] sm:$0xf]  ;;  %v4328_v51 = vld [vmem:[%s6891_s1 + $0x414] sm:$0xf0]  ;;  %v3873_v52 = vld [vmem:[%s6891_s1 + $0x490] sm:$0xf] }
  0x3a   :  { %1892 = vmatpush.bf16.msrb.mxu2 %v3434_v21  ;;  %1935 = vmatpush.bf16.msrb.mxu3 %v3498_v22  ;;  %v3850_v21 = vor.u32 %v4338_v18, %v3849_v16  ;;  %v3914_v22 = vor.u32 %v4354_v20, %v3913_v19  ;;  %v3897_v16 = vld [vmem:[%s6891_s1 + $0x4c0] sm:$0xf]  ;;  %v3697_v18 = vld [vmem:[%s6891_s1 + $0x330] sm:$0xf]  ;;  %v4300_v20 = vld [vmem:[%s6891_s1 + $0x334] sm:$0xf0] }
  0x3b   :  { %6948 = vst [vmem:[#allocation5_spill] sm:$0xff] %v5085_v5 }
  0x3c   :  { %1979 = vmatpush.bf16.msrb.mxu0 %v3554_v28  ;;  %v3135_v28 = vld [vmem:[%s6892_s0 + $0x16c] sm:$0xf0] }
  0x3d   :  { %2022 = vmatpush.bf16.msrb.mxu1 %v3618_v29  ;;  %v4120_v29 = vld [vmem:[%s6892_s0 + $0xc] sm:$0xf]  ;;  %v4905_v33 = vor.u32 %v4158_v25, %v3135_v28  ;;  %v4146_v28 = vld [vmem:[%s6892_s0 + $0xdc] sm:$0xf] }
  0x3e   :  { %1893 = vmatpush.bf16.msrb.mxu2 %v3426_v35  ;;  %1936 = vmatpush.bf16.msrb.mxu3 %v3490_v36  ;;  %v4907_v34 = vor.u32 %v4120_v29, %v2987_v30  ;;  %v3713_v35 = vld [vmem:[%s6891_s1 + $0x350] sm:$0xf]  ;;  %v4304_v36 = vld [vmem:[%s6891_s1 + $0x354] sm:$0xf0]  ;;  %v4140_v25 = vld [vmem:[%s6892_s0 + $0xa8] sm:$0xf0] }
  0x3f   :  { %v3714_v38 = vor.u32 %v4304_v36, %v3713_v35  ;;  %v3091_v29 = vld [vmem:[%s6892_s0 + $0x10c] sm:$0xf0]  ;;  %v5029_v35 = vor.u32 %v4140_v25, %v3045_v24  ;;  %v5031_v36 = vor.u32 %v4134_v26, %v3047_v27  ;;  %v4160_v24 = vld [vmem:[%s6892_s0 + $0x14c] sm:$0xf]  ;;  %v4346_v26 = vld [vmem:[%s6891_s1 + $0x4a4] sm:$0xf0] }
  0x40   :  { %1980 = vmatpush.bf16.msrb.mxu0 %v3546_v42  ;;  %v3778_v42 = vor.u32 %v4320_v39, %v3777_v37  ;;  %v5033_v37 = vor.u32 %v4146_v28, %v3091_v29  ;;  %v4316_v39 = vld [vmem:[%s6891_s1 + $0x3b4] sm:$0xf0]  ;;  %v3151_v27 = vld [vmem:[%s6892_s0 + $0x17c] sm:$0xf0]  ;;  %v4172_v28 = vld [vmem:[%s6892_s0 + $0x1ac] sm:$0xf] }
  0x41   :  { %2023 = vmatpush.bf16.msrb.mxu1 %v3610_v43  ;;  %v3842_v43 = vor.u32 %v4336_v41, %v3841_v40  ;;  %6947 = vst [vmem:[#allocation4_spill] sm:$0xff] %v5031_v36  ;;  %v3825_v40 = vld [vmem:[%s6891_s1 + $0x430] sm:$0xf]  ;;  %v3195_v29 = vld [vmem:[%s6892_s0 + $0x1dc] sm:$0xf0] }
  0x42   :  { %1894 = vmatpush.bf16.msrb.mxu2 %v3418_v53  ;;  %1937 = vmatpush.bf16.msrb.mxu3 %v3482_v54  ;;  %v4133_v53 = vld [vmem:[%s6892_s0 + $0x74] sm:$0xf]  ;;  %v3039_v54 = vld [vmem:[%s6892_s0 + $0xa4] sm:$0xf0] }
  0x43   :  { %1819 = vmatmul.bf16.gmra.mxu0 %v4829_v57  ;;  %1839 = vmatmul.bf16.gmra.mxu2 %v4831_v58  ;;  %v4967_v62 = vor.u32 %v4133_v53, %v3039_v54  ;;  %v4159_v53 = vld [vmem:[%s6892_s0 + $0x144] sm:$0xf]  ;;  %v3143_v54 = vld [vmem:[%s6892_s0 + $0x174] sm:$0xf0] }
  0x44   :  { %1862 = vmatmul.bf16.gmra.mxu1 %v4833_v59  ;;  %2145 = vmatpush.bf16.msra.mxu0 %v3858_v2  ;;  %v4302_v2 = vld [vmem:[%s6891_s1 + $0x344] sm:$0xf0] }
  0x45   :  { %1882 = vmatmul.bf16.gmra.mxu3 %v4835_v60  ;;  %2188 = vmatpush.bf16.msra.mxu1 %v3922_v12  ;;  %v3706_v10 = vor.u32 %v4302_v2, %v3705_v1  ;;  %v3833_v12 = vld [vmem:[%s6891_s1 + $0x440] sm:$0xf] }
  0x46   :  { %2059 = vmatpush.bf16.msra.mxu2 %v3730_v55  ;;  %2102 = vmatpush.bf16.msra.mxu3 %v3794_v56  ;;  %v4961_v55 = vor.u32 %v4139_v48, %v3037_v47  ;;  %v4963_v56 = vor.u32 %v4127_v50, %v2993_v49  ;;  %v3141_v47 = vld [vmem:[%s6892_s0 + $0x140] sm:$0xf]  ;;  %v4165_v48 = vld [vmem:[%s6892_s0 + $0x170] sm:$0xf0] }
  0x47   :  { %v3097_v49 = vld [vmem:[%s6892_s0 + $0xe0] sm:$0xf]  ;;  %v4153_v50 = vld [vmem:[%s6892_s0 + $0x110] sm:$0xf0]  ;;  %v5081_v1 = vor.u32 %v4165_v48, %v3141_v47  ;;  %v4312_v47 = vld [vmem:[%s6891_s1 + $0x394] sm:$0xf0] }
  0x48   :  { %2146 = vmatpush.bf16.msra.mxu0 %v3850_v21  ;;  %v3698_v21 = vor.u32 %v4300_v20, %v3697_v18  ;;  %v5083_v2 = vor.u32 %v4153_v50, %v3097_v49  ;;  %v4178_v18 = vld [vmem:[%s6892_s0 + $0x1d8] sm:$0xf0]  ;;  %v3817_v20 = vld [vmem:[%s6891_s1 + $0x420] sm:$0xf]  ;;  %v3809_v50 = vld [vmem:[%s6891_s1 + $0x410] sm:$0xf] }
  0x49   :  { %2189 = vmatpush.bf16.msra.mxu1 %v3914_v22  ;;  %v3089_v22 = vld [vmem:[%s6892_s0 + $0xd8] sm:$0xf]  ;;  %v313_v49 = vld [vmem:[%s6893_s2] sm:$0x3] }
  0x4a   :  { %2060 = vmatpush.bf16.msra.mxu2 %v3722_v13  ;;  %2103 = vmatpush.bf16.msra.mxu3 %v3786_v17  ;;  %v4334_v13 = vld [vmem:[%s6891_s1 + $0x444] sm:$0xf0]  ;;  %v5027_v30 = vor.u32 %v4152_v23, %v3089_v22  ;;  %v3881_v22 = vld [vmem:[%s6891_s1 + $0x4a0] sm:$0xf]  ;;  %v4166_v23 = vld [vmem:[%s6892_s0 + $0x178] sm:$0xf0] }
  0x4b   :  { %v3834_v15 = vor.u32 %v4334_v13, %v3833_v12  ;;  %v4350_v17 = vld [vmem:[%s6891_s1 + $0x4c4] sm:$0xf0]  ;;  %v3753_v13 = vld [vmem:[%s6891_s1 + $0x3a0] sm:$0xf] }
  0x4c   :  { %2147 = vmatpush.bf16.msra.mxu0 %v3842_v43  ;;  %v3898_v19 = vor.u32 %v4350_v17, %v3897_v16  ;;  %v3889_v43 = vld [vmem:[%s6891_s1 + $0x4b0] sm:$0xf]  ;;  %v4298_v12 = vld [vmem:[%s6891_s1 + $0x324] sm:$0xf0] }
  0x4d   :  { %2190 = vmatpush.bf16.msra.mxu1 %v3906_v46  ;;  %v3890_v46 = vor.u32 %v4348_v44, %v3889_v43  ;;  %v3193_v17 = vld [vmem:[%s6892_s0 + $0x1a8] sm:$0xf]  ;;  %v5151_v43 = vor.u32 %v4160_v24, %v3151_v27  ;;  %v5153_v44 = vor.u32 %v4172_v28, %v3195_v29 }
  0x4e   :  { %2061 = vmatpush.bf16.msra.mxu2 %v3714_v38  ;;  %2104 = vmatpush.bf16.msra.mxu3 %v3778_v42  ;;  %v3761_v38 = vld [vmem:[%s6891_s1 + $0x3b0] sm:$0xf]  ;;  %v4332_v42 = vld [vmem:[%s6891_s1 + $0x434] sm:$0xf0]  ;;  %v4310_v27 = vld [vmem:[%s6891_s1 + $0x384] sm:$0xf0] }
  0x4f   :  { %v3762_v41 = vor.u32 %v4316_v39, %v3761_v38  ;;  %v3826_v45 = vor.u32 %v4332_v42, %v3825_v40  ;;  %v3882_v38 = vor.u32 %v4346_v26, %v3881_v22  ;;  %v5141_v39 = vor.u32 %v4178_v18, %v3193_v17  ;;  %v4296_v42 = vld [vmem:[%s6891_s1 + $0x314] sm:$0xf0]  ;;  %6949 = vst [vmem:[#allocation6_spill] sm:$0xff] %v5151_v43  ;;  %v3201_v17 = vld [vmem:[%s6892_s0 + $0x1b0] sm:$0xf] }
  0x50   :  { %2148 = vmatpush.bf16.msra.mxu0 %v3834_v15  ;;  %v4314_v15 = vld [vmem:[%s6891_s1 + $0x3a4] sm:$0xf0]  ;;  %v4179_v18 = vld [vmem:[%s6892_s0 + $0x1e0] sm:$0xf0]  ;;  %v4185_v22 = vld [vmem:[%s6892_s0 + $0x214] sm:$0xf] }
  0x51   :  { %2191 = vmatpush.bf16.msra.mxu1 %v3898_v19  ;;  %v3754_v16 = vor.u32 %v4314_v15, %v3753_v13  ;;  %v3149_v19 = vld [vmem:[%s6892_s0 + $0x148] sm:$0xf]  ;;  %v4191_v13 = vld [vmem:[%s6892_s0 + $0x240] sm:$0xf0]  ;;  %v3673_v15 = vld [vmem:[%s6891_s1 + $0x300] sm:$0xf] }
  0x52   :  { %2062 = vmatpush.bf16.msra.mxu2 %v3706_v10  ;;  %2105 = vmatpush.bf16.msra.mxu3 %v3770_v14  ;;  %v5087_v10 = vor.u32 %v4159_v53, %v3143_v54  ;;  %v3690_v14 = vor.u32 %v4298_v12, %v3689_v11  ;;  %v5143_v40 = vor.u32 %v4166_v23, %v3149_v19  ;;  %v5177_v53 = vperm.slane %v313_v49, 0  ;;  %v3245_v54 = vld [vmem:[%s6892_s0 + $0x210] sm:$0xf]  ;;  %v4344_v12 = vld [vmem:[%s6891_s1 + $0x494] sm:$0xf0] }
  0x53   :  { %1824 = vmatmul.bf16.gmra.mxu0 %v4901_v31  ;;  %1895 = vmatmul.bf16.vlgmr.msrb.gmra.mxu2 %v4903_v32  ;;  %v3810_v11 = vor.u32 %v4328_v51, %v3809_v50  ;;  %v4173_v19 = vld [vmem:[%s6892_s0 + $0x1b4] sm:$0xf]  ;;  %v3247_v23 = vld [vmem:[%s6892_s0 + $0x244] sm:$0xf0]  ;;  %v5212_v24 = vor.u32 %v4191_v13, %v3245_v54  ;;  %v3737_v26 = vld [vmem:[%s6891_s1 + $0x380] sm:$0xf] }
  0x54   :  { %1867 = vmatmul.bf16.gmra.mxu1 %v4905_v33  ;;  %2149 = vmatpush.bf16.msra.mxu0 %v3826_v45  ;;  %v3865_v49 = vld [vmem:[%s6891_s1 + $0x480] sm:$0xf]  ;;  %v4342_v51 = vld [vmem:[%s6891_s1 + $0x484] sm:$0xf0] }
  0x55   :  { %1938 = vmatmul.bf16.vlgmr.msrb.gmra.mxu3 %v4907_v34  ;;  %2192 = vmatpush.bf16.msra.mxu1 %v3890_v46  ;;  %v3745_v46 = vld [vmem:[%s6891_s1 + $0x390] sm:$0xf]  ;;  %6950 = vst [vmem:[#allocation7_spill] sm:$0xff] %v5212_v24  ;;  %v3866_v54 = vor.u32 %v4342_v51, %v3865_v49 }
  0x56   :  { %2063 = vmatpush.bf16.msra.mxu2 %v3698_v21  ;;  %2106 = vmatpush.bf16.msra.mxu3 %v3762_v41  ;;  %v4330_v21 = vld [vmem:[%s6891_s1 + $0x424] sm:$0xf0]  ;;  %v3681_v41 = vld [vmem:[%s6891_s1 + $0x310] sm:$0xf]  ;;  %v3746_v48 = vor.u32 %v4312_v47, %v3745_v46  ;;  %v3801_v47 = vld [vmem:[%s6891_s1 + $0x400] sm:$0xf] }
  0x57   :  { %v3818_v25 = vor.u32 %v4330_v21, %v3817_v20  ;;  %v3682_v45 = vor.u32 %v4296_v42, %v3681_v41  ;;  %v3203_v21 = vld [vmem:[%s6892_s0 + $0x1e4] sm:$0xf0]  ;;  %v3738_v41 = vor.u32 %v4310_v27, %v3737_v26  ;;  %v4192_v26 = vld [vmem:[%s6892_s0 + $0x248] sm:$0xf0] }
  0x58   :  { %v5222_v29 = vor.u32 %v4173_v19, %v3203_v21  ;;  %v4372_v21 = vld [vmem:[%s6891_s1 + $0x574] sm:$0xf0] }
  0x59   :  { %2150 = vmatpush.bf16.msra.mxu0 %v3818_v25  ;;  %2193 = vmatpush.bf16.msra.mxu1 %v3882_v38  ;;  %v5214_v25 = vor.u32 %v4179_v18, %v3201_v17  ;;  %v5224_v38 = vor.u32 %v4185_v22, %v3247_v23  ;;  %v4049_v22 = vld [vmem:[%s6891_s1 + $0x5f0] sm:$0xf]  ;;  %v3253_v23 = vld [vmem:[%s6892_s0 + $0x218] sm:$0xf] }
  0x5a   :  { %2064 = vmatpush.bf16.msra.mxu2 %v3690_v14  ;;  %2107 = vmatpush.bf16.msra.mxu3 %v3754_v16  ;;  %v3874_v14 = vor.u32 %v4344_v12, %v3873_v52  ;;  %v4294_v16 = vld [vmem:[%s6891_s1 + $0x304] sm:$0xf0]  ;;  %6952 = vst [vmem:[#allocation9_spill] sm:$0xff] %v5222_v29 }
  0x5b   :  { %v3674_v20 = vor.u32 %v4294_v16, %v3673_v15  ;;  %6951 = vst [vmem:[#allocation8_spill] sm:$0xff] %v5214_v25 }
  0x5c   :  { %6953 = vst [vmem:[#allocation10_spill] sm:$0xff] %v5224_v38 }
  0x5d   :  { %2151 = vmatpush.bf16.msra.mxu0 %v3810_v11  ;;  %2194 = vmatpush.bf16.msra.mxu1 %v3874_v14  ;;  %v99_v14 = vld [vmem:[%s6892_s0 + $0x278] sm:$0xff] }
  0x5e   :  { %2065 = vmatpush.bf16.msra.mxu2 %v3682_v45  ;;  %2108 = vmatpush.bf16.msra.mxu3 %v3746_v48  ;;  %v4326_v48 = vld [vmem:[%s6891_s1 + $0x404] sm:$0xf0]  ;;  %v568_v19 = vunpack.c.l.b16 %v99_v14  ;;  %v569_v27 = vunpack.c.h.b16 %v99_v14 }
  0x5f   :  { %v3802_v50 = vor.u32 %v4326_v48, %v3801_v47 }
  0x60   :  { %v5279_v51 = vpack.c.b16 %v568_v19, %v568_v19  ;;  %v4113_v19 = vld [vmem:[%s6891_s1 + $0x670] sm:$0xf] }
  0x61   :  { %2152 = vmatpush.bf16.msra.mxu0 %v3802_v50  ;;  %2195 = vmatpush.bf16.msra.mxu1 %v3866_v54 }
  0x62   :  { %2066 = vmatpush.bf16.msra.mxu2 %v3674_v20  ;;  %2109 = vmatpush.bf16.msra.mxu3 %v3738_v41  ;;  %v3985_v20 = vld [vmem:[%s6891_s1 + $0x570] sm:$0xf]  ;;  %v4388_v41 = vld [vmem:[%s6891_s1 + $0x5f4] sm:$0xf0]  ;;  %6954 = vst [vmem:[#allocation11_spill] sm:$0xff] %v5279_v51 }
  0x63   :  { %1900 = vmatmul.bf16.gmra.mxu2 %v4961_v55  ;;  %1981 = vmatmul.bf16.vlgmr.msrb.gmra.mxu0 %v4963_v56  ;;  %v4050_v47 = vor.u32 %v4388_v41, %v4049_v22 }
  0x64   :  { %2024 = vmatmul.bf16.vlgmr.msrb.gmra.mxu1 %v4965_v61 }
  0x65   :  { %1943 = vmatmul.bf16.gmra.mxu3 %v4967_v62 }
  0x66   :  { %2274 = vmatpush.bf16.msrb.mxu3 %v4050_v47 }
  0x73   :  { %1905 = vmatmul.bf16.gmra.mxu2 %v5027_v30  ;;  %1986 = vmatmul.bf16.gmra.mxu0 %v5029_v35 }
  0x74   :  { %2029 = vmatmul.bf16.gmra.mxu1 %v5031_v36 }
  0x75   :  { %1948 = vmatmul.bf16.gmra.mxu3 %v5033_v37 }
  0x83   :  { %1910 = vmatmul.bf16.gmra.mxu2 %v5081_v1  ;;  %1991 = vmatmul.bf16.gmra.mxu0 %v5083_v2 }
  0x84   :  { %2034 = vmatmul.bf16.gmra.mxu1 %v5085_v5 }
  0x85   :  { %1953 = vmatmul.bf16.gmra.mxu3 %v5087_v10 }
  0x93   :  { %1915 = vmatmul.bf16.gmra.mxu2 %v5141_v39  ;;  %1996 = vmatmul.bf16.gmra.mxu0 %v5143_v40 }
  0x94   :  { %2039 = vmatmul.bf16.gmra.mxu1 %v5151_v43 }
  0x95   :  { %1958 = vmatmul.bf16.gmra.mxu3 %v5153_v44 }
  0xa0   :  { %v1810_v28 = vpop.f32.mrf.mxu0 }
  0xa1   :  { %v1811_v42 = vadd.f32 %v1810_v28, %v5177_v53  ;;  %v1853_v45 = vpop.f32.mrf.mxu1  ;;  %v3986_v28 = vor.u32 %v4372_v21, %v3985_v20  ;;  %v4404_v20 = vld [vmem:[%s6891_s1 + $0x674] sm:$0xf0]  ;;  %v4211_v21 = vld [vmem:[%s6891_s1 + $0x74] sm:$0xf] }
  0xa2   :  { %v4114_v22 = vor.u32 %v4404_v20, %v4113_v19  ;;  %v4041_v19 = vld [vmem:[%s6891_s1 + $0x5e0] sm:$0xf] }
  0xa3   :  { %v5227_v46 = vadd.f32 %v1853_v45, %v1811_v42  ;;  %1920 = vmatmul.bf16.gmra.mxu2 %v5212_v24  ;;  %2001 = vmatmul.bf16.gmra.mxu0 %v5214_v25  ;;  %v4186_v42 = vld [vmem:[%s6892_s0 + $0x21c] sm:$0xf]  ;;  %v3255_v45 = vld [vmem:[%s6892_s0 + $0x24c] sm:$0xf0] }
  0xa4   :  { %2044 = vmatmul.bf16.gmra.mxu1 %v5222_v29  ;;  %2231 = vmatpush.bf16.msrb.mxu2 %v3986_v28 }
  0xa5   :  { %1963 = vmatmul.bf16.gmra.mxu3 %v5224_v38  ;;  %2317 = vmatpush.bf16.msrb.mxu0 %v4114_v22  ;;  %v4128_v22 = vld [vmem:[%s6892_s0 + $0x48] sm:$0xf0] }
  0xa6   :  { %v1830_v52 = vpop.f32.mrf.mxu2 }
  0xa7   :  { %v1831_v11 = vadd.f32 %v1830_v52, %v5177_v53  ;;  %v5281_v52 = vor.u32 %v4192_v26, %v3253_v23  ;;  %v3347_v23 = vld [vmem:[%s6891_s1 + $0x78] sm:$0xf0] }
  0xa8   :  { %v1873_v12 = vpop.f32.mrf.mxu3  ;;  %v1812_v13 = vpop.f32.mrf.mxu0 }
  0xa9   :  { %v5249_v15 = vadd.f32 %v1873_v12, %v1831_v11  ;;  %v1813_v16 = vadd.f32 %v1812_v13, %v5177_v53  ;;  %v1855_v17 = vpop.f32.mrf.mxu1  ;;  %6955 = vst [vmem:[#allocation12_spill] sm:$0xff] %v5281_v52  ;;  %v5283_v11 = vor.u32 %v4186_v42, %v3255_v45  ;;  %v5285_v12 = vpack.c.b16 %v569_v27, %v569_v27  ;;  %v100_v45 = vld [vmem:[%s6892_s0 + $0x280] sm:$0xff] }
  0xaa   :  { %v3350_v27 = vor.u32 %v4211_v21, %v3347_v23  ;;  %v571_v20 = vunpack.c.h.b16 %v100_v45  ;;  %v3001_v21 = vld [vmem:[%s6892_s0 + $0x18] sm:$0xf] }
  0xab   :  { %v5252_v18 = vadd.f32 %v1855_v17, %v1813_v16  ;;  %6956 = vst [vmem:[#allocation13_spill] sm:$0xff] %v5283_v11 }
  0xac   :  { %6957 = vst [vmem:[#allocation14_spill] sm:$0xff] %v5285_v12  ;;  %2360 = vmatpush.bf16.msrb.mxu1 %v3350_v27  ;;  %v4122_v27 = vld [vmem:[%s6892_s0 + $0x1c] sm:$0xf] }
  0xae   :  { %v1832_v48 = vpop.f32.mrf.mxu2 }
  0xaf   :  { %v1833_v49 = vadd.f32 %v1832_v48, %v5177_v53 }
  0xb0   :  { %v1875_v50 = vpop.f32.mrf.mxu3  ;;  %v1815_v54 = vpop.f32.mrf.mxu0 }
  0xb1   :  { %v5287_v13 = vadd.f32 %v1875_v50, %v1833_v49  ;;  %v1816_v14 = vadd.f32 %v1815_v54, %v5177_v53  ;;  %v1858_v16 = vpop.f32.mrf.mxu1  ;;  %v570_v54 = vunpack.c.l.b16 %v100_v45 }
  0xb3   :  { %v5290_v17 = vadd.f32 %v1858_v16, %v1816_v14  ;;  %1925 = vmatmul.bf16.gmra.mxu2 %v5279_v51  ;;  %2006 = vmatmul.bf16.gmra.mxu0 %v5281_v52  ;;  %v3977_v14 = vld [vmem:[%s6891_s1 + $0x560] sm:$0xf]  ;;  %v4370_v16 = vld [vmem:[%s6891_s1 + $0x564] sm:$0xf0] }
  0xb4   :  { %2049 = vmatmul.bf16.gmra.mxu1 %v5283_v11  ;;  %v3978_v23 = vor.u32 %v4370_v16, %v3977_v14  ;;  %v5344_v14 = vor.u32 %v4128_v22, %v3001_v21  ;;  %v5346_v11 = vpack.c.b16 %v571_v20, %v571_v20  ;;  %v4402_v20 = vld [vmem:[%s6891_s1 + $0x664] sm:$0xf0]  ;;  %v4209_v21 = vld [vmem:[%s6891_s1 + $0x64] sm:$0xf]  ;;  %v3339_v22 = vld [vmem:[%s6891_s1 + $0x68] sm:$0xf0] }
  0xb5   :  { %1968 = vmatmul.bf16.gmra.mxu3 %v5285_v12  ;;  %v4097_v12 = vld [vmem:[%s6891_s1 + $0x650] sm:$0xf] }
  0xb6   :  { %v1835_v26 = vpop.f32.mrf.mxu2  ;;  %2232 = vmatpush.bf16.msrb.mxu2 %v3978_v23  ;;  %6959 = vst [vmem:[#allocation16_spill] sm:$0xff] %v5344_v14  ;;  %v3342_v23 = vor.u32 %v4209_v21, %v3339_v22  ;;  %v3053_v21 = vld [vmem:[%s6892_s0 + $0x80] sm:$0xf]  ;;  %v4141_v22 = vld [vmem:[%s6892_s0 + $0xb0] sm:$0xf0] }
  0xb7   :  { %v1836_v28 = vadd.f32 %v1835_v26, %v5177_v53  ;;  %v4386_v26 = vld [vmem:[%s6891_s1 + $0x5e4] sm:$0xf0]  ;;  %6960 = vst [vmem:[#allocation17_spill] sm:$0xff] %v5346_v11 }
  0xb8   :  { %v1878_v41 = vpop.f32.mrf.mxu3  ;;  %v1817_v42 = vpop.f32.mrf.mxu0  ;;  %2361 = vmatpush.bf16.msrb.mxu1 %v3342_v23  ;;  %v4033_v23 = vld [vmem:[%s6891_s1 + $0x5d0] sm:$0xf] }
  0xb9   :  { %v5312_v47 = vadd.f32 %v1878_v41, %v1836_v28  ;;  %v1818_v48 = vadd.f32 %v1817_v42, %v5177_v53  ;;  %v1860_v49 = vpop.f32.mrf.mxu1  ;;  %v3003_v28 = vld [vmem:[%s6892_s0 + $0x4c] sm:$0xf0]  ;;  %v4042_v41 = vor.u32 %v4386_v26, %v4041_v19 }
  0xba   :  { %v5348_v29 = vor.u32 %v4122_v27, %v3003_v28 }
  0xbb   :  { %v5315_v50 = vadd.f32 %v1860_v49, %v1818_v48  ;;  %v5342_v49 = vpack.c.b16 %v570_v54, %v570_v54  ;;  %2275 = vmatpush.bf16.msrb.mxu3 %v4042_v41  ;;  %v4105_v54 = vld [vmem:[%s6891_s1 + $0x660] sm:$0xf] }
  0xbc   :  { %6961 = vst [vmem:[#allocation18_spill] sm:$0xff] %v5348_v29 }
  0xbd   :  { %6958 = vst [vmem:[#allocation15_spill] sm:$0xff] %v5342_v49 }
  0xbe   :  { %v1837_v42 = vpop.f32.mrf.mxu2 }
  0xbf   :  { %v1838_v45 = vadd.f32 %v1837_v42, %v5177_v53  ;;  %v3969_v42 = vld [vmem:[%s6891_s1 + $0x550] sm:$0xf] }
  0xc0   :  { %v1880_v48 = vpop.f32.mrf.mxu3  ;;  %v1820_v16 = vpop.f32.mrf.mxu0 }
  0xc1   :  { %v5350_v43 = vadd.f32 %v1880_v48, %v1838_v45  ;;  %v1821_v5 = vadd.f32 %v1820_v16, %v5177_v53  ;;  %v1863_v19 = vpop.f32.mrf.mxu1  ;;  %v4368_v45 = vld [vmem:[%s6891_s1 + $0x554] sm:$0xf0] }
  0xc2   :  { %v3970_v16 = vor.u32 %v4368_v45, %v3969_v42  ;;  %v4123_v42 = vld [vmem:[%s6892_s0 + $0x24] sm:$0xf] }
  0xc3   :  { %v5353_v26 = vadd.f32 %v1863_v19, %v1821_v5  ;;  %2011 = vmatmul.bf16.gmra.mxu0 %v5342_v49  ;;  %2067 = vmatmul.bf16.vlgmr.msra.gmra.mxu2 %v5344_v14  ;;  %v4106_v5 = vor.u32 %v4402_v20, %v4105_v54 }
  0xc4   :  { %2054 = vmatmul.bf16.gmra.mxu1 %v5346_v11  ;;  %2233 = vmatpush.bf16.msrb.mxu2 %v3970_v16  ;;  %v4135_v16 = vld [vmem:[%s6892_s0 + $0x84] sm:$0xf] }
  0xc5   :  { %2110 = vmatmul.bf16.vlgmr.msra.gmra.mxu3 %v5348_v29  ;;  %2318 = vmatpush.bf16.msrb.mxu0 %v4106_v5  ;;  %v5413_v29 = vor.u32 %v4141_v22, %v3053_v21  ;;  %v4207_v21 = vld [vmem:[%s6891_s1 + $0x54] sm:$0xf] }
  0xc6   :  { %v1840_v27 = vpop.f32.mrf.mxu2 }
  0xc7   :  { %v1841_v28 = vadd.f32 %v1840_v27, %v5177_v53  ;;  %v4384_v27 = vld [vmem:[%s6891_s1 + $0x5d4] sm:$0xf0]  ;;  %6962 = vst [vmem:[#allocation19_spill] sm:$0xff] %v5413_v29 }
  0xc8   :  { %v1883_v41 = vpop.f32.mrf.mxu3  ;;  %v1822_v48 = vpop.f32.mrf.mxu0  ;;  %v4034_v45 = vor.u32 %v4384_v27, %v4033_v23 }
  0xc9   :  { %v5378_v19 = vadd.f32 %v1883_v41, %v1841_v28  ;;  %v1823_v54 = vadd.f32 %v1822_v48, %v5177_v53  ;;  %v1865_v20 = vpop.f32.mrf.mxu1  ;;  %v3009_v28 = vld [vmem:[%s6892_s0 + $0x20] sm:$0xf]  ;;  %v4129_v41 = vld [vmem:[%s6892_s0 + $0x50] sm:$0xf0]  ;;  %v3011_v48 = vld [vmem:[%s6892_s0 + $0x54] sm:$0xf0] }
  0xca   :  { %2276 = vmatpush.bf16.msrb.mxu3 %v4034_v45  ;;  %v5415_v36 = vor.u32 %v4129_v41, %v3009_v28  ;;  %v5417_v27 = vor.u32 %v4123_v42, %v3011_v48  ;;  %v3331_v28 = vld [vmem:[%s6891_s1 + $0x58] sm:$0xf0] }
  0xcb   :  { %v5384_v5 = vadd.f32 %v1865_v20, %v1823_v54  ;;  %v3055_v54 = vld [vmem:[%s6892_s0 + $0xb4] sm:$0xf0]  ;;  %v3334_v42 = vor.u32 %v4207_v21, %v3331_v28 }
  0xcc   :  { %6963 = vst [vmem:[#allocation20_spill] sm:$0xff] %v5415_v36  ;;  %v5419_v14 = vor.u32 %v4135_v16, %v3055_v54  ;;  %v4025_v54 = vld [vmem:[%s6891_s1 + $0x5c0] sm:$0xf] }
  0xcd   :  { %6964 = vst [vmem:[#allocation21_spill] sm:$0xff] %v5417_v27  ;;  %2362 = vmatpush.bf16.msrb.mxu1 %v3334_v42  ;;  %v4154_v42 = vld [vmem:[%s6892_s0 + $0x118] sm:$0xf0] }
  0xce   :  { %v1842_v20 = vpop.f32.mrf.mxu2  ;;  %6965 = vst [vmem:[#allocation22_spill] sm:$0xff] %v5419_v14 }
  0xcf   :  { %v4382_v20 = vld [vmem:[%s6891_s1 + $0x5c4] sm:$0xf0] }
  0xd0   :  { %v1885_v11 = vpop.f32.mrf.mxu3  ;;  %v1825_v23 = vpop.f32.mrf.mxu0 }
  0xd1   :  { %v1826_v49 = vadd.f32 %v1825_v23, %v5177_v53  ;;  %v1868_v61 = vpop.f32.mrf.mxu1  ;;  %v4400_v11 = vld [vmem:[%s6891_s1 + $0x654] sm:$0xf0] }
  0xd2   :  { %v4098_v22 = vor.u32 %v4400_v11, %v4097_v12  ;;  %v3961_v12 = vld [vmem:[%s6891_s1 + $0x540] sm:$0xf]  ;;  %v4026_v11 = vor.u32 %v4382_v20, %v4025_v54  ;;  %v3323_v20 = vld [vmem:[%s6891_s1 + $0x48] sm:$0xf0] }
  0xd3   :  { %v5434_v41 = vadd.f32 %v1868_v61, %v1826_v49  ;;  %2072 = vmatmul.bf16.gmra.mxu2 %v5413_v29  ;;  %2153 = vmatmul.bf16.vlgmr.msra.gmra.mxu0 %v5415_v36  ;;  %v4366_v61 = vld [vmem:[%s6891_s1 + $0x544] sm:$0xf0] }
  0xd4   :  { %2196 = vmatmul.bf16.vlgmr.msra.gmra.mxu1 %v5417_v27  ;;  %2319 = vmatpush.bf16.msrb.mxu0 %v4098_v22  ;;  %v3962_v45 = vor.u32 %v4366_v61, %v3961_v12  ;;  %v3061_v12 = vld [vmem:[%s6892_s0 + $0x88] sm:$0xf] }
  0xd5   :  { %2115 = vmatmul.bf16.gmra.mxu3 %v5419_v14 }
  0xd6   :  { %v1896_v49 = vpop.f32.mrf.mxu2  ;;  %2234 = vmatpush.bf16.msrb.mxu2 %v3962_v45  ;;  %2277 = vmatpush.bf16.msrb.mxu3 %v4026_v11  ;;  %v4205_v45 = vld [vmem:[%s6891_s1 + $0x44] sm:$0xf]  ;;  %v4148_v11 = vld [vmem:[%s6892_s0 + $0xec] sm:$0xf] }
  0xd7   :  { %v1897_v48 = vadd.f32 %v1896_v49, %v5227_v46  ;;  %v3105_v46 = vld [vmem:[%s6892_s0 + $0xe8] sm:$0xf] }
  0xd8   :  { %v1939_v16 = vpop.f32.mrf.mxu3  ;;  %v1827_v23 = vpop.f32.mrf.mxu0  ;;  %v4398_v49 = vld [vmem:[%s6891_s1 + $0x644] sm:$0xf0]  ;;  %v5493_v14 = vor.u32 %v4154_v42, %v3105_v46 }
  0xd9   :  { %v1940_v21 = vadd.f32 %v1939_v16, %v1897_v48  ;;  %v1828_v22 = vadd.f32 %v1827_v23, %v5177_v53  ;;  %v1870_v28 = vpop.f32.mrf.mxu1  ;;  %v4089_v53 = vld [vmem:[%s6891_s1 + $0x640] sm:$0xf]  ;;  %v4142_v48 = vld [vmem:[%s6892_s0 + $0xb8] sm:$0xf0]  ;;  %v4136_v16 = vld [vmem:[%s6892_s0 + $0x8c] sm:$0xf] }
  0xda   :  { %v4090_v54 = vor.u32 %v4398_v49, %v4089_v53  ;;  %v3063_v23 = vld [vmem:[%s6892_s0 + $0xbc] sm:$0xf0]  ;;  %6966 = vst [vmem:[#allocation23_spill] sm:$0xff] %v5493_v14  ;;  %v5495_v29 = vor.u32 %v4142_v48, %v3061_v12 }
  0xdb   :  { %v5463_v61 = vadd.f32 %v1870_v28, %v1828_v22  ;;  %v3107_v22 = vld [vmem:[%s6892_s0 + $0x11c] sm:$0xf0]  ;;  %v3326_v28 = vor.u32 %v4205_v45, %v3323_v20  ;;  %v5497_v51 = vor.u32 %v4136_v16, %v3063_v23  ;;  %v3157_v20 = vld [vmem:[%s6892_s0 + $0x150] sm:$0xf]  ;;  %v4167_v23 = vld [vmem:[%s6892_s0 + $0x180] sm:$0xf0] }
  0xdc   :  { %2320 = vmatpush.bf16.msrb.mxu0 %v4090_v54  ;;  %6967 = vst [vmem:[#allocation24_spill] sm:$0xff] %v5495_v29  ;;  %v5499_v52 = vor.u32 %v4148_v11, %v3107_v22  ;;  %v3113_v11 = vld [vmem:[%s6892_s0 + $0xf0] sm:$0xf] }
  0xdd   :  { %2363 = vmatpush.bf16.msrb.mxu1 %v3326_v28  ;;  %6968 = vst [vmem:[#allocation25_spill] sm:$0xff] %v5497_v51  ;;  %v4203_v28 = vld [vmem:[%s6891_s1 + $0x34] sm:$0xf] }
  0xde   :  { %v1898_v27 = vpop.f32.mrf.mxu2  ;;  %6969 = vst [vmem:[#allocation26_spill] sm:$0xff] %v5499_v52 }
  0xdf   :  { %v1899_v53 = vadd.f32 %v1898_v27, %v5252_v18  ;;  %v3953_v18 = vld [vmem:[%s6891_s1 + $0x530] sm:$0xf]  ;;  %v4364_v27 = vld [vmem:[%s6891_s1 + $0x534] sm:$0xf0] }
  0xe0   :  { %v1941_v49 = vpop.f32.mrf.mxu3  ;;  %v1982_v36 = vpop.f32.mrf.mxu0 }
  0xe1   :  { %v1942_v38 = vadd.f32 %v1941_v49, %v1899_v53  ;;  %v1983_v60 = vadd.f32 %v1982_v36, %v1940_v21  ;;  %v2025_v24 = vpop.f32.mrf.mxu1  ;;  %v3954_v36 = vor.u32 %v4364_v27, %v3953_v18  ;;  %v4155_v53 = vld [vmem:[%s6892_s0 + $0x120] sm:$0xf0]  ;;  %v4149_v49 = vld [vmem:[%s6892_s0 + $0xf4] sm:$0xf]  ;;  %v3315_v27 = vld [vmem:[%s6891_s1 + $0x38] sm:$0xf0] }
  0xe3   :  { %v5501_v25 = vadd.f32 %v2025_v24, %v1983_v60  ;;  %2077 = vmatmul.bf16.gmra.mxu2 %v5493_v14  ;;  %2158 = vmatmul.bf16.gmra.mxu0 %v5495_v29  ;;  %v4017_v60 = vld [vmem:[%s6891_s1 + $0x5b0] sm:$0xf]  ;;  %v4380_v24 = vld [vmem:[%s6891_s1 + $0x5b4] sm:$0xf0] }
  0xe4   :  { %2201 = vmatmul.bf16.gmra.mxu1 %v5497_v51  ;;  %v4018_v21 = vor.u32 %v4380_v24, %v4017_v60  ;;  %2235 = vmatpush.bf16.msrb.mxu2 %v3954_v36  ;;  %v3115_v36 = vld [vmem:[%s6892_s0 + $0x124] sm:$0xf0]  ;;  %v4161_v60 = vld [vmem:[%s6892_s0 + $0x154] sm:$0xf] }
  0xe5   :  { %2120 = vmatmul.bf16.gmra.mxu3 %v5499_v52  ;;  %v3159_v24 = vld [vmem:[%s6892_s0 + $0x184] sm:$0xf0] }
  0xe6   :  { %v1901_v46 = vpop.f32.mrf.mxu2  ;;  %2278 = vmatpush.bf16.msrb.mxu3 %v4018_v21  ;;  %v3318_v21 = vor.u32 %v4203_v28, %v3315_v27 }
  0xe7   :  { %v1902_v42 = vadd.f32 %v1901_v46, %v5290_v17  ;;  %v4081_v17 = vld [vmem:[%s6891_s1 + $0x630] sm:$0xf] }
  0xe8   :  { %v1944_v12 = vpop.f32.mrf.mxu3  ;;  %v1984_v45 = vpop.f32.mrf.mxu0  ;;  %2364 = vmatpush.bf16.msrb.mxu1 %v3318_v21  ;;  %v3165_v21 = vld [vmem:[%s6892_s0 + $0x158] sm:$0xf] }
  0xe9   :  { %v1945_v48 = vadd.f32 %v1944_v12, %v1902_v42  ;;  %v1985_v16 = vadd.f32 %v1984_v45, %v1942_v38  ;;  %v2027_v54 = vpop.f32.mrf.mxu1  ;;  %v4396_v38 = vld [vmem:[%s6891_s1 + $0x634] sm:$0xf0]  ;;  %v5559_v45 = vor.u32 %v4167_v23, %v3157_v20  ;;  %v4362_v20 = vld [vmem:[%s6891_s1 + $0x524] sm:$0xf0]  ;;  %v4009_v23 = vld [vmem:[%s6891_s1 + $0x5a0] sm:$0xf] }
  0xea   :  { %v4082_v18 = vor.u32 %v4396_v38, %v4081_v17  ;;  %v5563_v17 = vor.u32 %v4149_v49, %v3115_v36  ;;  %v5565_v38 = vor.u32 %v4161_v60, %v3159_v24  ;;  %v3209_v60 = vld [vmem:[%s6892_s0 + $0x1b8] sm:$0xf]  ;;  %v4180_v24 = vld [vmem:[%s6892_s0 + $0x1e8] sm:$0xf0] }
  0xeb   :  { %v5529_v22 = vadd.f32 %v2027_v54, %v1985_v16  ;;  %v5561_v16 = vor.u32 %v4155_v53, %v3113_v11 }
  0xec   :  { %2321 = vmatpush.bf16.msrb.mxu0 %v4082_v18  ;;  %6970 = vst [vmem:[#allocation27_spill] sm:$0xff] %v5563_v17 }
  0xed   :  { %6971 = vst [vmem:[#allocation28_spill] sm:$0xff] %v5565_v38 }
  0xee   :  { %v1903_v46 = vpop.f32.mrf.mxu2 }
  0xef   :  { %v1904_v42 = vadd.f32 %v1903_v46, %v5315_v50  ;;  %v3945_v50 = vld [vmem:[%s6891_s1 + $0x520] sm:$0xf] }
  0xf0   :  { %v1946_v12 = vpop.f32.mrf.mxu3  ;;  %v1987_v54 = vpop.f32.mrf.mxu0 }
  0xf1   :  { %v1947_v51 = vadd.f32 %v1946_v12, %v1904_v42  ;;  %v1988_v52 = vadd.f32 %v1987_v54, %v1945_v48  ;;  %v2030_v14 = vpop.f32.mrf.mxu1  ;;  %v4201_v42 = vld [vmem:[%s6891_s1 + $0x24] sm:$0xf]  ;;  %v4168_v12 = vld [vmem:[%s6892_s0 + $0x188] sm:$0xf0]  ;;  %v4162_v54 = vld [vmem:[%s6892_s0 + $0x15c] sm:$0xf] }
  0xf3   :  { %v5567_v29 = vadd.f32 %v2030_v14, %v1988_v52  ;;  %2082 = vmatmul.bf16.gmra.mxu2 %v5559_v45  ;;  %2163 = vmatmul.bf16.gmra.mxu0 %v5561_v16  ;;  %v3946_v52 = vor.u32 %v4362_v20, %v3945_v50  ;;  %v4378_v14 = vld [vmem:[%s6891_s1 + $0x5a4] sm:$0xf0]  ;;  %v3307_v20 = vld [vmem:[%s6891_s1 + $0x28] sm:$0xf0] }
  0xf4   :  { %2206 = vmatmul.bf16.gmra.mxu1 %v5563_v17  ;;  %v4010_v48 = vor.u32 %v4378_v14, %v4009_v23  ;;  %v3167_v23 = vld [vmem:[%s6892_s0 + $0x18c] sm:$0xf0] }
  0xf5   :  { %2125 = vmatmul.bf16.gmra.mxu3 %v5565_v38  ;;  %2236 = vmatpush.bf16.msrb.mxu2 %v3946_v52  ;;  %v4174_v52 = vld [vmem:[%s6892_s0 + $0x1bc] sm:$0xf]  ;;  %v3211_v14 = vld [vmem:[%s6892_s0 + $0x1ec] sm:$0xf0] }
  0xf6   :  { %v1906_v11 = vpop.f32.mrf.mxu2  ;;  %2279 = vmatpush.bf16.msrb.mxu3 %v4010_v48  ;;  %v3310_v48 = vor.u32 %v4201_v42, %v3307_v20  ;;  %v5635_v42 = vor.u32 %v4162_v54, %v3167_v23  ;;  %v4376_v54 = vld [vmem:[%s6891_s1 + $0x594] sm:$0xf0] }
  0xf7   :  { %v1907_v28 = vadd.f32 %v1906_v11, %v5353_v26  ;;  %v4073_v26 = vld [vmem:[%s6891_s1 + $0x620] sm:$0xf] }
  0xf8   :  { %v1949_v53 = vpop.f32.mrf.mxu3  ;;  %v1989_v49 = vpop.f32.mrf.mxu0  ;;  %2365 = vmatpush.bf16.msrb.mxu1 %v3310_v48  ;;  %6974 = vst [vmem:[#allocation31_spill] sm:$0xff] %v5635_v42 }
  0xf9   :  { %v1950_v18 = vadd.f32 %v1949_v53, %v1907_v28  ;;  %v1990_v27 = vadd.f32 %v1989_v49, %v1947_v51  ;;  %v2032_v36 = vpop.f32.mrf.mxu1  ;;  %v4394_v51 = vld [vmem:[%s6891_s1 + $0x624] sm:$0xf0]  ;;  %v5625_v49 = vor.u32 %v4180_v24, %v3209_v60 }
  0xfa   :  { %v4074_v50 = vor.u32 %v4394_v51, %v4073_v26  ;;  %v4360_v26 = vld [vmem:[%s6891_s1 + $0x514] sm:$0xf0] }
  0xfb   :  { %v5595_v46 = vadd.f32 %v2032_v36, %v1990_v27  ;;  %6972 = vst [vmem:[#allocation29_spill] sm:$0xff] %v5625_v49  ;;  %v5627_v27 = vor.u32 %v4168_v12, %v3165_v21  ;;  %v3937_v36 = vld [vmem:[%s6891_s1 + $0x510] sm:$0xf] }
  0xfc   :  { %2322 = vmatpush.bf16.msrb.mxu0 %v4074_v50  ;;  %v5637_v50 = vor.u32 %v4174_v52, %v3211_v14  ;;  %v4001_v12 = vld [vmem:[%s6891_s1 + $0x590] sm:$0xf] }
  0xfd   :  { %6973 = vst [vmem:[#allocation30_spill] sm:$0xff] %v5627_v27 }
  0xfe   :  { %v1908_v11 = vpop.f32.mrf.mxu2  ;;  %6975 = vst [vmem:[#allocation32_spill] sm:$0xff] %v5637_v50 }
  0xff   :  { %v1909_v28 = vadd.f32 %v1908_v11, %v5384_v5  ;;  %v3938_v5 = vor.u32 %v4360_v26, %v3937_v36  ;;  %v4065_v36 = vld [vmem:[%s6891_s1 + $0x610] sm:$0xf]  ;;  %v4392_v26 = vld [vmem:[%s6891_s1 + $0x614] sm:$0xf0] }
 0x100   :  { %v1951_v53 = vpop.f32.mrf.mxu3  ;;  %v1992_v51 = vpop.f32.mrf.mxu0 }
 0x101   :  { %v1952_v20 = vadd.f32 %v1951_v53, %v1909_v28  ;;  %v1993_v60 = vadd.f32 %v1992_v51, %v1950_v18  ;;  %v2035_v24 = vpop.f32.mrf.mxu1  ;;  %2237 = vmatpush.bf16.msrb.mxu2 %v3938_v5  ;;  %v4002_v18 = vor.u32 %v4376_v54, %v4001_v12  ;;  %v4199_v51 = vld [vmem:[%s6891_s1 + $0x14] sm:$0xf]  ;;  %v4066_v5 = vor.u32 %v4392_v26, %v4065_v36  ;;  %v3929_v54 = vld [vmem:[%s6891_s1 + $0x500] sm:$0xf]  ;;  %v3263_v36 = vld [vmem:[%s6892_s0 + $0x254] sm:$0xf0] }
 0x103   :  { %v5639_v21 = vadd.f32 %v2035_v24, %v1993_v60  ;;  %2087 = vmatmul.bf16.gmra.mxu2 %v5625_v49  ;;  %2168 = vmatmul.bf16.gmra.mxu0 %v5627_v27  ;;  %v4193_v24 = vld [vmem:[%s6892_s0 + $0x250] sm:$0xf0] }
 0x104   :  { %2211 = vmatmul.bf16.gmra.mxu1 %v5635_v42  ;;  %2280 = vmatpush.bf16.msrb.mxu3 %v4002_v18  ;;  %v4358_v18 = vld [vmem:[%s6891_s1 + $0x504] sm:$0xf0] }
 0x105   :  { %2130 = vmatmul.bf16.gmra.mxu3 %v5637_v50  ;;  %2323 = vmatpush.bf16.msrb.mxu0 %v4066_v5  ;;  %v4374_v42 = vld [vmem:[%s6891_s1 + $0x584] sm:$0xf0] }
 0x106   :  { %v1911_v23 = vpop.f32.mrf.mxu2 }
 0x107   :  { %v1912_v52 = vadd.f32 %v1911_v23, %v5434_v41  ;;  %v3261_v41 = vld [vmem:[%s6892_s0 + $0x220] sm:$0xf] }
 0x108   :  { %v1954_v14 = vpop.f32.mrf.mxu3  ;;  %v1994_v48 = vpop.f32.mrf.mxu0  ;;  %v3217_v23 = vld [vmem:[%s6892_s0 + $0x1c0] sm:$0xf]  ;;  %v5697_v5 = vor.u32 %v4193_v24, %v3261_v41 }
 0x109   :  { %v1955_v11 = vadd.f32 %v1954_v14, %v1912_v52  ;;  %v1995_v28 = vadd.f32 %v1994_v48, %v1952_v20  ;;  %v2037_v53 = vpop.f32.mrf.mxu1  ;;  %v3299_v20 = vld [vmem:[%s6891_s1 + $0x18] sm:$0xf0]  ;;  %v4181_v52 = vld [vmem:[%s6892_s0 + $0x1f0] sm:$0xf0]  ;;  %v4175_v14 = vld [vmem:[%s6892_s0 + $0x1c4] sm:$0xf]  ;;  %v3930_v48 = vor.u32 %v4358_v18, %v3929_v54 }
 0x10a   :  { %v3302_v12 = vor.u32 %v4199_v51, %v3299_v20  ;;  %6976 = vst [vmem:[#allocation33_spill] sm:$0xff] %v5697_v5  ;;  %v5699_v54 = vor.u32 %v4181_v52, %v3217_v23  ;;  %v3993_v18 = vld [vmem:[%s6891_s1 + $0x580] sm:$0xf]  ;;  %v3291_v52 = vld [vmem:[%s6891_s1 + $0x8] sm:$0xf0] }
 0x10b   :  { %v5667_v60 = vadd.f32 %v2037_v53, %v1995_v28  ;;  %v3219_v28 = vld [vmem:[%s6892_s0 + $0x1f4] sm:$0xf0]  ;;  %v4187_v53 = vld [vmem:[%s6892_s0 + $0x224] sm:$0xf]  ;;  %2238 = vmatpush.bf16.msrb.mxu2 %v3930_v48  ;;  %v3994_v48 = vor.u32 %v4374_v42, %v3993_v18  ;;  %v4057_v23 = vld [vmem:[%s6891_s1 + $0x600] sm:$0xf] }
 0x10c   :  { %2366 = vmatpush.bf16.msrb.mxu1 %v3302_v12  ;;  %6977 = vst [vmem:[#allocation34_spill] sm:$0xff] %v5699_v54  ;;  %v5707_v50 = vor.u32 %v4175_v14, %v3219_v28  ;;  %v5709_v12 = vor.u32 %v4187_v53, %v3263_v36  ;;  %v4197_v42 = vld [vmem:[%s6891_s1 + $0x4] sm:$0xf] }
 0x10d   :  { %2281 = vmatpush.bf16.msrb.mxu3 %v3994_v48  ;;  %v3294_v28 = vor.u32 %v4197_v42, %v3291_v52  ;;  %v4243_v42 = vld [vmem:[%s6891_s1 + $0x174] sm:$0xf] }
 0x10e   :  { %v1913_v26 = vpop.f32.mrf.mxu2  ;;  %6978 = vst [vmem:[#allocation35_spill] sm:$0xff] %v5707_v50 }
 0x10f   :  { %v1914_v51 = vadd.f32 %v1913_v26, %v5463_v61  ;;  %6979 = vst [vmem:[#allocation36_spill] sm:$0xff] %v5709_v12 }
 0x110   :  { %v1956_v20 = vpop.f32.mrf.mxu3  ;;  %v1997_v17 = vpop.f32.mrf.mxu0  ;;  %2367 = vmatpush.bf16.msrb.mxu1 %v3294_v28  ;;  %v3475_v28 = vld [vmem:[%s6891_s1 + $0x178] sm:$0xf0] }
 0x111   :  { %v1957_v61 = vadd.f32 %v1956_v20, %v1914_v51  ;;  %v1998_v26 = vadd.f32 %v1997_v17, %v1955_v11  ;;  %v2040_v41 = vpop.f32.mrf.mxu1  ;;  %v4390_v17 = vld [vmem:[%s6891_s1 + $0x604] sm:$0xf0] }
 0x112   :  { %v4058_v11 = vor.u32 %v4390_v17, %v4057_v23  ;;  %v101_v20 = vld [vmem:[%s6892_s0 + $0x288] sm:$0xff]  ;;  %v4227_v17 = vld [vmem:[%s6891_s1 + $0xf4] sm:$0xf] }
 0x113   :  { %v5711_v24 = vadd.f32 %v2040_v41, %v1998_v26  ;;  %2092 = vmatmul.bf16.gmra.mxu2 %v5697_v5  ;;  %2173 = vmatmul.bf16.gmra.mxu0 %v5699_v54  ;;  %v572_v23 = vunpack.c.l.b16 %v101_v20  ;;  %v573_v52 = vunpack.c.h.b16 %v101_v20 }
 0x114   :  { %2216 = vmatmul.bf16.gmra.mxu1 %v5707_v50  ;;  %2324 = vmatpush.bf16.msrb.mxu0 %v4058_v11  ;;  %v4194_v11 = vld [vmem:[%s6892_s0 + $0x258] sm:$0xf0] }
 0x115   :  { %2135 = vmatmul.bf16.gmra.mxu3 %v5709_v12  ;;  %v5760_v20 = vpack.c.b16 %v572_v23, %v572_v23  ;;  %v5766_v5 = vpack.c.b16 %v573_v52, %v573_v52 }
 0x116   :  { %v1916_v14 = vpop.f32.mrf.mxu2 }
 0x117   :  { %v1917_v53 = vadd.f32 %v1916_v14, %v5249_v15  ;;  %v3411_v15 = vld [vmem:[%s6891_s1 + $0xf8] sm:$0xf0]  ;;  %6981 = vst [vmem:[#allocation38_spill] sm:$0xff] %v5766_v5 }
 0x118   :  { %v1959_v36 = vpop.f32.mrf.mxu3  ;;  %v1999_v51 = vpop.f32.mrf.mxu0  ;;  %v3414_v14 = vor.u32 %v4227_v17, %v3411_v15 }
 0x119   :  { %v1960_v18 = vadd.f32 %v1959_v36, %v1917_v53  ;;  %v2000_v48 = vadd.f32 %v1999_v51, %v1957_v61  ;;  %v2042_v26 = vpop.f32.mrf.mxu1  ;;  %v3269_v61 = vld [vmem:[%s6892_s0 + $0x228] sm:$0xf]  ;;  %v4188_v53 = vld [vmem:[%s6892_s0 + $0x22c] sm:$0xf]  ;;  %v3271_v36 = vld [vmem:[%s6892_s0 + $0x25c] sm:$0xf0]  ;;  %v3478_v51 = vor.u32 %v4243_v42, %v3475_v28 }
 0x11a   :  { %2403 = vmatpush.bf16.msra.mxu2 %v3414_v14  ;;  %v5762_v17 = vor.u32 %v4194_v11, %v3269_v61  ;;  %v5764_v12 = vor.u32 %v4188_v53, %v3271_v36  ;;  %v102_v14 = vld [vmem:[%s6892_s0 + $0x290] sm:$0xff] }
 0x11b   :  { %v5733_v41 = vadd.f32 %v2042_v26, %v2000_v48  ;;  %2446 = vmatpush.bf16.msra.mxu3 %v3478_v51  ;;  %v4225_v51 = vld [vmem:[%s6891_s1 + $0xe4] sm:$0xf] }
 0x11c   :  { %6980 = vst [vmem:[#allocation37_spill] sm:$0xff] %v5764_v12 }
 0x11e   :  { %v1918_v48 = vpop.f32.mrf.mxu2 }
 0x11f   :  { %v1919_v26 = vadd.f32 %v1918_v48, %v5287_v13  ;;  %v4259_v13 = vld [vmem:[%s6891_s1 + $0x1f4] sm:$0xf]  ;;  %v3403_v48 = vld [vmem:[%s6891_s1 + $0xe8] sm:$0xf0] }
 0x120   :  { %v1961_v50 = vpop.f32.mrf.mxu3  ;;  %v2002_v15 = vpop.f32.mrf.mxu0 }
 0x121   :  { %v1962_v54 = vadd.f32 %v1961_v50, %v1919_v26  ;;  %v2003_v49 = vadd.f32 %v2002_v15, %v1960_v18  ;;  %v2045_v27 = vpop.f32.mrf.mxu1  ;;  %v3539_v50 = vld [vmem:[%s6891_s1 + $0x1f8] sm:$0xf0]  ;;  %v3406_v26 = vor.u32 %v4225_v51, %v3403_v48  ;;  %v3467_v15 = vld [vmem:[%s6891_s1 + $0x168] sm:$0xf0] }
 0x122   :  { %v3603_v18 = vld [vmem:[%s6891_s1 + $0x278] sm:$0xf0] }
 0x123   :  { %v5768_v38 = vadd.f32 %v2045_v27, %v2003_v49  ;;  %2097 = vmatmul.bf16.gmra.mxu2 %v5760_v20  ;;  %2178 = vmatmul.bf16.gmra.mxu0 %v5762_v17  ;;  %v4275_v49 = vld [vmem:[%s6891_s1 + $0x274] sm:$0xf]  ;;  %v3542_v27 = vor.u32 %v4259_v13, %v3539_v50 }
 0x124   :  { %2221 = vmatmul.bf16.gmra.mxu1 %v5764_v12  ;;  %v3606_v42 = vor.u32 %v4275_v49, %v3603_v18  ;;  %v575_v49 = vunpack.c.h.b16 %v102_v14  ;;  %v4130_v18 = vld [vmem:[%s6892_s0 + $0x58] sm:$0xf0]  ;;  %2404 = vmatpush.bf16.msra.mxu2 %v3406_v26 }
 0x125   :  { %2140 = vmatmul.bf16.gmra.mxu3 %v5766_v5  ;;  %2489 = vmatpush.bf16.msra.mxu0 %v3542_v27  ;;  %v3017_v27 = vld [vmem:[%s6892_s0 + $0x28] sm:$0xf] }
 0x126   :  { %v1921_v23 = vpop.f32.mrf.mxu2  ;;  %2532 = vmatpush.bf16.msra.mxu1 %v3606_v42  ;;  %v3019_v42 = vld [vmem:[%s6892_s0 + $0x5c] sm:$0xf0]  ;;  %v5821_v51 = vpack.c.b16 %v575_v49, %v575_v49  ;;  %v3595_v49 = vld [vmem:[%s6891_s1 + $0x268] sm:$0xf0] }
 0x127   :  { %v1922_v61 = vadd.f32 %v1921_v23, %v5312_v47  ;;  %v4241_v47 = vld [vmem:[%s6891_s1 + $0x164] sm:$0xf]  ;;  %v4124_v23 = vld [vmem:[%s6892_s0 + $0x2c] sm:$0xf] }
 0x128   :  { %v1964_v11 = vpop.f32.mrf.mxu3  ;;  %v2004_v52 = vpop.f32.mrf.mxu0  ;;  %v3470_v50 = vor.u32 %v4241_v47, %v3467_v15  ;;  %6984 = vst [vmem:[#allocation41_spill] sm:$0xff] %v5821_v51  ;;  %v5823_v48 = vor.u32 %v4124_v23, %v3019_v42 }
 0x129   :  { %v1965_v28 = vadd.f32 %v1964_v11, %v1922_v61  ;;  %v2005_v53 = vadd.f32 %v2004_v52, %v1962_v54  ;;  %v2047_v36 = vpop.f32.mrf.mxu1  ;;  %v574_v54 = vunpack.c.l.b16 %v102_v14 }
 0x12a   :  { %2447 = vmatpush.bf16.msra.mxu3 %v3470_v50  ;;  %6985 = vst [vmem:[#allocation42_spill] sm:$0xff] %v5823_v48  ;;  %v4273_v50 = vld [vmem:[%s6891_s1 + $0x264] sm:$0xf] }
 0x12b   :  { %v5802_v13 = vadd.f32 %v2047_v36, %v2005_v53  ;;  %v5817_v14 = vpack.c.b16 %v574_v54, %v574_v54  ;;  %v5819_v53 = vor.u32 %v4130_v18, %v3017_v27  ;;  %v3531_v54 = vld [vmem:[%s6891_s1 + $0x1e8] sm:$0xf0]  ;;  %v3598_v27 = vor.u32 %v4273_v50, %v3595_v49  ;;  %v4239_v50 = vld [vmem:[%s6891_s1 + $0x154] sm:$0xf]  ;;  %v3025_v49 = vld [vmem:[%s6892_s0 + $0x30] sm:$0xf] }
 0x12d   :  { %6982 = vst [vmem:[#allocation39_spill] sm:$0xff] %v5817_v14  ;;  %2533 = vmatpush.bf16.msra.mxu1 %v3598_v27  ;;  %v4131_v27 = vld [vmem:[%s6892_s0 + $0x60] sm:$0xf0] }
 0x12e   :  { %v1923_v61 = vpop.f32.mrf.mxu2  ;;  %6983 = vst [vmem:[#allocation40_spill] sm:$0xff] %v5819_v53 }
 0x12f   :  { %v1924_v11 = vadd.f32 %v1923_v61, %v5350_v43  ;;  %v4257_v43 = vld [vmem:[%s6891_s1 + $0x1e4] sm:$0xf]  ;;  %v4223_v61 = vld [vmem:[%s6891_s1 + $0xd4] sm:$0xf] }
 0x130   :  { %v1966_v52 = vpop.f32.mrf.mxu3  ;;  %v2007_v36 = vpop.f32.mrf.mxu0 }
 0x131   :  { %v1967_v47 = vadd.f32 %v1966_v52, %v1924_v11  ;;  %v2008_v26 = vadd.f32 %v2007_v36, %v1965_v28  ;;  %v2050_v15 = vpop.f32.mrf.mxu1  ;;  %v3534_v28 = vor.u32 %v4257_v43, %v3531_v54  ;;  %v3395_v11 = vld [vmem:[%s6891_s1 + $0xd8] sm:$0xf0] }
 0x132   :  { %v3398_v36 = vor.u32 %v4223_v61, %v3395_v11 }
 0x133   :  { %v5825_v12 = vadd.f32 %v2050_v15, %v2008_v26  ;;  %2183 = vmatmul.bf16.gmra.mxu0 %v5817_v14  ;;  %2239 = vmatmul.bf16.vlgmr.msrb.gmra.mxu2 %v5819_v53 }
 0x134   :  { %2226 = vmatmul.bf16.gmra.mxu1 %v5821_v51  ;;  %2490 = vmatpush.bf16.msra.mxu0 %v3534_v28  ;;  %v3459_v28 = vld [vmem:[%s6891_s1 + $0x158] sm:$0xf0] }
 0x135   :  { %2282 = vmatmul.bf16.vlgmr.msrb.gmra.mxu3 %v5823_v48  ;;  %2405 = vmatpush.bf16.msra.mxu2 %v3398_v36  ;;  %v5878_v36 = vor.u32 %v4131_v27, %v3025_v49  ;;  %v3523_v48 = vld [vmem:[%s6891_s1 + $0x1d8] sm:$0xf0] }
 0x136   :  { %v1926_v18 = vpop.f32.mrf.mxu2  ;;  %v3587_v49 = vld [vmem:[%s6891_s1 + $0x258] sm:$0xf0] }
 0x137   :  { %v1927_v23 = vadd.f32 %v1926_v18, %v5378_v19  ;;  %v3069_v19 = vld [vmem:[%s6892_s0 + $0x90] sm:$0xf]  ;;  %v3462_v18 = vor.u32 %v4239_v50, %v3459_v28  ;;  %6987 = vst [vmem:[#allocation44_spill] sm:$0xff] %v5878_v36  ;;  %v4255_v28 = vld [vmem:[%s6891_s1 + $0x1d4] sm:$0xf] }
 0x138   :  { %v1969_v42 = vpop.f32.mrf.mxu3  ;;  %v2009_v52 = vpop.f32.mrf.mxu0 }
 0x139   :  { %v1970_v26 = vadd.f32 %v1969_v42, %v1927_v23  ;;  %v2010_v15 = vadd.f32 %v2009_v52, %v1967_v47  ;;  %v2052_v43 = vpop.f32.mrf.mxu1  ;;  %v4143_v47 = vld [vmem:[%s6892_s0 + $0xc0] sm:$0xf0]  ;;  %v4137_v23 = vld [vmem:[%s6892_s0 + $0x94] sm:$0xf]  ;;  %v3071_v42 = vld [vmem:[%s6892_s0 + $0xc4] sm:$0xf0]  ;;  %2448 = vmatpush.bf16.msra.mxu3 %v3462_v18 }
 0x13a   :  { %v5876_v52 = vor.u32 %v4143_v47, %v3069_v19  ;;  %v4271_v19 = vld [vmem:[%s6891_s1 + $0x254] sm:$0xf]  ;;  %v3526_v47 = vor.u32 %v4255_v28, %v3523_v48  ;;  %v4221_v18 = vld [vmem:[%s6891_s1 + $0xc4] sm:$0xf]  ;;  %v3387_v48 = vld [vmem:[%s6891_s1 + $0xc8] sm:$0xf0] }
 0x13b   :  { %v5850_v54 = vadd.f32 %v2052_v43, %v2010_v15  ;;  %v5880_v43 = vor.u32 %v4137_v23, %v3071_v42 }
 0x13c   :  { %6986 = vst [vmem:[#allocation43_spill] sm:$0xff] %v5876_v52  ;;  %2491 = vmatpush.bf16.msra.mxu0 %v3526_v47  ;;  %v3121_v47 = vld [vmem:[%s6892_s0 + $0xf8] sm:$0xf] }
 0x13d   :  { %6988 = vst [vmem:[#allocation45_spill] sm:$0xff] %v5880_v43 }
 0x13e   :  { %v1928_v61 = vpop.f32.mrf.mxu2 }
 0x140   :  { %v1971_v11 = vpop.f32.mrf.mxu3  ;;  %v2012_v15 = vpop.f32.mrf.mxu0 }
 0x141   :  { %v2013_v51 = vadd.f32 %v2012_v15, %v1970_v26  ;;  %v2055_v50 = vpop.f32.mrf.mxu1  ;;  %v3590_v26 = vor.u32 %v4271_v19, %v3587_v49  ;;  %v3451_v11 = vld [vmem:[%s6891_s1 + $0x148] sm:$0xf0]  ;;  %v4253_v49 = vld [vmem:[%s6891_s1 + $0x1c4] sm:$0xf] }
 0x143   :  { %v5894_v27 = vadd.f32 %v2055_v50, %v2013_v51  ;;  %2244 = vmatmul.bf16.gmra.mxu2 %v5876_v52  ;;  %2325 = vmatmul.bf16.vlgmr.msrb.gmra.mxu0 %v5878_v36  ;;  %v3390_v51 = vor.u32 %v4221_v18, %v3387_v48  ;;  %v4269_v18 = vld [vmem:[%s6891_s1 + $0x244] sm:$0xf]  ;;  %v3077_v48 = vld [vmem:[%s6892_s0 + $0x98] sm:$0xf] }
 0x144   :  { %2368 = vmatmul.bf16.vlgmr.msrb.gmra.mxu1 %v4589_v3  ;;  %v4237_v3 = vld [vmem:[%s6891_s1 + $0x144] sm:$0xf] }
 0x145   :  { %2287 = vmatmul.bf16.gmra.mxu3 %v5880_v43  ;;  %2534 = vmatpush.bf16.msra.mxu1 %v3590_v26  ;;  %v3454_v50 = vor.u32 %v4237_v3, %v3451_v11  ;;  %v3515_v26 = vld [vmem:[%s6891_s1 + $0x1c8] sm:$0xf0]  ;;  %v3123_v3 = vld [vmem:[%s6892_s0 + $0x12c] sm:$0xf0] }
 0x146   :  { %v2068_v23 = vpop.f32.mrf.mxu2  ;;  %2406 = vmatpush.bf16.msra.mxu2 %v3390_v51  ;;  %v4144_v51 = vld [vmem:[%s6892_s0 + $0xc8] sm:$0xf0] }
 0x147   :  { %v2069_v42 = vadd.f32 %v2068_v23, %v5501_v25  ;;  %v4156_v25 = vld [vmem:[%s6892_s0 + $0x128] sm:$0xf0]  ;;  %2449 = vmatpush.bf16.msra.mxu3 %v3454_v50  ;;  %v3518_v23 = vor.u32 %v4253_v49, %v3515_v26  ;;  %v5946_v49 = vor.u32 %v4144_v51, %v3077_v48 }
 0x148   :  { %v2111_v61 = vpop.f32.mrf.mxu3  ;;  %v2014_v15 = vpop.f32.mrf.mxu0  ;;  %v5944_v43 = vor.u32 %v4156_v25, %v3121_v47  ;;  %v3379_v47 = vld [vmem:[%s6891_s1 + $0xb8] sm:$0xf0] }
 0x149   :  { %v2112_v28 = vadd.f32 %v2111_v61, %v2069_v42  ;;  %v2057_v19 = vpop.f32.mrf.mxu1  ;;  %v3579_v42 = vld [vmem:[%s6891_s1 + $0x248] sm:$0xf0]  ;;  %v4150_v61 = vld [vmem:[%s6892_s0 + $0xfc] sm:$0xf]  ;;  %2492 = vmatpush.bf16.msra.mxu0 %v3518_v23 }
 0x14a   :  { %v3582_v11 = vor.u32 %v4269_v18, %v3579_v42  ;;  %6989 = vst [vmem:[#allocation46_spill] sm:$0xff] %v5944_v43  ;;  %v5948_v52 = vor.u32 %v4150_v61, %v3123_v3  ;;  %v3173_v3 = vld [vmem:[%s6892_s0 + $0x160] sm:$0xf] }
 0x14c   :  { %2535 = vmatpush.bf16.msra.mxu1 %v3582_v11  ;;  %6990 = vst [vmem:[#allocation47_spill] sm:$0xff] %v5948_v52  ;;  %v4169_v11 = vld [vmem:[%s6892_s0 + $0x190] sm:$0xf0] }
 0x14e   :  { %v2070_v15 = vpop.f32.mrf.mxu2 }
 0x14f   :  { %v2071_v50 = vadd.f32 %v2070_v15, %v5529_v22  ;;  %v4219_v22 = vld [vmem:[%s6891_s1 + $0xb4] sm:$0xf] }
 0x150   :  { %v2113_v19 = vpop.f32.mrf.mxu3  ;;  %v2154_v26 = vpop.f32.mrf.mxu0 }
 0x151   :  { %v2114_v36 = vadd.f32 %v2113_v19, %v2071_v50  ;;  %v2155_v53 = vadd.f32 %v2154_v26, %v2112_v28  ;;  %v2197_v14 = vpop.f32.mrf.mxu1  ;;  %v3382_v28 = vor.u32 %v4219_v22, %v3379_v47  ;;  %v3507_v50 = vld [vmem:[%s6891_s1 + $0x1b8] sm:$0xf0]  ;;  %v3129_v19 = vld [vmem:[%s6892_s0 + $0x100] sm:$0xf]  ;;  %v4157_v26 = vld [vmem:[%s6892_s0 + $0x130] sm:$0xf0] }
 0x152   :  { %v3571_v47 = vld [vmem:[%s6891_s1 + $0x238] sm:$0xf0] }
 0x153   :  { %v5950_v5 = vadd.f32 %v2197_v14, %v2155_v53  ;;  %2249 = vmatmul.bf16.gmra.mxu2 %v5944_v43  ;;  %2330 = vmatmul.bf16.gmra.mxu0 %v5946_v49  ;;  %v4235_v14 = vld [vmem:[%s6891_s1 + $0x134] sm:$0xf]  ;;  %v3443_v53 = vld [vmem:[%s6891_s1 + $0x138] sm:$0xf0] }
 0x154   :  { %2373 = vmatmul.bf16.gmra.mxu1 %v4721_v63  ;;  %v3446_v25 = vor.u32 %v4235_v14, %v3443_v53  ;;  %2407 = vmatpush.bf16.msra.mxu2 %v3382_v28  ;;  %v4163_v28 = vld [vmem:[%s6892_s0 + $0x164] sm:$0xf]  ;;  %v3175_v14 = vld [vmem:[%s6892_s0 + $0x194] sm:$0xf0] }
 0x155   :  { %2292 = vmatmul.bf16.gmra.mxu3 %v5948_v52 }
 0x156   :  { %v2073_v18 = vpop.f32.mrf.mxu2  ;;  %2450 = vmatpush.bf16.msra.mxu3 %v3446_v25 }
 0x157   :  { %v2074_v48 = vadd.f32 %v2073_v18, %v5567_v29  ;;  %v4251_v29 = vld [vmem:[%s6891_s1 + $0x1b4] sm:$0xf] }
 0x158   :  { %v2116_v51 = vpop.f32.mrf.mxu3  ;;  %v2156_v23 = vpop.f32.mrf.mxu0  ;;  %v3510_v22 = vor.u32 %v4251_v29, %v3507_v50 }
 0x159   :  { %v2117_v63 = vadd.f32 %v2116_v51, %v2074_v48  ;;  %v2157_v42 = vadd.f32 %v2156_v23, %v2114_v36  ;;  %v2199_v61 = vpop.f32.mrf.mxu1  ;;  %v4267_v36 = vld [vmem:[%s6891_s1 + $0x234] sm:$0xf]  ;;  %v6002_v51 = vor.u32 %v4169_v11, %v3173_v3  ;;  %v6004_v23 = vor.u32 %v4157_v26, %v3129_v19  ;;  %v3371_v3 = vld [vmem:[%s6891_s1 + $0xa8] sm:$0xf0]  ;;  %v4233_v11 = vld [vmem:[%s6891_s1 + $0x124] sm:$0xf] }
 0x15a   :  { %v3574_v53 = vor.u32 %v4267_v36, %v3571_v47  ;;  %2493 = vmatpush.bf16.msra.mxu0 %v3510_v22 }
 0x15b   :  { %v5975_v15 = vadd.f32 %v2199_v61, %v2157_v42  ;;  %v6006_v61 = vor.u32 %v4163_v28, %v3175_v14 }
 0x15c   :  { %2536 = vmatpush.bf16.msra.mxu1 %v3574_v53 }
 0x15e   :  { %v2075_v25 = vpop.f32.mrf.mxu2 }
 0x15f   :  { %v2076_v18 = vadd.f32 %v2075_v25, %v5595_v46  ;;  %v4217_v46 = vld [vmem:[%s6891_s1 + $0xa4] sm:$0xf]  ;;  %v4182_v25 = vld [vmem:[%s6892_s0 + $0x1f8] sm:$0xf0] }
 0x160   :  { %v2118_v48 = vpop.f32.mrf.mxu3  ;;  %v2159_v42 = vpop.f32.mrf.mxu0 }
 0x161   :  { %v2119_v29 = vadd.f32 %v2118_v48, %v2076_v18  ;;  %v2160_v50 = vadd.f32 %v2159_v42, %v2117_v63  ;;  %v2202_v52 = vpop.f32.mrf.mxu1  ;;  %v3435_v63 = vld [vmem:[%s6891_s1 + $0x128] sm:$0xf0]  ;;  %v4265_v42 = vld [vmem:[%s6891_s1 + $0x224] sm:$0xf] }
 0x162   :  { %v3438_v36 = vor.u32 %v4233_v11, %v3435_v63  ;;  %v3499_v48 = vld [vmem:[%s6891_s1 + $0x1a8] sm:$0xf0] }
 0x163   :  { %v6008_v43 = vadd.f32 %v2202_v52, %v2160_v50  ;;  %2254 = vmatmul.bf16.gmra.mxu2 %v6002_v51  ;;  %2335 = vmatmul.bf16.gmra.mxu0 %v6004_v23  ;;  %v3374_v52 = vor.u32 %v4217_v46, %v3371_v3  ;;  %v4170_v50 = vld [vmem:[%s6892_s0 + $0x198] sm:$0xf0]  ;;  %v3563_v3 = vld [vmem:[%s6891_s1 + $0x228] sm:$0xf0] }
 0x164   :  { %2378 = vmatmul.bf16.gmra.mxu1 %v4829_v57  ;;  %2451 = vmatpush.bf16.msra.mxu3 %v3438_v36  ;;  %v3225_v57 = vld [vmem:[%s6892_s0 + $0x1c8] sm:$0xf]  ;;  %v4176_v11 = vld [vmem:[%s6892_s0 + $0x1cc] sm:$0xf]  ;;  %v3566_v63 = vor.u32 %v4265_v42, %v3563_v3 }
 0x165   :  { %2297 = vmatmul.bf16.gmra.mxu3 %v6006_v61  ;;  %2408 = vmatpush.bf16.msra.mxu2 %v3374_v52  ;;  %v3227_v52 = vld [vmem:[%s6892_s0 + $0x1fc] sm:$0xf0] }
 0x166   :  { %v2078_v19 = vpop.f32.mrf.mxu2  ;;  %2537 = vmatpush.bf16.msra.mxu1 %v3566_v63 }
 0x167   :  { %v2079_v26 = vadd.f32 %v2078_v19, %v5639_v21  ;;  %v4249_v21 = vld [vmem:[%s6891_s1 + $0x1a4] sm:$0xf] }
 0x168   :  { %v2121_v22 = vpop.f32.mrf.mxu3  ;;  %v2161_v47 = vpop.f32.mrf.mxu0  ;;  %v3502_v46 = vor.u32 %v4249_v21, %v3499_v48  ;;  %v6070_v48 = vor.u32 %v4176_v11, %v3227_v52 }
 0x169   :  { %v2122_v28 = vadd.f32 %v2121_v22, %v2079_v26  ;;  %v2162_v14 = vadd.f32 %v2161_v47, %v2119_v29  ;;  %v2204_v53 = vpop.f32.mrf.mxu1  ;;  %v3181_v29 = vld [vmem:[%s6892_s0 + $0x168] sm:$0xf]  ;;  %v6060_v22 = vor.u32 %v4182_v25, %v3225_v57  ;;  %v4231_v25 = vld [vmem:[%s6891_s1 + $0x114] sm:$0xf] }
 0x16a   :  { %2494 = vmatpush.bf16.msra.mxu0 %v3502_v46  ;;  %v6062_v47 = vor.u32 %v4170_v50, %v3181_v29  ;;  %6991 = vst [vmem:[#allocation48_spill] sm:$0xff] %v6070_v48  ;;  %v3427_v29 = vld [vmem:[%s6891_s1 + $0x118] sm:$0xf0] }
 0x16b   :  { %v6033_v18 = vadd.f32 %v2204_v53, %v2162_v14  ;;  %v4215_v14 = vld [vmem:[%s6891_s1 + $0x94] sm:$0xf]  ;;  %v3363_v53 = vld [vmem:[%s6891_s1 + $0x98] sm:$0xf0] }
 0x16c   :  { %v3366_v42 = vor.u32 %v4215_v14, %v3363_v53  ;;  %v4247_v14 = vld [vmem:[%s6891_s1 + $0x194] sm:$0xf] }
 0x16d   :  { %v4263_v53 = vld [vmem:[%s6891_s1 + $0x214] sm:$0xf] }
 0x16e   :  { %v2080_v36 = vpop.f32.mrf.mxu2  ;;  %2409 = vmatpush.bf16.msra.mxu2 %v3366_v42 }
 0x16f   :  { %v2081_v19 = vadd.f32 %v2080_v36, %v5667_v60 }
 0x170   :  { %v2123_v26 = vpop.f32.mrf.mxu3  ;;  %v2164_v21 = vpop.f32.mrf.mxu0 }
 0x171   :  { %v2124_v46 = vadd.f32 %v2123_v26, %v2081_v19  ;;  %v2165_v60 = vadd.f32 %v2164_v21, %v2122_v28  ;;  %v2207_v3 = vpop.f32.mrf.mxu1  ;;  %v3430_v28 = vor.u32 %v4231_v25, %v3427_v29  ;;  %v3355_v25 = vld [vmem:[%s6891_s1 + $0x88] sm:$0xf0]  ;;  %v4195_v29 = vld [vmem:[%s6892_s0 + $0x260] sm:$0xf0] }
 0x173   :  { %v6072_v57 = vadd.f32 %v2207_v3, %v2165_v60  ;;  %2259 = vmatmul.bf16.gmra.mxu2 %v6060_v22  ;;  %2340 = vmatmul.bf16.gmra.mxu0 %v6062_v47  ;;  %v4213_v3 = vld [vmem:[%s6891_s1 + $0x84] sm:$0xf] }
 0x174   :  { %2383 = vmatmul.bf16.gmra.mxu1 %v4901_v31  ;;  %2452 = vmatpush.bf16.msra.mxu3 %v3430_v28  ;;  %v3491_v31 = vld [vmem:[%s6891_s1 + $0x198] sm:$0xf0]  ;;  %v3233_v28 = vld [vmem:[%s6892_s0 + $0x1d0] sm:$0xf] }
 0x175   :  { %2302 = vmatmul.bf16.gmra.mxu3 %v6070_v48  ;;  %v3494_v21 = vor.u32 %v4247_v14, %v3491_v31 }
 0x176   :  { %v2083_v50 = vpop.f32.mrf.mxu2 }
 0x177   :  { %v2084_v11 = vadd.f32 %v2083_v50, %v5711_v24  ;;  %v3555_v24 = vld [vmem:[%s6891_s1 + $0x218] sm:$0xf0]  ;;  %v4183_v50 = vld [vmem:[%s6892_s0 + $0x200] sm:$0xf0]  ;;  %2495 = vmatpush.bf16.msra.mxu0 %v3494_v21 }
 0x178   :  { %v2126_v52 = vpop.f32.mrf.mxu3  ;;  %v2166_v63 = vpop.f32.mrf.mxu0  ;;  %v3558_v60 = vor.u32 %v4263_v53, %v3555_v24  ;;  %v6126_v53 = vor.u32 %v4183_v50, %v3233_v28  ;;  %v4229_v21 = vld [vmem:[%s6891_s1 + $0x104] sm:$0xf]  ;;  %v3419_v24 = vld [vmem:[%s6891_s1 + $0x108] sm:$0xf0] }
 0x179   :  { %v2127_v36 = vadd.f32 %v2126_v52, %v2084_v11  ;;  %v2167_v19 = vadd.f32 %v2166_v63, %v2124_v46  ;;  %v2209_v26 = vpop.f32.mrf.mxu1  ;;  %v3277_v46 = vld [vmem:[%s6892_s0 + $0x230] sm:$0xf]  ;;  %v3358_v11 = vor.u32 %v4213_v3, %v3355_v25  ;;  %v4189_v52 = vld [vmem:[%s6892_s0 + $0x234] sm:$0xf]  ;;  %v3279_v63 = vld [vmem:[%s6892_s0 + $0x264] sm:$0xf0] }
 0x17a   :  { %2538 = vmatpush.bf16.msra.mxu1 %v3558_v60  ;;  %v6124_v31 = vor.u32 %v4195_v29, %v3277_v46  ;;  %6993 = vst [vmem:[#allocation50_spill] sm:$0xff] %v6126_v53  ;;  %v6134_v25 = vor.u32 %v4189_v52, %v3279_v63  ;;  %v3422_v60 = vor.u32 %v4229_v21, %v3419_v24  ;;  %v4245_v29 = vld [vmem:[%s6891_s1 + $0x184] sm:$0xf]  ;;  %v3547_v50 = vld [vmem:[%s6891_s1 + $0x208] sm:$0xf0] }
 0x17b   :  { %v6097_v42 = vadd.f32 %v2209_v26, %v2167_v19  ;;  %2410 = vmatpush.bf16.msra.mxu2 %v3358_v11 }
 0x17c   :  { %6992 = vst [vmem:[#allocation49_spill] sm:$0xff] %v6124_v31  ;;  %2453 = vmatpush.bf16.msra.mxu3 %v3422_v60 }
 0x17d   :  { %6994 = vst [vmem:[#allocation51_spill] sm:$0xff] %v6134_v25 }
 0x17e   :  { %v2085_v19 = vpop.f32.mrf.mxu2 }
 0x17f   :  { %v2086_v26 = vadd.f32 %v2085_v19, %v5733_v41 }
 0x180   :  { %v2128_v14 = vpop.f32.mrf.mxu3  ;;  %v2169_v3 = vpop.f32.mrf.mxu0 }
 0x181   :  { %v2129_v11 = vadd.f32 %v2128_v14, %v2086_v26  ;;  %v2170_v48 = vadd.f32 %v2169_v3, %v2127_v36  ;;  %v2212_v41 = vpop.f32.mrf.mxu1  ;;  %v3483_v36 = vld [vmem:[%s6891_s1 + $0x188] sm:$0xf0]  ;;  %v103_v14 = vld [vmem:[%s6892_s0 + $0x298] sm:$0xff] }
 0x182   :  { %v3486_v28 = vor.u32 %v4245_v29, %v3483_v36  ;;  %v4291_v29 = vld [vmem:[%s6891_s1 + $0x2f4] sm:$0xf] }
 0x183   :  { %v6136_v46 = vadd.f32 %v2212_v41, %v2170_v48  ;;  %2264 = vmatmul.bf16.gmra.mxu2 %v6124_v31  ;;  %2345 = vmatmul.bf16.gmra.mxu0 %v6126_v53  ;;  %v4261_v48 = vld [vmem:[%s6891_s1 + $0x204] sm:$0xf]  ;;  %v576_v41 = vunpack.c.l.b16 %v103_v14  ;;  %v4307_v36 = vld [vmem:[%s6891_s1 + $0x374] sm:$0xf] }
 0x184   :  { %2388 = vmatmul.bf16.gmra.mxu1 %v4591_v4  ;;  %v3550_v52 = vor.u32 %v4261_v48, %v3547_v50  ;;  %2496 = vmatpush.bf16.msra.mxu0 %v3486_v28  ;;  %v4196_v48 = vld [vmem:[%s6892_s0 + $0x268] sm:$0xf0]  ;;  %v577_v28 = vunpack.c.h.b16 %v103_v14 }
 0x185   :  { %2307 = vmatmul.bf16.gmra.mxu3 %v6134_v25 }
 0x186   :  { %v2088_v4 = vpop.f32.mrf.mxu2  ;;  %2539 = vmatpush.bf16.msra.mxu1 %v3550_v52  ;;  %v6183_v31 = vpack.c.b16 %v577_v28, %v577_v28 }
 0x187   :  { %v2089_v63 = vadd.f32 %v2088_v4, %v5768_v38  ;;  %v3667_v38 = vld [vmem:[%s6891_s1 + $0x2f8] sm:$0xf0] }
 0x188   :  { %v2131_v19 = vpop.f32.mrf.mxu3  ;;  %v2171_v26 = vpop.f32.mrf.mxu0  ;;  %v3670_v50 = vor.u32 %v4291_v29, %v3667_v38  ;;  %v3731_v4 = vld [vmem:[%s6891_s1 + $0x378] sm:$0xf0] }
 0x189   :  { %v2132_v21 = vadd.f32 %v2131_v19, %v2089_v63  ;;  %v2172_v24 = vadd.f32 %v2171_v26, %v2129_v11  ;;  %v2214_v3 = vpop.f32.mrf.mxu1  ;;  %v3285_v11 = vld [vmem:[%s6892_s0 + $0x238] sm:$0xf]  ;;  %v3734_v52 = vor.u32 %v4307_v36, %v3731_v4  ;;  %v3859_v36 = vld [vmem:[%s6891_s1 + $0x478] sm:$0xf0]  ;;  %v104_v4 = vld [vmem:[%s6892_s0 + $0x2a0] sm:$0xf] }
 0x18a   :  { %2575 = vmatpush.bf16.msrb.mxu2 %v3670_v50 }
 0x18b   :  { %v6158_v60 = vadd.f32 %v2214_v3, %v2172_v24  ;;  %v6179_v24 = vpack.c.b16 %v576_v41, %v576_v41  ;;  %v6181_v3 = vor.u32 %v4196_v48, %v3285_v11  ;;  %2618 = vmatpush.bf16.msrb.mxu3 %v3734_v52  ;;  %v3795_v41 = vld [vmem:[%s6891_s1 + $0x3f8] sm:$0xf0] }
 0x18e   :  { %v2090_v63 = vpop.f32.mrf.mxu2 }
 0x18f   :  { %v2091_v19 = vadd.f32 %v2090_v63, %v5802_v13  ;;  %v4323_v13 = vld [vmem:[%s6891_s1 + $0x3f4] sm:$0xf] }
 0x190   :  { %v2133_v26 = vpop.f32.mrf.mxu3  ;;  %v2174_v25 = vpop.f32.mrf.mxu0 }
 0x191   :  { %v2134_v14 = vadd.f32 %v2133_v26, %v2091_v19  ;;  %v2175_v29 = vadd.f32 %v2174_v25, %v2132_v21  ;;  %v2217_v38 = vpop.f32.mrf.mxu1  ;;  %v4339_v25 = vld [vmem:[%s6891_s1 + $0x474] sm:$0xf]  ;;  %v3798_v21 = vor.u32 %v4323_v13, %v3795_v41  ;;  %v4289_v26 = vld [vmem:[%s6891_s1 + $0x2e4] sm:$0xf]  ;;  %v3723_v13 = vld [vmem:[%s6891_s1 + $0x368] sm:$0xf0] }
 0x192   :  { %v3862_v11 = vor.u32 %v4339_v25, %v3859_v36 }
 0x193   :  { %v6185_v53 = vadd.f32 %v2217_v38, %v2175_v29  ;;  %2269 = vmatmul.bf16.gmra.mxu2 %v6179_v24  ;;  %2350 = vmatmul.bf16.gmra.mxu0 %v6181_v3  ;;  %v3659_v29 = vld [vmem:[%s6891_s1 + $0x2e8] sm:$0xf0] }
 0x194   :  { %2393 = vmatmul.bf16.gmra.mxu1 %v4723_v0  ;;  %2661 = vmatpush.bf16.msrb.mxu0 %v3798_v21  ;;  %v3662_v38 = vor.u32 %v4289_v26, %v3659_v29 }
 0x195   :  { %2312 = vmatmul.bf16.gmra.mxu3 %v6183_v31  ;;  %2704 = vmatpush.bf16.msrb.mxu1 %v3862_v11 }
 0x196   :  { %v2093_v0 = vpop.f32.mrf.mxu2  ;;  %2576 = vmatpush.bf16.msrb.mxu2 %v3662_v38  ;;  %v4287_v38 = vld [vmem:[%s6891_s1 + $0x2d4] sm:$0xf] }
 0x197   :  { %v2094_v48 = vadd.f32 %v2093_v0, %v5825_v12  ;;  %v4305_v12 = vld [vmem:[%s6891_s1 + $0x364] sm:$0xf] }
 0x198   :  { %v2136_v28 = vpop.f32.mrf.mxu3  ;;  %v2176_v50 = vpop.f32.mrf.mxu0  ;;  %v3726_v25 = vor.u32 %v4305_v12, %v3723_v13  ;;  %v3651_v13 = vld [vmem:[%s6891_s1 + $0x2d8] sm:$0xf0] }
 0x199   :  { %v2137_v52 = vadd.f32 %v2136_v28, %v2094_v48  ;;  %v2177_v63 = vadd.f32 %v2176_v50, %v2134_v14  ;;  %v2219_v19 = vpop.f32.mrf.mxu1  ;;  %v578_v14 = vunpack.c.l.b16 %v104_v4  ;;  %v3787_v4 = vld [vmem:[%s6891_s1 + $0x3e8] sm:$0xf0] }
 0x19a   :  { %2619 = vmatpush.bf16.msrb.mxu3 %v3726_v25  ;;  %v3654_v25 = vor.u32 %v4287_v38, %v3651_v13 }
 0x19b   :  { %v6219_v41 = vadd.f32 %v2219_v19, %v2177_v63  ;;  %v6222_v11 = vpack.c.b16 %v578_v14, %v578_v14 }
 0x19c   :  { %2577 = vmatpush.bf16.msrb.mxu2 %v3654_v25  ;;  %v3643_v25 = vld [vmem:[%s6891_s1 + $0x2c8] sm:$0xf0] }
 0x19e   :  { %v2095_v21 = vpop.f32.mrf.mxu2 }
 0x19f   :  { %v2096_v36 = vadd.f32 %v2095_v21, %v5850_v54  ;;  %v4321_v54 = vld [vmem:[%s6891_s1 + $0x3e4] sm:$0xf] }
 0x1a0   :  { %v2138_v0 = vpop.f32.mrf.mxu3  ;;  %v2179_v48 = vpop.f32.mrf.mxu0  ;;  %v3790_v19 = vor.u32 %v4321_v54, %v3787_v4 }
 0x1a1   :  { %v2139_v28 = vadd.f32 %v2138_v0, %v2096_v36  ;;  %v2180_v50 = vadd.f32 %v2179_v48, %v2137_v52  ;;  %v2222_v26 = vpop.f32.mrf.mxu1  ;;  %v4337_v52 = vld [vmem:[%s6891_s1 + $0x464] sm:$0xf] }
 0x1a2   :  { %2662 = vmatpush.bf16.msrb.mxu0 %v3790_v19  ;;  %v4319_v19 = vld [vmem:[%s6891_s1 + $0x3d4] sm:$0xf] }
 0x1a3   :  { %v6224_v29 = vadd.f32 %v2222_v26, %v2180_v50  ;;  %2355 = vmatmul.bf16.gmra.mxu0 %v6222_v11  ;;  %2411 = vmatmul.bf16.vlgmr.msra.gmra.mxu2 %v4602_v8  ;;  %v3851_v8 = vld [vmem:[%s6891_s1 + $0x468] sm:$0xf0]  ;;  %v3715_v50 = vld [vmem:[%s6891_s1 + $0x358] sm:$0xf0] }
 0x1a4   :  { %2398 = vmatmul.bf16.gmra.mxu1 %v4831_v58  ;;  %v3854_v12 = vor.u32 %v4337_v52, %v3851_v8  ;;  %v3779_v8 = vld [vmem:[%s6891_s1 + $0x3d8] sm:$0xf0] }
 0x1a5   :  { %2454 = vmatmul.bf16.vlgmr.msra.gmra.mxu3 %v4903_v32 }
 0x1a6   :  { %v2098_v63 = vpop.f32.mrf.mxu2  ;;  %2705 = vmatpush.bf16.msrb.mxu1 %v3854_v12  ;;  %v3843_v12 = vld [vmem:[%s6891_s1 + $0x458] sm:$0xf0] }
 0x1a7   :  { %v2099_v58 = vadd.f32 %v2098_v63, %v5894_v27  ;;  %v4303_v27 = vld [vmem:[%s6891_s1 + $0x354] sm:$0xf] }
 0x1a8   :  { %v2141_v32 = vpop.f32.mrf.mxu3  ;;  %v2181_v14 = vpop.f32.mrf.mxu0  ;;  %v3718_v54 = vor.u32 %v4303_v27, %v3715_v50 }
 0x1a9   :  { %v2142_v21 = vadd.f32 %v2141_v32, %v2099_v58  ;;  %v2182_v36 = vadd.f32 %v2181_v14, %v2139_v28  ;;  %v2224_v0 = vpop.f32.mrf.mxu1  ;;  %v4335_v58 = vld [vmem:[%s6891_s1 + $0x454] sm:$0xf]  ;;  %v3782_v32 = vor.u32 %v4319_v19, %v3779_v8  ;;  %v4285_v14 = vld [vmem:[%s6891_s1 + $0x2c4] sm:$0xf] }
 0x1aa   :  { %2620 = vmatpush.bf16.msrb.mxu3 %v3718_v54  ;;  %v3846_v13 = vor.u32 %v4335_v58, %v3843_v12  ;;  %v3771_v54 = vld [vmem:[%s6891_s1 + $0x3c8] sm:$0xf0] }
 0x1ab   :  { %v6249_v48 = vadd.f32 %v2224_v0, %v2182_v36  ;;  %2663 = vmatpush.bf16.msrb.mxu0 %v3782_v32  ;;  %v3646_v36 = vor.u32 %v4285_v14, %v3643_v25  ;;  %v4283_v25 = vld [vmem:[%s6891_s1 + $0x2b4] sm:$0xf] }
 0x1ac   :  { %2706 = vmatpush.bf16.msrb.mxu1 %v3846_v13 }
 0x1ad   :  { %2578 = vmatpush.bf16.msrb.mxu2 %v3646_v36 }
 0x1ae   :  { %v2100_v26 = vpop.f32.mrf.mxu2 }
 0x1af   :  { %v4317_v26 = vld [vmem:[%s6891_s1 + $0x3c4] sm:$0xf] }
 0x1b0   :  { %v2143_v4 = vpop.f32.mrf.mxu3  ;;  %v2184_v52 = vpop.f32.mrf.mxu0 }
 0x1b1   :  { %v2185_v63 = vadd.f32 %v2184_v52, %v2142_v21  ;;  %v2227_v28 = vpop.f32.mrf.mxu1  ;;  %v4333_v4 = vld [vmem:[%s6891_s1 + $0x444] sm:$0xf] }
 0x1b3   :  { %v6269_v38 = vadd.f32 %v2227_v28, %v2185_v63  ;;  %2416 = vmatmul.bf16.gmra.mxu2 %v4734_v6  ;;  %2497 = vmatmul.bf16.vlgmr.msra.gmra.mxu0 %v4907_v34  ;;  %v4301_v34 = vld [vmem:[%s6891_s1 + $0x344] sm:$0xf]  ;;  %v3774_v63 = vor.u32 %v4317_v26, %v3771_v54  ;;  %v3835_v28 = vld [vmem:[%s6891_s1 + $0x448] sm:$0xf0]  ;;  %v3763_v26 = vld [vmem:[%s6891_s1 + $0x3b8] sm:$0xf0] }
 0x1b4   :  { %2540 = vmatmul.bf16.vlgmr.msra.gmra.mxu1 %v4963_v56  ;;  %v3838_v8 = vor.u32 %v4333_v4, %v3835_v28 }
 0x1b5   :  { %2459 = vmatmul.bf16.gmra.mxu3 %v4961_v55  ;;  %v3707_v55 = vld [vmem:[%s6891_s1 + $0x348] sm:$0xf0]  ;;  %2664 = vmatpush.bf16.msrb.mxu0 %v3774_v63 }
 0x1b6   :  { %v2240_v21 = vpop.f32.mrf.mxu2  ;;  %v3710_v0 = vor.u32 %v4301_v34, %v3707_v55  ;;  %2707 = vmatpush.bf16.msrb.mxu1 %v3838_v8 }
 0x1b7   :  { %v2241_v50 = vadd.f32 %v2240_v21, %v5950_v5 }
 0x1b8   :  { %v2283_v6 = vpop.f32.mrf.mxu3  ;;  %v2186_v56 = vpop.f32.mrf.mxu0  ;;  %2621 = vmatpush.bf16.msrb.mxu3 %v3710_v0 }
 0x1b9   :  { %v2229_v27 = vpop.f32.mrf.mxu1  ;;  %v2284_v19 = vadd.f32 %v2283_v6, %v2241_v50  ;;  %v4315_v50 = vld [vmem:[%s6891_s1 + $0x3b4] sm:$0xf] }
 0x1ba   :  { %v3766_v4 = vor.u32 %v4315_v50, %v3763_v26 }
 0x1bc   :  { %2665 = vmatpush.bf16.msrb.mxu0 %v3766_v4  ;;  %v4279_v4 = vld [vmem:[%s6891_s1 + $0x294] sm:$0xf] }
 0x1be   :  { %v2242_v52 = vpop.f32.mrf.mxu2 }
 0x1bf   :  { %v2243_v13 = vadd.f32 %v2242_v52, %v5975_v15  ;;  %v3635_v15 = vld [vmem:[%s6891_s1 + $0x2b8] sm:$0xf0]  ;;  %v4331_v52 = vld [vmem:[%s6891_s1 + $0x434] sm:$0xf] }
 0x1c0   :  { %v2285_v5 = vpop.f32.mrf.mxu3  ;;  %v2326_v58 = vpop.f32.mrf.mxu0 }
 0x1c1   :  { %v2327_v32 = vadd.f32 %v2326_v58, %v2284_v19  ;;  %v6300_v12 = vpop.f32.mrf.mxu1  ;;  %v2286_v21 = vadd.f32 %v2285_v5, %v2243_v13 }
 0x1c3   :  { %v2919_v14 = vmax.f32 %v2327_v32, 0.0  ;;  %2421 = vmatmul.bf16.gmra.mxu2 %v4833_v59  ;;  %2502 = vmatmul.bf16.gmra.mxu0 %v4967_v62  ;;  %v4299_v59 = vld [vmem:[%s6891_s1 + $0x334] sm:$0xf] }
 0x1c4   :  { %2545 = vmatmul.bf16.gmra.mxu1 %v5029_v35  ;;  %v3638_v35 = vor.u32 %v4283_v25, %v3635_v15 }
 0x1c5   :  { %2464 = vmatmul.bf16.gmra.mxu3 %v5027_v30  ;;  %2945 = vst [vmem:[%s6894_s3] sm:$0xff] %v2919_v14  ;;  %v3699_v30 = vld [vmem:[%s6891_s1 + $0x338] sm:$0xf0]  ;;  %v4281_v14 = vld [vmem:[%s6891_s1 + $0x2a4] sm:$0xf] }
 0x1c6   :  { %v2245_v62 = vpop.f32.mrf.mxu2  ;;  %v3702_v6 = vor.u32 %v4299_v59, %v3699_v30  ;;  %2579 = vmatpush.bf16.msrb.mxu2 %v3638_v35 }
 0x1c7   :  { %v2246_v0 = vadd.f32 %v2245_v62, %v6008_v43  ;;  %v3827_v43 = vld [vmem:[%s6891_s1 + $0x438] sm:$0xf0] }
 0x1c8   :  { %v2288_v36 = vpop.f32.mrf.mxu3  ;;  %v2328_v34 = vpop.f32.mrf.mxu0  ;;  %2622 = vmatpush.bf16.msrb.mxu3 %v3702_v6  ;;  %v3830_v19 = vor.u32 %v4331_v52, %v3827_v43  ;;  %v4313_v6 = vld [vmem:[%s6891_s1 + $0x3a4] sm:$0xf]  ;;  %v3619_v52 = vld [vmem:[%s6891_s1 + $0x298] sm:$0xf0] }
 0x1c9   :  { %v2329_v55 = vadd.f32 %v2328_v34, %v2286_v21  ;;  %v6322_v56 = vpop.f32.mrf.mxu1  ;;  %v2289_v63 = vadd.f32 %v2288_v36, %v2246_v0  ;;  %v3755_v34 = vld [vmem:[%s6891_s1 + $0x3a8] sm:$0xf0] }
 0x1ca   :  { %2708 = vmatpush.bf16.msrb.mxu1 %v3830_v19  ;;  %v3758_v0 = vor.u32 %v4313_v6, %v3755_v34 }
 0x1cb   :  { %v2921_v27 = vmax.f32 %v2329_v55, 0.0 }
 0x1cc   :  { %2666 = vmatpush.bf16.msrb.mxu0 %v3758_v0  ;;  %v3675_v0 = vld [vmem:[%s6891_s1 + $0x308] sm:$0xf0] }
 0x1cd   :  { %2947 = vst [vmem:[%s6894_s3 + $0x10] sm:$0xff] %v2921_v27  ;;  %v4329_v27 = vld [vmem:[%s6891_s1 + $0x424] sm:$0xf] }
 0x1ce   :  { %v2247_v54 = vpop.f32.mrf.mxu2 }
 0x1cf   :  { %v2248_v32 = vadd.f32 %v2247_v54, %v6033_v18  ;;  %v3627_v18 = vld [vmem:[%s6891_s1 + $0x2a8] sm:$0xf0] }
 0x1d0   :  { %v2290_v28 = vpop.f32.mrf.mxu3  ;;  %v2331_v5 = vpop.f32.mrf.mxu0 }
 0x1d1   :  { %v2332_v8 = vadd.f32 %v2331_v5, %v2289_v63  ;;  %v6340_v58 = vpop.f32.mrf.mxu1  ;;  %v3622_v63 = vor.u32 %v4279_v4, %v3619_v52  ;;  %v6995_v52 = vld [vmem:[#allocation8_spill] sm:$0xff] }
 0x1d3   :  { %v2923_v13 = vmax.f32 %v2332_v8, 0.0  ;;  %2426 = vmatmul.bf16.gmra.mxu2 %v4905_v33  ;;  %2507 = vmatmul.bf16.gmra.mxu0 %v5033_v37  ;;  %v3630_v33 = vor.u32 %v4281_v14, %v3627_v18  ;;  %v4297_v37 = vld [vmem:[%s6891_s1 + $0x324] sm:$0xf] }
 0x1d4   :  { %2550 = vmatmul.bf16.gmra.mxu1 %v5083_v2  ;;  %v2291_v2 = vadd.f32 %v2290_v28, %v2248_v32  ;;  %v4295_v32 = vld [vmem:[%s6891_s1 + $0x314] sm:$0xf] }
 0x1d5   :  { %2469 = vmatmul.bf16.gmra.mxu3 %v5081_v1  ;;  %2949 = vst [vmem:[%s6894_s3 + $0x20] sm:$0xff] %v2923_v13  ;;  %v3691_v1 = vld [vmem:[%s6891_s1 + $0x328] sm:$0xf0]  ;;  %2580 = vmatpush.bf16.msrb.mxu2 %v3630_v33  ;;  %v3747_v33 = vld [vmem:[%s6891_s1 + $0x398] sm:$0xf0] }
 0x1d6   :  { %v2250_v25 = vpop.f32.mrf.mxu2  ;;  %v3694_v59 = vor.u32 %v4297_v37, %v3691_v1  ;;  %v4327_v37 = vld [vmem:[%s6891_s1 + $0x414] sm:$0xf] }
 0x1d7   :  { %v2251_v21 = vadd.f32 %v2250_v25, %v6072_v57  ;;  %v3819_v57 = vld [vmem:[%s6891_s1 + $0x428] sm:$0xf0]  ;;  %v4311_v25 = vld [vmem:[%s6891_s1 + $0x394] sm:$0xf] }
 0x1d8   :  { %v2293_v15 = vpop.f32.mrf.mxu3  ;;  %v2333_v62 = vpop.f32.mrf.mxu0  ;;  %2623 = vmatpush.bf16.msrb.mxu3 %v3694_v59  ;;  %v3822_v54 = vor.u32 %v4329_v27, %v3819_v57  ;;  %v3750_v1 = vor.u32 %v4311_v25, %v3747_v33  ;;  %v3923_v25 = vld [vmem:[%s6891_s1 + $0x4f8] sm:$0xf0] }
 0x1d9   :  { %v2334_v35 = vadd.f32 %v2333_v62, %v2291_v2  ;;  %v6362_v30 = vpop.f32.mrf.mxu1  ;;  %v2294_v50 = vadd.f32 %v2293_v15, %v2251_v21  ;;  %2581 = vmatpush.bf16.msrb.mxu2 %v3622_v63  ;;  %v3811_v2 = vld [vmem:[%s6891_s1 + $0x418] sm:$0xf0]  ;;  %v3611_v21 = vld [vmem:[%s6891_s1 + $0x288] sm:$0xf0]  ;;  %v4309_v63 = vld [vmem:[%s6891_s1 + $0x384] sm:$0xf] }
 0x1da   :  { %2709 = vmatpush.bf16.msrb.mxu1 %v3822_v54  ;;  %v3814_v62 = vor.u32 %v4327_v37, %v3811_v2  ;;  %2667 = vmatpush.bf16.msrb.mxu0 %v3750_v1  ;;  %v4371_v1 = vld [vmem:[%s6891_s1 + $0x574] sm:$0xf] }
 0x1db   :  { %v2925_v36 = vmax.f32 %v2334_v35, 0.0  ;;  %v4277_v35 = vld [vmem:[%s6891_s1 + $0x284] sm:$0xf] }
 0x1dc   :  { %v3614_v6 = vor.u32 %v4277_v35, %v3611_v21 }
 0x1dd   :  { %2951 = vst [vmem:[%s6894_s3 + $0x30] sm:$0xff] %v2925_v36 }
 0x1de   :  { %v2252_v55 = vpop.f32.mrf.mxu2  ;;  %2710 = vmatpush.bf16.msrb.mxu1 %v3814_v62  ;;  %2582 = vmatpush.bf16.msrb.mxu2 %v3614_v6 }
 0x1df   :  { %v2253_v5 = vadd.f32 %v2252_v55, %v6097_v42  ;;  %v3683_v42 = vld [vmem:[%s6891_s1 + $0x318] sm:$0xf0]  ;;  %v4293_v55 = vld [vmem:[%s6891_s1 + $0x304] sm:$0xf] }
 0x1e0   :  { %v2295_v26 = vpop.f32.mrf.mxu3  ;;  %v2336_v43 = vpop.f32.mrf.mxu0  ;;  %v3678_v57 = vor.u32 %v4293_v55, %v3675_v0  ;;  %v6999_v55 = vld [vmem:[#allocation12_spill] sm:$0xff]  ;;  %v7000_v0 = vld [vmem:[#allocation11_spill] sm:$0xff] }
 0x1e1   :  { %v2337_v28 = vadd.f32 %v2336_v43, %v2294_v50  ;;  %v6386_v19 = vpop.f32.mrf.mxu1  ;;  %v2296_v14 = vadd.f32 %v2295_v26, %v2253_v5  ;;  %v6996_v43 = vld [vmem:[#allocation7_spill] sm:$0xff] }
 0x1e2   :  { %v3803_v5 = vld [vmem:[%s6891_s1 + $0x408] sm:$0xf0] }
 0x1e3   :  { %v2927_v8 = vmax.f32 %v2337_v28, 0.0  ;;  %2431 = vmatmul.bf16.gmra.mxu2 %v4604_v9  ;;  %2512 = vmatmul.bf16.gmra.mxu0 %v5087_v10  ;;  %v3686_v9 = vor.u32 %v4295_v32, %v3683_v42 }
 0x1e4   :  { %2555 = vmatmul.bf16.gmra.mxu1 %v5143_v40 }
 0x1e5   :  { %2474 = vmatmul.bf16.gmra.mxu3 %v5141_v39  ;;  %2953 = vst [vmem:[%s6894_s3 + $0x40] sm:$0xff] %v2927_v8 }
 0x1e6   :  { %v2255_v13 = vpop.f32.mrf.mxu2  ;;  %2624 = vmatpush.bf16.msrb.mxu3 %v3686_v9 }
 0x1e7   :  { %v2256_v15 = vadd.f32 %v2255_v13, %v6136_v46 }
 0x1e8   :  { %v2298_v10 = vpop.f32.mrf.mxu3  ;;  %v2338_v18 = vpop.f32.mrf.mxu0 }
 0x1e9   :  { %v2339_v40 = vadd.f32 %v2338_v18, %v2296_v14  ;;  %v6402_v39 = vpop.f32.mrf.mxu1  ;;  %v2299_v34 = vadd.f32 %v2298_v10, %v2256_v15 }
 0x1ea   :  { %2625 = vmatpush.bf16.msrb.mxu3 %v3678_v57 }
 0x1eb   :  { %v2929_v59 = vmax.f32 %v2339_v40, 0.0  ;;  %v4355_v40 = vld [vmem:[%s6891_s1 + $0x4f4] sm:$0xf] }
 0x1ec   :  { %v3926_v37 = vor.u32 %v4355_v40, %v3923_v25 }
 0x1ed   :  { %2955 = vst [vmem:[%s6894_s3 + $0x50] sm:$0xff] %v2929_v59 }
 0x1ee   :  { %v2257_v36 = vpop.f32.mrf.mxu2  ;;  %2747 = vmatpush.bf16.msra.mxu2 %v3926_v37 }
 0x1ef   :  { %v2258_v54 = vadd.f32 %v2257_v36, %v6158_v60  ;;  %v3739_v60 = vld [vmem:[%s6891_s1 + $0x388] sm:$0xf0] }
 0x1f0   :  { %v2300_v46 = vpop.f32.mrf.mxu3  ;;  %v2341_v27 = vpop.f32.mrf.mxu0 }
 0x1f1   :  { %v2342_v50 = vadd.f32 %v2341_v27, %v2299_v34  ;;  %v6432_v26 = vpop.f32.mrf.mxu1  ;;  %v2301_v8 = vadd.f32 %v2300_v46, %v2258_v54  ;;  %v6997_v34 = vld [vmem:[#allocation2_spill] sm:$0xff]  ;;  %v4387_v27 = vld [vmem:[%s6891_s1 + $0x5f4] sm:$0xf] }
 0x1f2   :  { %v6998_v46 = vld [vmem:[#allocation10_spill] sm:$0xff]  ;;  %v4403_v54 = vld [vmem:[%s6891_s1 + $0x674] sm:$0xf] }
 0x1f3   :  { %v2931_v4 = vmax.f32 %v2342_v50, 0.0  ;;  %2436 = vmatmul.bf16.gmra.mxu2 %v4736_v7  ;;  %2517 = vmatmul.bf16.gmra.mxu0 %v5153_v44  ;;  %v3742_v7 = vor.u32 %v4309_v63, %v3739_v60  ;;  %v4325_v44 = vld [vmem:[%s6891_s1 + $0x404] sm:$0xf] }
 0x1f4   :  { %2560 = vmatmul.bf16.gmra.mxu1 %v6995_v52  ;;  %v3806_v42 = vor.u32 %v4325_v44, %v3803_v5  ;;  %v4353_v44 = vld [vmem:[%s6891_s1 + $0x4e4] sm:$0xf]  ;;  %v3915_v5 = vld [vmem:[%s6891_s1 + $0x4e8] sm:$0xf0] }
 0x1f5   :  { %2479 = vmatmul.bf16.gmra.mxu3 %v6996_v43  ;;  %2957 = vst [vmem:[%s6894_s3 + $0x60] sm:$0xff] %v2931_v4  ;;  %2668 = vmatpush.bf16.msrb.mxu0 %v3742_v7  ;;  %v4115_v4 = vld [vmem:[%s6891_s1 + $0x678] sm:$0xf0] }
 0x1f6   :  { %v2260_v28 = vpop.f32.mrf.mxu2  ;;  %2711 = vmatpush.bf16.msrb.mxu1 %v3806_v42  ;;  %v4118_v63 = vor.u32 %v4403_v54, %v4115_v4  ;;  %v3979_v42 = vld [vmem:[%s6891_s1 + $0x568] sm:$0xf0] }
 0x1f7   :  { %v2261_v10 = vadd.f32 %v2260_v28, %v6185_v53  ;;  %v3987_v53 = vld [vmem:[%s6891_s1 + $0x578] sm:$0xf0] }
 0x1f8   :  { %v2303_v32 = vpop.f32.mrf.mxu3  ;;  %v2343_v13 = vpop.f32.mrf.mxu0  ;;  %v3990_v59 = vor.u32 %v4371_v1, %v3987_v53 }
 0x1f9   :  { %v2344_v9 = vadd.f32 %v2343_v13, %v2301_v8  ;;  %v6454_v14 = vpop.f32.mrf.mxu1  ;;  %v2304_v2 = vadd.f32 %v2303_v32, %v2261_v10  ;;  %v4369_v8 = vld [vmem:[%s6891_s1 + $0x564] sm:$0xf]  ;;  %v3918_v32 = vor.u32 %v4353_v44, %v3915_v5 }
 0x1fa   :  { %2790 = vmatpush.bf16.msra.mxu3 %v3990_v59  ;;  %2876 = vmatpush.bf16.msra.mxu1 %v4118_v63  ;;  %v3982_v10 = vor.u32 %v4369_v8, %v3979_v42  ;;  %v4385_v59 = vld [vmem:[%s6891_s1 + $0x5e4] sm:$0xf] }
 0x1fb   :  { %v2933_v18 = vmax.f32 %v2344_v9, 0.0  ;;  %2748 = vmatpush.bf16.msra.mxu2 %v3918_v32 }
 0x1fd   :  { %2959 = vst [vmem:[%s6894_s3 + $0x70] sm:$0xff] %v2933_v18 }
 0x1fe   :  { %v2262_v33 = vpop.f32.mrf.mxu2  ;;  %2791 = vmatpush.bf16.msra.mxu3 %v3982_v10 }
 0x1ff   :  { %v2263_v36 = vadd.f32 %v2262_v33, %v6219_v41  ;;  %v4051_v41 = vld [vmem:[%s6891_s1 + $0x5f8] sm:$0xf0] }
 0x200   :  { %v2305_v15 = vpop.f32.mrf.mxu3  ;;  %v2346_v62 = vpop.f32.mrf.mxu0  ;;  %v4054_v50 = vor.u32 %v4387_v27, %v4051_v41  ;;  %v4351_v41 = vld [vmem:[%s6891_s1 + $0x4d4] sm:$0xf] }
 0x201   :  { %v2347_v35 = vadd.f32 %v2346_v62, %v2304_v2  ;;  %v6472_v21 = vpop.f32.mrf.mxu1  ;;  %v2306_v52 = vadd.f32 %v2305_v15, %v2263_v36  ;;  %v7001_v15 = vld [vmem:[#allocation14_spill] sm:$0xff]  ;;  %v4043_v62 = vld [vmem:[%s6891_s1 + $0x5e8] sm:$0xf0]  ;;  %v7004_v36 = vld [vmem:[#allocation16_spill] sm:$0xff] }
 0x202   :  { %2833 = vmatpush.bf16.msra.mxu0 %v4054_v50 }
 0x203   :  { %v2935_v6 = vmax.f32 %v2347_v35, 0.0  ;;  %2441 = vmatmul.bf16.gmra.mxu2 %v6997_v34  ;;  %2522 = vmatmul.bf16.gmra.mxu0 %v6998_v46  ;;  %v7003_v35 = vld [vmem:[#allocation15_spill] sm:$0xff] }
 0x204   :  { %2565 = vmatmul.bf16.gmra.mxu1 %v6999_v55  ;;  %v4107_v34 = vld [vmem:[%s6891_s1 + $0x668] sm:$0xf0] }
 0x205   :  { %2484 = vmatmul.bf16.gmra.mxu3 %v7000_v0  ;;  %2961 = vst [vmem:[%s6894_s3 + $0x80] sm:$0xff] %v2935_v6  ;;  %v4046_v6 = vor.u32 %v4385_v59, %v4043_v62  ;;  %v7007_v59 = vld [vmem:[#allocation20_spill] sm:$0xff]  ;;  %v7008_v62 = vld [vmem:[#allocation19_spill] sm:$0xff] }
 0x206   :  { %v2265_v57 = vpop.f32.mrf.mxu2 }
 0x207   :  { %v2266_v13 = vadd.f32 %v2265_v57, %v6224_v29  ;;  %v7002_v29 = vld [vmem:[#allocation3_spill] sm:$0xff]  ;;  %2834 = vmatpush.bf16.msra.mxu0 %v4046_v6  ;;  %v3907_v57 = vld [vmem:[%s6891_s1 + $0x4d8] sm:$0xf0] }
 0x208   :  { %v2308_v43 = vpop.f32.mrf.mxu3  ;;  %v2348_v60 = vpop.f32.mrf.mxu0  ;;  %v3910_v54 = vor.u32 %v4351_v41, %v3907_v57 }
 0x209   :  { %v2349_v28 = vadd.f32 %v2348_v60, %v2306_v52  ;;  %v6494_v7 = vpop.f32.mrf.mxu1  ;;  %v2309_v40 = vadd.f32 %v2308_v43, %v2266_v13  ;;  %v4367_v60 = vld [vmem:[%s6891_s1 + $0x554] sm:$0xf] }
 0x20a   :  { %2749 = vmatpush.bf16.msra.mxu2 %v3910_v54  ;;  %v4381_v54 = vld [vmem:[%s6891_s1 + $0x5c4] sm:$0xf] }
 0x20b   :  { %v2937_v9 = vmax.f32 %v2349_v28, 0.0  ;;  %v3971_v28 = vld [vmem:[%s6891_s1 + $0x558] sm:$0xf0] }
 0x20c   :  { %v3974_v44 = vor.u32 %v4367_v60, %v3971_v28  ;;  %v4091_v60 = vld [vmem:[%s6891_s1 + $0x648] sm:$0xf0] }
 0x20d   :  { %2963 = vst [vmem:[%s6894_s3 + $0x90] sm:$0xff] %v2937_v9 }
 0x20e   :  { %v2267_v18 = vpop.f32.mrf.mxu2  ;;  %2792 = vmatpush.bf16.msra.mxu3 %v3974_v44 }
 0x20f   :  { %v2268_v53 = vadd.f32 %v2267_v18, %v6249_v48  ;;  %v4401_v48 = vld [vmem:[%s6891_s1 + $0x664] sm:$0xf]  ;;  %v4383_v18 = vld [vmem:[%s6891_s1 + $0x5d4] sm:$0xf] }
 0x210   :  { %v2310_v25 = vpop.f32.mrf.mxu3  ;;  %v2351_v33 = vpop.f32.mrf.mxu0  ;;  %v4110_v46 = vor.u32 %v4401_v48, %v4107_v34 }
 0x211   :  { %v2352_v37 = vadd.f32 %v2351_v33, %v2309_v40  ;;  %v6512_v1 = vpop.f32.mrf.mxu1  ;;  %v2311_v0 = vadd.f32 %v2310_v25, %v2268_v53  ;;  %v4035_v40 = vld [vmem:[%s6891_s1 + $0x5d8] sm:$0xf0]  ;;  %v4399_v25 = vld [vmem:[%s6891_s1 + $0x654] sm:$0xf] }
 0x212   :  { %2877 = vmatpush.bf16.msra.mxu1 %v4110_v46  ;;  %v4038_v33 = vor.u32 %v4383_v18, %v4035_v40 }
 0x213   :  { %v2939_v2 = vmax.f32 %v2352_v37, 0.0  ;;  %2527 = vmatmul.bf16.gmra.mxu0 %v7001_v15  ;;  %2583 = vmatmul.bf16.vlgmr.msrb.gmra.mxu2 %v7002_v29  ;;  %v4099_v37 = vld [vmem:[%s6891_s1 + $0x658] sm:$0xf0]  ;;  %v7006_v15 = vld [vmem:[#allocation18_spill] sm:$0xff] }
 0x214   :  { %2570 = vmatmul.bf16.gmra.mxu1 %v7003_v35  ;;  %v4102_v29 = vor.u32 %v4399_v25, %v4099_v37  ;;  %v4349_v35 = vld [vmem:[%s6891_s1 + $0x4c4] sm:$0xf]  ;;  %2835 = vmatpush.bf16.msra.mxu0 %v4038_v33  ;;  %v7009_v25 = vld [vmem:[#allocation5_spill] sm:$0xff] }
 0x215   :  { %2626 = vmatmul.bf16.vlgmr.msrb.gmra.mxu3 %v7004_v36  ;;  %2965 = vst [vmem:[%s6894_s3 + $0xa0] sm:$0xff] %v2939_v2  ;;  %v7005_v2 = vld [vmem:[#allocation4_spill] sm:$0xff]  ;;  %v3899_v36 = vld [vmem:[%s6891_s1 + $0x4c8] sm:$0xf0]  ;;  %v7010_v33 = vld [vmem:[#allocation22_spill] sm:$0xff] }
 0x216   :  { %v2270_v55 = vpop.f32.mrf.mxu2  ;;  %2878 = vmatpush.bf16.msra.mxu1 %v4102_v29  ;;  %v3902_v48 = vor.u32 %v4349_v35, %v3899_v36  ;;  %v3891_v37 = vld [vmem:[%s6891_s1 + $0x4b8] sm:$0xf0]  ;;  %v4363_v29 = vld [vmem:[%s6891_s1 + $0x534] sm:$0xf] }
 0x217   :  { %v2271_v43 = vadd.f32 %v2270_v55, %v6269_v38  ;;  %v4421_v38 = vld [vmem:[%s6893_s2] sm:$0x3] }
 0x218   :  { %v2313_v27 = vpop.f32.mrf.mxu3  ;;  %v2353_v50 = vpop.f32.mrf.mxu0  ;;  %v6555_v42 = vperm.slane %v4421_v38, 1  ;;  %2750 = vmatpush.bf16.msra.mxu2 %v3902_v48 }
 0x219   :  { %v2354_v4 = vadd.f32 %v2353_v50, %v2311_v0  ;;  %v6540_v52 = vpop.f32.mrf.mxu1  ;;  %v2314_v8 = vadd.f32 %v2313_v27, %v2271_v43  ;;  %v4365_v0 = vld [vmem:[%s6891_s1 + $0x544] sm:$0xf]  ;;  %v3963_v27 = vld [vmem:[%s6891_s1 + $0x548] sm:$0xf0] }
 0x21a   :  { %v2370_v6 = vadd.f32 %v6300_v12, %v6555_v42  ;;  %v3966_v41 = vor.u32 %v4365_v0, %v3963_v27  ;;  %v4397_v43 = vld [vmem:[%s6891_s1 + $0x644] sm:$0xf]  ;;  %v2372_v28 = vadd.f32 %v6322_v56, %v6555_v42  ;;  %v4347_v56 = vld [vmem:[%s6891_s1 + $0x4b4] sm:$0xf] }
 0x21b   :  { %v2941_v63 = vmax.f32 %v2354_v4, 0.0  ;;  %v4027_v4 = vld [vmem:[%s6891_s1 + $0x5c8] sm:$0xf0]  ;;  %v4094_v44 = vor.u32 %v4397_v43, %v4091_v60 }
 0x21c   :  { %2793 = vmatpush.bf16.msra.mxu3 %v3966_v41  ;;  %v4395_v41 = vld [vmem:[%s6891_s1 + $0x634] sm:$0xf] }
 0x21d   :  { %2967 = vst [vmem:[%s6894_s3 + $0xb0] sm:$0xff] %v2941_v63  ;;  %v4030_v63 = vor.u32 %v4381_v54, %v4027_v4  ;;  %2879 = vmatpush.bf16.msra.mxu1 %v4094_v44  ;;  %v2377_v54 = vadd.f32 %v6362_v30, %v6555_v42  ;;  %v4345_v30 = vld [vmem:[%s6891_s1 + $0x4a4] sm:$0xf] }
 0x21e   :  { %v2272_v5 = vpop.f32.mrf.mxu2 }
 0x21f   :  { %2836 = vmatpush.bf16.msra.mxu0 %v4030_v63 }
 0x220   :  { %v2315_v32 = vpop.f32.mrf.mxu3  ;;  %v2356_v13 = vpop.f32.mrf.mxu0 }
 0x221   :  { %v2357_v9 = vadd.f32 %v2356_v13, %v2314_v8  ;;  %v6557_v10 = vpop.f32.mrf.mxu1 }
 0x223   :  { %v2943_v53 = vmax.f32 %v2357_v9, 0.0  ;;  %2588 = vmatmul.bf16.gmra.mxu2 %v7005_v2  ;;  %2669 = vmatmul.bf16.vlgmr.msrb.gmra.mxu0 %v7006_v15  ;;  %v7012_v2 = vld [vmem:[#allocation23_spill] sm:$0xff]  ;;  %v3894_v15 = vor.u32 %v4347_v56, %v3891_v37  ;;  %v2380_v56 = vadd.f32 %v6386_v19, %v6555_v42 }
 0x224   :  { %2712 = vmatmul.bf16.vlgmr.msrb.gmra.mxu1 %v7007_v59  ;;  %v3955_v59 = vld [vmem:[%s6891_s1 + $0x538] sm:$0xf0]  ;;  %v4011_v19 = vld [vmem:[%s6891_s1 + $0x5a8] sm:$0xf0] }
 0x225   :  { %2631 = vmatmul.bf16.gmra.mxu3 %v7008_v62  ;;  %2969 = vst [vmem:[%s6894_s3 + $0xc0] sm:$0xff] %v2943_v53  ;;  %v7011_v53 = vld [vmem:[#allocation24_spill] sm:$0xff]  ;;  %v2375_v62 = vadd.f32 %v6340_v58, %v6555_v42  ;;  %v3958_v35 = vor.u32 %v4363_v29, %v3955_v59  ;;  %2751 = vmatpush.bf16.msra.mxu2 %v3894_v15  ;;  %v4019_v58 = vld [vmem:[%s6891_s1 + $0x5b8] sm:$0xf0] }
 0x226   :  { %v2412_v34 = vpop.f32.mrf.mxu2 }
 0x227   :  { %v2413_v46 = vadd.f32 %v2412_v34, %v2370_v6  ;;  %2794 = vmatpush.bf16.msra.mxu3 %v3958_v35 }
 0x228   :  { %v2455_v55 = vpop.f32.mrf.mxu3  ;;  %v2358_v12 = vpop.f32.mrf.mxu0 }
 0x229   :  { %v2456_v57 = vadd.f32 %v2455_v55, %v2413_v46  ;;  %v2401_v50 = vpop.f32.mrf.mxu1  ;;  %v4379_v12 = vld [vmem:[%s6891_s1 + $0x5b4] sm:$0xf] }
 0x22a   :  { %v4083_v50 = vld [vmem:[%s6891_s1 + $0x638] sm:$0xf0] }
 0x22b   :  { %v4086_v4 = vor.u32 %v4395_v41, %v4083_v50  ;;  %v3875_v41 = vld [vmem:[%s6891_s1 + $0x498] sm:$0xf0] }
 0x22d   :  { %2880 = vmatpush.bf16.msra.mxu1 %v4086_v4 }
 0x22e   :  { %v2414_v5 = vpop.f32.mrf.mxu2 }
 0x22f   :  { %v2415_v8 = vadd.f32 %v2414_v5, %v2372_v28 }
 0x230   :  { %v2457_v32 = vpop.f32.mrf.mxu3  ;;  %v2498_v38 = vpop.f32.mrf.mxu0 }
 0x231   :  { %v2458_v13 = vadd.f32 %v2457_v32, %v2415_v8  ;;  %v2499_v9 = vadd.f32 %v2498_v38, %v2456_v57  ;;  %v2541_v18 = vpop.f32.mrf.mxu1  ;;  %v4022_v57 = vor.u32 %v4379_v12, %v4019_v58  ;;  %v7013_v38 = vld [vmem:[#allocation6_spill] sm:$0xff]  ;;  %v4343_v58 = vld [vmem:[%s6891_s1 + $0x494] sm:$0xf] }
 0x232   :  { %v3878_v50 = vor.u32 %v4343_v58, %v3875_v41 }
 0x233   :  { %v6606_v40 = vadd.f32 %v2541_v18, %v2499_v9  ;;  %2593 = vmatmul.bf16.gmra.mxu2 %v7009_v25  ;;  %2674 = vmatmul.bf16.gmra.mxu0 %v7010_v33  ;;  %v3883_v9 = vld [vmem:[%s6891_s1 + $0x4a8] sm:$0xf0]  ;;  %v4361_v18 = vld [vmem:[%s6891_s1 + $0x524] sm:$0xf] }
 0x234   :  { %2717 = vmatmul.bf16.gmra.mxu1 %v7011_v53  ;;  %2837 = vmatpush.bf16.msra.mxu0 %v4022_v57  ;;  %v3886_v25 = vor.u32 %v4345_v30, %v3883_v9  ;;  %v3947_v33 = vld [vmem:[%s6891_s1 + $0x528] sm:$0xf0] }
 0x235   :  { %2636 = vmatmul.bf16.gmra.mxu3 %v7012_v2  ;;  %v3950_v37 = vor.u32 %v4361_v18, %v3947_v33 }
 0x236   :  { %v2417_v36 = vpop.f32.mrf.mxu2  ;;  %2752 = vmatpush.bf16.msra.mxu2 %v3886_v25 }
 0x237   :  { %v2418_v6 = vadd.f32 %v2417_v36, %v2375_v62  ;;  %2795 = vmatpush.bf16.msra.mxu3 %v3950_v37  ;;  %v4393_v36 = vld [vmem:[%s6891_s1 + $0x624] sm:$0xf] }
 0x238   :  { %v2460_v48 = vpop.f32.mrf.mxu3  ;;  %v2500_v34 = vpop.f32.mrf.mxu0 }
 0x239   :  { %v2461_v46 = vadd.f32 %v2460_v48, %v2418_v6  ;;  %v2501_v55 = vadd.f32 %v2500_v34, %v2458_v13  ;;  %v2543_v0 = vpop.f32.mrf.mxu1  ;;  %v7014_v13 = vld [vmem:[#allocation26_spill] sm:$0xff]  ;;  %v4075_v48 = vld [vmem:[%s6891_s1 + $0x628] sm:$0xf0]  ;;  %v2382_v34 = vadd.f32 %v6402_v39, %v6555_v42 }
 0x23a   :  { %2753 = vmatpush.bf16.msra.mxu2 %v3878_v50  ;;  %v7019_v50 = vld [vmem:[#allocation13_spill] sm:$0xff] }
 0x23b   :  { %v6626_v27 = vadd.f32 %v2543_v0, %v2501_v55 }
 0x23e   :  { %v2419_v43 = vpop.f32.mrf.mxu2 }
 0x23f   :  { %v2420_v63 = vadd.f32 %v2419_v43, %v2377_v54 }
 0x240   :  { %v2462_v60 = vpop.f32.mrf.mxu3  ;;  %v2503_v28 = vpop.f32.mrf.mxu0 }
 0x241   :  { %v2463_v44 = vadd.f32 %v2462_v60, %v2420_v63  ;;  %v2504_v5 = vadd.f32 %v2503_v28, %v2461_v46  ;;  %v2546_v8 = vpop.f32.mrf.mxu1  ;;  %v4078_v46 = vor.u32 %v4393_v36, %v4075_v48  ;;  %v7015_v63 = vld [vmem:[#allocation9_spill] sm:$0xff]  ;;  %v7016_v60 = vld [vmem:[#allocation28_spill] sm:$0xff]  ;;  %v2387_v36 = vadd.f32 %v6454_v14, %v6555_v42 }
 0x242   :  { %v4359_v28 = vld [vmem:[%s6891_s1 + $0x514] sm:$0xf] }
 0x243   :  { %v6642_v32 = vadd.f32 %v2546_v8, %v2504_v5  ;;  %2598 = vmatmul.bf16.gmra.mxu2 %v7013_v38  ;;  %2679 = vmatmul.bf16.gmra.mxu0 %v7014_v13  ;;  %v7017_v5 = vld [vmem:[#allocation30_spill] sm:$0xff]  ;;  %v7018_v8 = vld [vmem:[#allocation29_spill] sm:$0xff]  ;;  %v2385_v13 = vadd.f32 %v6432_v26, %v6555_v42  ;;  %v4391_v26 = vld [vmem:[%s6891_s1 + $0x614] sm:$0xf] }
 0x244   :  { %2722 = vmatmul.bf16.gmra.mxu1 %v5561_v16 }
 0x245   :  { %2641 = vmatmul.bf16.gmra.mxu3 %v5559_v45  ;;  %v4377_v45 = vld [vmem:[%s6891_s1 + $0x5a4] sm:$0xf]  ;;  %2881 = vmatpush.bf16.msra.mxu1 %v4078_v46 }
 0x246   :  { %v2422_v53 = vpop.f32.mrf.mxu2  ;;  %v4014_v6 = vor.u32 %v4377_v45, %v4011_v19  ;;  %v3867_v45 = vld [vmem:[%s6891_s1 + $0x488] sm:$0xf0]  ;;  %v4357_v46 = vld [vmem:[%s6891_s1 + $0x504] sm:$0xf] }
 0x247   :  { %v2423_v2 = vadd.f32 %v2422_v53, %v2380_v56  ;;  %v4375_v53 = vld [vmem:[%s6891_s1 + $0x594] sm:$0xf] }
 0x248   :  { %v2465_v15 = vpop.f32.mrf.mxu3  ;;  %v2505_v29 = vpop.f32.mrf.mxu0  ;;  %2838 = vmatpush.bf16.msra.mxu0 %v4014_v6 }
 0x249   :  { %v2466_v59 = vadd.f32 %v2465_v15, %v2423_v2  ;;  %v2506_v62 = vadd.f32 %v2505_v29, %v2463_v44  ;;  %v2548_v16 = vpop.f32.mrf.mxu1  ;;  %v3939_v44 = vld [vmem:[%s6891_s1 + $0x518] sm:$0xf0] }
 0x24a   :  { %v3942_v38 = vor.u32 %v4359_v28, %v3939_v44  ;;  %v4003_v2 = vld [vmem:[%s6891_s1 + $0x598] sm:$0xf0]  ;;  %v4389_v28 = vld [vmem:[%s6891_s1 + $0x604] sm:$0xf]  ;;  %v2390_v44 = vadd.f32 %v6472_v21, %v6555_v42  ;;  %v2392_v21 = vadd.f32 %v6494_v7, %v6555_v42  ;;  %v2395_v7 = vadd.f32 %v6512_v1, %v6555_v42 }
 0x24b   :  { %v6662_v35 = vadd.f32 %v2548_v16, %v2506_v62  ;;  %v4006_v15 = vor.u32 %v4375_v53, %v4003_v2  ;;  %v4067_v29 = vld [vmem:[%s6891_s1 + $0x618] sm:$0xf0]  ;;  %v4341_v16 = vld [vmem:[%s6891_s1 + $0x484] sm:$0xf] }
 0x24c   :  { %2796 = vmatpush.bf16.msra.mxu3 %v3942_v38  ;;  %v4070_v62 = vor.u32 %v4391_v26, %v4067_v29  ;;  %v3870_v19 = vor.u32 %v4341_v16, %v3867_v45 }
 0x24d   :  { %2839 = vmatpush.bf16.msra.mxu0 %v4006_v15 }
 0x24e   :  { %v2424_v55 = vpop.f32.mrf.mxu2  ;;  %2882 = vmatpush.bf16.msra.mxu1 %v4070_v62  ;;  %2754 = vmatpush.bf16.msra.mxu2 %v3870_v19  ;;  %v7023_v19 = vld [vmem:[#allocation17_spill] sm:$0xff] }
 0x24f   :  { %v2425_v0 = vadd.f32 %v2424_v55, %v2382_v34  ;;  %v3931_v55 = vld [vmem:[%s6891_s1 + $0x508] sm:$0xf0] }
 0x250   :  { %v2467_v12 = vpop.f32.mrf.mxu3  ;;  %v2508_v57 = vpop.f32.mrf.mxu0 }
 0x251   :  { %v2468_v54 = vadd.f32 %v2467_v12, %v2425_v0  ;;  %v2509_v4 = vadd.f32 %v2508_v57, %v2466_v59  ;;  %v2551_v43 = vpop.f32.mrf.mxu1  ;;  %v3934_v12 = vor.u32 %v4357_v46, %v3931_v55 }
 0x253   :  { %v6684_v39 = vadd.f32 %v2551_v43, %v2509_v4  ;;  %2603 = vmatmul.bf16.gmra.mxu2 %v7015_v63  ;;  %2684 = vmatmul.bf16.gmra.mxu0 %v7016_v60  ;;  %v7021_v4 = vld [vmem:[#allocation34_spill] sm:$0xff]  ;;  %v7022_v43 = vld [vmem:[#allocation33_spill] sm:$0xff]  ;;  %v3995_v60 = vld [vmem:[%s6891_s1 + $0x588] sm:$0xf0] }
 0x254   :  { %2727 = vmatmul.bf16.gmra.mxu1 %v7017_v5  ;;  %2797 = vmatpush.bf16.msra.mxu3 %v3934_v12  ;;  %v4373_v63 = vld [vmem:[%s6891_s1 + $0x584] sm:$0xf] }
 0x255   :  { %2646 = vmatmul.bf16.gmra.mxu3 %v7018_v8  ;;  %v3998_v5 = vor.u32 %v4373_v63, %v3995_v60  ;;  %v4059_v8 = vld [vmem:[%s6891_s1 + $0x608] sm:$0xf0]  ;;  %v7025_v63 = vld [vmem:[#allocation38_spill] sm:$0xff]  ;;  %v7026_v60 = vld [vmem:[#allocation21_spill] sm:$0xff] }
 0x256   :  { %v2427_v30 = vpop.f32.mrf.mxu2 }
 0x257   :  { %v2428_v9 = vadd.f32 %v2427_v30, %v2385_v13  ;;  %v4062_v13 = vor.u32 %v4389_v28, %v4059_v8  ;;  %2840 = vmatpush.bf16.msra.mxu0 %v3998_v5  ;;  %v7027_v28 = vld [vmem:[#allocation39_spill] sm:$0xff] }
 0x258   :  { %v2470_v18 = vpop.f32.mrf.mxu3  ;;  %v2510_v25 = vpop.f32.mrf.mxu0 }
 0x259   :  { %v2471_v33 = vadd.f32 %v2470_v18, %v2428_v9  ;;  %v2511_v56 = vadd.f32 %v2510_v25, %v2468_v54  ;;  %v2553_v37 = vpop.f32.mrf.mxu1  ;;  %v7020_v54 = vld [vmem:[#allocation32_spill] sm:$0xff]  ;;  %2883 = vmatpush.bf16.msra.mxu1 %v4062_v13 }
 0x25b   :  { %v6710_v59 = vadd.f32 %v2553_v37, %v2511_v56 }
 0x25e   :  { %v2429_v6 = vpop.f32.mrf.mxu2 }
 0x25f   :  { %v2430_v48 = vadd.f32 %v2429_v6, %v2387_v36  ;;  %v7024_v36 = vld [vmem:[#allocation36_spill] sm:$0xff] }
 0x260   :  { %v2472_v34 = vpop.f32.mrf.mxu3  ;;  %v2513_v0 = vpop.f32.mrf.mxu0 }
 0x261   :  { %v2473_v58 = vadd.f32 %v2472_v34, %v2430_v48  ;;  %v2514_v41 = vadd.f32 %v2513_v0, %v2471_v33  ;;  %v2556_v57 = vpop.f32.mrf.mxu1 }
 0x263   :  { %v6726_v14 = vadd.f32 %v2556_v57, %v2514_v41  ;;  %2608 = vmatmul.bf16.gmra.mxu2 %v7019_v50  ;;  %2689 = vmatmul.bf16.gmra.mxu0 %v7020_v54  ;;  %v2397_v41 = vadd.f32 %v6540_v52, %v6555_v42  ;;  %v2400_v52 = vadd.f32 %v6557_v10, %v6555_v42  ;;  %v7031_v42 = vld [vmem:[#allocation44_spill] sm:$0xff]  ;;  %v7032_v10 = vld [vmem:[#allocation43_spill] sm:$0xff] }
 0x264   :  { %2732 = vmatmul.bf16.gmra.mxu1 %v7021_v4 }
 0x265   :  { %2651 = vmatmul.bf16.gmra.mxu3 %v7022_v43 }
 0x266   :  { %v2432_v38 = vpop.f32.mrf.mxu2 }
 0x267   :  { %v2433_v30 = vadd.f32 %v2432_v38, %v2390_v44  ;;  %v7028_v44 = vld [vmem:[#allocation40_spill] sm:$0xff] }
 0x268   :  { %v2475_v9 = vpop.f32.mrf.mxu3  ;;  %v2515_v18 = vpop.f32.mrf.mxu0 }
 0x269   :  { %v2476_v25 = vadd.f32 %v2475_v9, %v2433_v30  ;;  %v2516_v33 = vadd.f32 %v2515_v18, %v2473_v58  ;;  %v2558_v56 = vpop.f32.mrf.mxu1 }
 0x26b   :  { %v6746_v37 = vadd.f32 %v2558_v56, %v2516_v33 }
 0x26e   :  { %v2434_v53 = vpop.f32.mrf.mxu2 }
 0x26f   :  { %v2435_v2 = vadd.f32 %v2434_v53, %v2392_v21 }
 0x270   :  { %v2477_v26 = vpop.f32.mrf.mxu3  ;;  %v2518_v15 = vpop.f32.mrf.mxu0 }
 0x271   :  { %v2478_v29 = vadd.f32 %v2477_v26, %v2435_v2  ;;  %v2519_v62 = vadd.f32 %v2518_v15, %v2476_v25  ;;  %v2561_v16 = vpop.f32.mrf.mxu1  ;;  %v7029_v15 = vld [vmem:[#allocation25_spill] sm:$0xff] }
 0x273   :  { %v6750_v45 = vadd.f32 %v2561_v16, %v2519_v62  ;;  %2613 = vmatmul.bf16.gmra.mxu2 %v7023_v19  ;;  %2694 = vmatmul.bf16.gmra.mxu0 %v7024_v36 }
 0x274   :  { %2737 = vmatmul.bf16.gmra.mxu1 %v5762_v17 }
 0x275   :  { %2656 = vmatmul.bf16.gmra.mxu3 %v5760_v20 }
 0x276   :  { %v2437_v6 = vpop.f32.mrf.mxu2 }
 0x277   :  { %v2438_v48 = vadd.f32 %v2437_v6, %v2395_v7 }
 0x278   :  { %v2480_v34 = vpop.f32.mrf.mxu3  ;;  %v2520_v46 = vpop.f32.mrf.mxu0 }
 0x279   :  { %v2481_v55 = vadd.f32 %v2480_v34, %v2438_v48  ;;  %v2521_v0 = vadd.f32 %v2520_v46, %v2478_v29  ;;  %v2563_v12 = vpop.f32.mrf.mxu1  ;;  %v7030_v29 = vld [vmem:[#allocation42_spill] sm:$0xff] }
 0x27b   :  { %v6758_v58 = vadd.f32 %v2563_v12, %v2521_v0 }
 0x27e   :  { %v2439_v57 = vpop.f32.mrf.mxu2 }
 0x27f   :  { %v2440_v50 = vadd.f32 %v2439_v57, %v2397_v41 }
 0x280   :  { %v2482_v17 = vpop.f32.mrf.mxu3  ;;  %v2523_v54 = vpop.f32.mrf.mxu0 }
 0x281   :  { %v2483_v20 = vadd.f32 %v2482_v17, %v2440_v50  ;;  %v2524_v4 = vadd.f32 %v2523_v54, %v2481_v55  ;;  %v2566_v43 = vpop.f32.mrf.mxu1  ;;  %v7033_v50 = vld [vmem:[#allocation27_spill] sm:$0xff]  ;;  %v7034_v17 = vld [vmem:[#allocation45_spill] sm:$0xff] }
 0x283   :  { %v6762_v1 = vadd.f32 %v2566_v43, %v2524_v4  ;;  %2699 = vmatmul.bf16.gmra.mxu0 %v7025_v63  ;;  %2755 = vmatmul.bf16.vlgmr.msra.gmra.mxu2 %v7026_v60 }
 0x284   :  { %2742 = vmatmul.bf16.gmra.mxu1 %v7027_v28 }
 0x285   :  { %2798 = vmatmul.bf16.vlgmr.msra.gmra.mxu3 %v7028_v44 }
 0x286   :  { %v2442_v5 = vpop.f32.mrf.mxu2 }
 0x287   :  { %v2443_v8 = vadd.f32 %v2442_v5, %v2400_v52 }
 0x288   :  { %v2485_v38 = vpop.f32.mrf.mxu3  ;;  %v2525_v13 = vpop.f32.mrf.mxu0 }
 0x289   :  { %v2486_v30 = vadd.f32 %v2485_v38, %v2443_v8  ;;  %v2526_v9 = vadd.f32 %v2525_v13, %v2483_v20  ;;  %v2568_v18 = vpop.f32.mrf.mxu1 }
 0x28b   :  { %v6770_v25 = vadd.f32 %v2568_v18, %v2526_v9  ;;  %v7036_v9 = vld [vmem:[#allocation31_spill] sm:$0xff] }
 0x28e   :  { %v2444_v33 = vpop.f32.mrf.mxu2 }
 0x290   :  { %v2487_v56 = vpop.f32.mrf.mxu3  ;;  %v2528_v21 = vpop.f32.mrf.mxu0 }
 0x291   :  { %v2529_v53 = vadd.f32 %v2528_v21, %v2486_v30  ;;  %v2571_v2 = vpop.f32.mrf.mxu1 }
 0x293   :  { %v6772_v26 = vadd.f32 %v2571_v2, %v2529_v53  ;;  %2760 = vmatmul.bf16.gmra.mxu2 %v7029_v15  ;;  %2841 = vmatmul.bf16.vlgmr.msra.gmra.mxu0 %v7030_v29 }
 0x294   :  { %2884 = vmatmul.bf16.vlgmr.msra.gmra.mxu1 %v7031_v42 }
 0x295   :  { %2803 = vmatmul.bf16.gmra.mxu3 %v7032_v10 }
 0x296   :  { %v2584_v62 = vpop.f32.mrf.mxu2 }
 0x297   :  { %v2585_v16 = vadd.f32 %v2584_v62, %v6606_v40  ;;  %v7035_v40 = vld [vmem:[#allocation46_spill] sm:$0xff] }
 0x298   :  { %v2627_v19 = vpop.f32.mrf.mxu3  ;;  %v2530_v36 = vpop.f32.mrf.mxu0 }
 0x299   :  { %v2628_v7 = vadd.f32 %v2627_v19, %v2585_v16  ;;  %v2573_v6 = vpop.f32.mrf.mxu1 }
 0x29e   :  { %v2586_v48 = vpop.f32.mrf.mxu2 }
 0x29f   :  { %v2587_v34 = vadd.f32 %v2586_v48, %v6626_v27 }
 0x2a0   :  { %v2629_v46 = vpop.f32.mrf.mxu3  ;;  %v2670_v55 = vpop.f32.mrf.mxu0 }
 0x2a1   :  { %v2630_v0 = vadd.f32 %v2629_v46, %v2587_v34  ;;  %v2671_v12 = vadd.f32 %v2670_v55, %v2628_v7  ;;  %v2713_v41 = vpop.f32.mrf.mxu1 }
 0x2a3   :  { %v6780_v57 = vadd.f32 %v2713_v41, %v2671_v12  ;;  %2765 = vmatmul.bf16.gmra.mxu2 %v7033_v50  ;;  %2846 = vmatmul.bf16.gmra.mxu0 %v7034_v17 }
 0x2a4   :  { %2889 = vmatmul.bf16.gmra.mxu1 %v5946_v49 }
 0x2a5   :  { %2808 = vmatmul.bf16.gmra.mxu3 %v7035_v40 }
 0x2a6   :  { %v2589_v54 = vpop.f32.mrf.mxu2 }
 0x2a7   :  { %v2590_v20 = vadd.f32 %v2589_v54, %v6642_v32  ;;  %v7037_v32 = vld [vmem:[#allocation47_spill] sm:$0xff]  ;;  %v7041_v54 = vld [vmem:[#allocation50_spill] sm:$0xff] }
 0x2a8   :  { %v2632_v4 = vpop.f32.mrf.mxu3  ;;  %v2672_v27 = vpop.f32.mrf.mxu0 }
 0x2a9   :  { %v2633_v43 = vadd.f32 %v2632_v4, %v2590_v20  ;;  %v2673_v63 = vadd.f32 %v2672_v27, %v2630_v0  ;;  %v2715_v60 = vpop.f32.mrf.mxu1  ;;  %v7042_v20 = vld [vmem:[#allocation49_spill] sm:$0xff] }
 0x2ab   :  { %v6787_v28 = vadd.f32 %v2715_v60, %v2673_v63 }
 0x2ae   :  { %v2591_v44 = vpop.f32.mrf.mxu2 }
 0x2af   :  { %v2592_v52 = vadd.f32 %v2591_v44, %v6662_v35 }
 0x2b0   :  { %v2634_v5 = vpop.f32.mrf.mxu3  ;;  %v2675_v8 = vpop.f32.mrf.mxu0 }
 0x2b1   :  { %v2635_v38 = vadd.f32 %v2634_v5, %v2592_v52  ;;  %v2676_v13 = vadd.f32 %v2675_v8, %v2633_v43  ;;  %v2718_v49 = vpop.f32.mrf.mxu1 }
 0x2b3   :  { %v6790_v30 = vadd.f32 %v2718_v49, %v2676_v13  ;;  %2770 = vmatmul.bf16.gmra.mxu2 %v7036_v9  ;;  %2851 = vmatmul.bf16.gmra.mxu0 %v7037_v32 }
 0x2b4   :  { %2894 = vmatmul.bf16.gmra.mxu1 %v6004_v23 }
 0x2b5   :  { %2813 = vmatmul.bf16.gmra.mxu3 %v6002_v51  ;;  %v7038_v51 = vld [vmem:[#allocation35_spill] sm:$0xff] }
 0x2b6   :  { %v2594_v18 = vpop.f32.mrf.mxu2 }
 0x2b7   :  { %v2595_v33 = vadd.f32 %v2594_v18, %v6684_v39 }
 0x2b8   :  { %v2637_v56 = vpop.f32.mrf.mxu3  ;;  %v2677_v35 = vpop.f32.mrf.mxu0 }
 0x2b9   :  { %v2638_v21 = vadd.f32 %v2637_v56, %v2595_v33  ;;  %v2678_v53 = vadd.f32 %v2677_v35, %v2635_v38  ;;  %v2720_v2 = vpop.f32.mrf.mxu1  ;;  %v7043_v33 = vld [vmem:[#allocation41_spill] sm:$0xff] }
 0x2bb   :  { %v6797_v15 = vadd.f32 %v2720_v2, %v2678_v53 }
 0x2be   :  { %v2596_v29 = vpop.f32.mrf.mxu2 }
 0x2bf   :  { %v2597_v42 = vadd.f32 %v2596_v29, %v6710_v59 }
 0x2c0   :  { %v2639_v10 = vpop.f32.mrf.mxu3  ;;  %v2680_v62 = vpop.f32.mrf.mxu0 }
 0x2c1   :  { %v2640_v16 = vadd.f32 %v2639_v10, %v2597_v42  ;;  %v2681_v19 = vadd.f32 %v2680_v62, %v2638_v21  ;;  %v2723_v23 = vpop.f32.mrf.mxu1 }
 0x2c3   :  { %v6800_v36 = vadd.f32 %v2723_v23, %v2681_v19  ;;  %2775 = vmatmul.bf16.gmra.mxu2 %v7038_v51  ;;  %2856 = vmatmul.bf16.gmra.mxu0 %v6006_v61 }
 0x2c4   :  { %2899 = vmatmul.bf16.gmra.mxu1 %v6062_v47 }
 0x2c5   :  { %2818 = vmatmul.bf16.gmra.mxu3 %v6060_v22  ;;  %v7039_v22 = vld [vmem:[#allocation37_spill] sm:$0xff] }
 0x2c6   :  { %v2599_v39 = vpop.f32.mrf.mxu2 }
 0x2c7   :  { %v2600_v7 = vadd.f32 %v2599_v39, %v6726_v14  ;;  %v7040_v14 = vld [vmem:[#allocation48_spill] sm:$0xff] }
 0x2c8   :  { %v2642_v6 = vpop.f32.mrf.mxu3  ;;  %v2682_v59 = vpop.f32.mrf.mxu0 }
 0x2c9   :  { %v2643_v48 = vadd.f32 %v2642_v6, %v2600_v7  ;;  %v2683_v34 = vadd.f32 %v2682_v59, %v2640_v16  ;;  %v2725_v46 = vpop.f32.mrf.mxu1 }
 0x2cb   :  { %v6807_v55 = vadd.f32 %v2725_v46, %v2683_v34 }
 0x2ce   :  { %v2601_v0 = vpop.f32.mrf.mxu2 }
 0x2cf   :  { %v2602_v12 = vadd.f32 %v2601_v0, %v6746_v37 }
 0x2d0   :  { %v2644_v41 = vpop.f32.mrf.mxu3  ;;  %v2685_v50 = vpop.f32.mrf.mxu0 }
 0x2d1   :  { %v2645_v61 = vadd.f32 %v2644_v41, %v2602_v12  ;;  %v2686_v17 = vadd.f32 %v2685_v50, %v2643_v48  ;;  %v2728_v47 = vpop.f32.mrf.mxu1 }
 0x2d3   :  { %v6810_v40 = vadd.f32 %v2728_v47, %v2686_v17  ;;  %2780 = vmatmul.bf16.gmra.mxu2 %v7039_v22  ;;  %2861 = vmatmul.bf16.gmra.mxu0 %v7040_v14 }
 0x2d4   :  { %2904 = vmatmul.bf16.gmra.mxu1 %v7041_v54 }
 0x2d5   :  { %2823 = vmatmul.bf16.gmra.mxu3 %v7042_v20 }
 0x2d6   :  { %v2604_v4 = vpop.f32.mrf.mxu2 }
 0x2d7   :  { %v2605_v27 = vadd.f32 %v2604_v4, %v6750_v45  ;;  %v7044_v45 = vld [vmem:[#allocation51_spill] sm:$0xff] }
 0x2d8   :  { %v2647_v43 = vpop.f32.mrf.mxu3  ;;  %v2687_v37 = vpop.f32.mrf.mxu0 }
 0x2d9   :  { %v2648_v63 = vadd.f32 %v2647_v43, %v2605_v27  ;;  %v2688_v60 = vadd.f32 %v2687_v37, %v2645_v61  ;;  %v2730_v44 = vpop.f32.mrf.mxu1 }
 0x2db   :  { %v6817_v52 = vadd.f32 %v2730_v44, %v2688_v60 }
 0x2de   :  { %v2606_v5 = vpop.f32.mrf.mxu2 }
 0x2df   :  { %v2607_v8 = vadd.f32 %v2606_v5, %v6758_v58 }
 0x2e0   :  { %v2649_v38 = vpop.f32.mrf.mxu3  ;;  %v2690_v13 = vpop.f32.mrf.mxu0 }
 0x2e1   :  { %v2650_v49 = vadd.f32 %v2649_v38, %v2607_v8  ;;  %v2691_v9 = vadd.f32 %v2690_v13, %v2648_v63  ;;  %v2733_v32 = vpop.f32.mrf.mxu1 }
 0x2e3   :  { %v6820_v18 = vadd.f32 %v2733_v32, %v2691_v9  ;;  %2785 = vmatmul.bf16.gmra.mxu2 %v7043_v33  ;;  %2866 = vmatmul.bf16.gmra.mxu0 %v7044_v45 }
 0x2e4   :  { %2909 = vmatmul.bf16.gmra.mxu1 %v6181_v3 }
 0x2e5   :  { %2828 = vmatmul.bf16.gmra.mxu3 %v6179_v24 }
 0x2e6   :  { %v2609_v56 = vpop.f32.mrf.mxu2 }
 0x2e7   :  { %v2610_v35 = vadd.f32 %v2609_v56, %v6762_v1 }
 0x2e8   :  { %v2652_v21 = vpop.f32.mrf.mxu3  ;;  %v2692_v58 = vpop.f32.mrf.mxu0 }
 0x2e9   :  { %v2653_v53 = vadd.f32 %v2652_v21, %v2610_v35  ;;  %v2693_v2 = vadd.f32 %v2692_v58, %v2650_v49  ;;  %v2735_v29 = vpop.f32.mrf.mxu1 }
 0x2eb   :  { %v6827_v42 = vadd.f32 %v2735_v29, %v2693_v2 }
 0x2ee   :  { %v2611_v10 = vpop.f32.mrf.mxu2 }
 0x2ef   :  { %v2612_v62 = vadd.f32 %v2611_v10, %v6770_v25 }
 0x2f0   :  { %v2654_v16 = vpop.f32.mrf.mxu3  ;;  %v2695_v19 = vpop.f32.mrf.mxu0 }
 0x2f1   :  { %v2655_v23 = vadd.f32 %v2654_v16, %v2612_v62  ;;  %v2696_v51 = vadd.f32 %v2695_v19, %v2653_v53  ;;  %v2738_v3 = vpop.f32.mrf.mxu1 }
 0x2f3   :  { %v6830_v39 = vadd.f32 %v2738_v3, %v2696_v51  ;;  %2871 = vmatmul.bf16.gmra.mxu0 %v6183_v31 }
 0x2f4   :  { %2914 = vmatmul.bf16.gmra.mxu1 %v6222_v11 }
 0x2f6   :  { %v2614_v24 = vpop.f32.mrf.mxu2 }
 0x2f7   :  { %v2615_v1 = vadd.f32 %v2614_v24, %v6772_v26 }
 0x2f8   :  { %v2657_v7 = vpop.f32.mrf.mxu3  ;;  %v2697_v6 = vpop.f32.mrf.mxu0 }
 0x2f9   :  { %v2658_v59 = vadd.f32 %v2657_v7, %v2615_v1  ;;  %v2698_v48 = vadd.f32 %v2697_v6, %v2655_v23  ;;  %v2740_v34 = vpop.f32.mrf.mxu1 }
 0x2fb   :  { %v6835_v25 = vadd.f32 %v2740_v34, %v2698_v48 }
 0x2fe   :  { %v2616_v46 = vpop.f32.mrf.mxu2 }
 0x300   :  { %v2659_v0 = vpop.f32.mrf.mxu3  ;;  %v2700_v12 = vpop.f32.mrf.mxu0 }
 0x301   :  { %v2701_v41 = vadd.f32 %v2700_v12, %v2658_v59  ;;  %v2743_v50 = vpop.f32.mrf.mxu1 }
 0x303   :  { %v6837_v61 = vadd.f32 %v2743_v50, %v2701_v41 }
 0x306   :  { %v2756_v31 = vpop.f32.mrf.mxu2 }
 0x307   :  { %v2757_v26 = vadd.f32 %v2756_v31, %v6780_v57 }
 0x308   :  { %v2799_v17 = vpop.f32.mrf.mxu3  ;;  %v2702_v11 = vpop.f32.mrf.mxu0 }
 0x309   :  { %v2745_v47 = vpop.f32.mrf.mxu1  ;;  %v2800_v14 = vadd.f32 %v2799_v17, %v2757_v26 }
 0x30e   :  { %v2758_v22 = vpop.f32.mrf.mxu2 }
 0x30f   :  { %v2759_v43 = vadd.f32 %v2758_v22, %v6787_v28 }
 0x310   :  { %v2801_v54 = vpop.f32.mrf.mxu3  ;;  %v2842_v20 = vpop.f32.mrf.mxu0 }
 0x311   :  { %v2843_v4 = vadd.f32 %v2842_v20, %v2800_v14  ;;  %v2885_v27 = vpop.f32.mrf.mxu1  ;;  %v2802_v44 = vadd.f32 %v2801_v54, %v2759_v43 }
 0x313   :  { %v2886_v37 = vadd.f32 %v2885_v27, %v2843_v4 }
 0x315   :  { %v2920_v63 = vmax.f32 %v2886_v37, 0.0 }
 0x316   :  { %v2761_v60 = vpop.f32.mrf.mxu2 }
 0x317   :  { %2946 = vst [vmem:[%s6894_s3 + $0x8] sm:$0xff] %v2920_v63  ;;  %v2762_v13 = vadd.f32 %v2761_v60, %v6790_v30 }
 0x318   :  { %v2804_v5 = vpop.f32.mrf.mxu3  ;;  %v2844_v8 = vpop.f32.mrf.mxu0 }
 0x319   :  { %v2845_v38 = vadd.f32 %v2844_v8, %v2802_v44  ;;  %v2887_v57 = vpop.f32.mrf.mxu1  ;;  %v2805_v33 = vadd.f32 %v2804_v5, %v2762_v13 }
 0x31b   :  { %v2888_v49 = vadd.f32 %v2887_v57, %v2845_v38 }
 0x31d   :  { %v2922_v9 = vmax.f32 %v2888_v49, 0.0 }
 0x31e   :  { %v2763_v32 = vpop.f32.mrf.mxu2 }
 0x31f   :  { %2948 = vst [vmem:[%s6894_s3 + $0x18] sm:$0xff] %v2922_v9  ;;  %v2764_v21 = vadd.f32 %v2763_v32, %v6797_v15 }
 0x320   :  { %v2806_v28 = vpop.f32.mrf.mxu3  ;;  %v2847_v45 = vpop.f32.mrf.mxu0 }
 0x321   :  { %v2848_v56 = vadd.f32 %v2847_v45, %v2805_v33  ;;  %v2890_v35 = vpop.f32.mrf.mxu1  ;;  %v2807_v29 = vadd.f32 %v2806_v28, %v2764_v21 }
 0x323   :  { %v2891_v58 = vadd.f32 %v2890_v35, %v2848_v56 }
 0x325   :  { %v2924_v53 = vmax.f32 %v2891_v58, 0.0 }
 0x326   :  { %v2766_v2 = vpop.f32.mrf.mxu2 }
 0x327   :  { %2950 = vst [vmem:[%s6894_s3 + $0x28] sm:$0xff] %v2924_v53  ;;  %v2767_v19 = vadd.f32 %v2766_v2, %v6800_v36 }
 0x328   :  { %v2809_v30 = vpop.f32.mrf.mxu3  ;;  %v2849_v10 = vpop.f32.mrf.mxu0 }
 0x329   :  { %v2850_v62 = vadd.f32 %v2849_v10, %v2807_v29  ;;  %v2892_v16 = vpop.f32.mrf.mxu1  ;;  %v2810_v24 = vadd.f32 %v2809_v30, %v2767_v19 }
 0x32b   :  { %v2893_v23 = vadd.f32 %v2892_v16, %v2850_v62 }
 0x32d   :  { %v2926_v51 = vmax.f32 %v2893_v23, 0.0 }
 0x32e   :  { %v2768_v3 = vpop.f32.mrf.mxu2 }
 0x32f   :  { %2952 = vst [vmem:[%s6894_s3 + $0x38] sm:$0xff] %v2926_v51  ;;  %v2769_v59 = vadd.f32 %v2768_v3, %v6807_v55 }
 0x330   :  { %v2811_v15 = vpop.f32.mrf.mxu3  ;;  %v2852_v1 = vpop.f32.mrf.mxu0 }
 0x331   :  { %v2853_v7 = vadd.f32 %v2852_v1, %v2810_v24  ;;  %v2895_v6 = vpop.f32.mrf.mxu1  ;;  %v2812_v0 = vadd.f32 %v2811_v15, %v2769_v59 }
 0x333   :  { %v2896_v48 = vadd.f32 %v2895_v6, %v2853_v7 }
 0x335   :  { %v2928_v34 = vmax.f32 %v2896_v48, 0.0 }
 0x336   :  { %v2771_v46 = vpop.f32.mrf.mxu2 }
 0x337   :  { %2954 = vst [vmem:[%s6894_s3 + $0x48] sm:$0xff] %v2928_v34  ;;  %v2772_v31 = vadd.f32 %v2771_v46, %v6810_v40 }
 0x338   :  { %v2814_v36 = vpop.f32.mrf.mxu3  ;;  %v2854_v12 = vpop.f32.mrf.mxu0 }
 0x339   :  { %v2855_v41 = vadd.f32 %v2854_v12, %v2812_v0  ;;  %v2897_v50 = vpop.f32.mrf.mxu1  ;;  %v2815_v26 = vadd.f32 %v2814_v36, %v2772_v31 }
 0x33b   :  { %v2898_v17 = vadd.f32 %v2897_v50, %v2855_v41 }
 0x33d   :  { %v2930_v11 = vmax.f32 %v2898_v17, 0.0 }
 0x33e   :  { %v2773_v47 = vpop.f32.mrf.mxu2 }
 0x33f   :  { %2956 = vst [vmem:[%s6894_s3 + $0x58] sm:$0xff] %v2930_v11  ;;  %v2774_v20 = vadd.f32 %v2773_v47, %v6817_v52 }
 0x340   :  { %v2816_v55 = vpop.f32.mrf.mxu3  ;;  %v2857_v22 = vpop.f32.mrf.mxu0 }
 0x341   :  { %v2858_v14 = vadd.f32 %v2857_v22, %v2815_v26  ;;  %v2900_v54 = vpop.f32.mrf.mxu1  ;;  %v2817_v37 = vadd.f32 %v2816_v55, %v2774_v20 }
 0x343   :  { %v2901_v4 = vadd.f32 %v2900_v54, %v2858_v14 }
 0x345   :  { %v2932_v27 = vmax.f32 %v2901_v4, 0.0 }
 0x346   :  { %v2776_v43 = vpop.f32.mrf.mxu2 }
 0x347   :  { %2958 = vst [vmem:[%s6894_s3 + $0x68] sm:$0xff] %v2932_v27  ;;  %v2777_v5 = vadd.f32 %v2776_v43, %v6820_v18 }
 0x348   :  { %v2819_v40 = vpop.f32.mrf.mxu3  ;;  %v2859_v63 = vpop.f32.mrf.mxu0 }
 0x349   :  { %v2860_v60 = vadd.f32 %v2859_v63, %v2817_v37  ;;  %v2902_v44 = vpop.f32.mrf.mxu1  ;;  %v2820_v13 = vadd.f32 %v2819_v40, %v2777_v5 }
 0x34b   :  { %v2903_v8 = vadd.f32 %v2902_v44, %v2860_v60 }
 0x34d   :  { %v2934_v38 = vmax.f32 %v2903_v8, 0.0 }
 0x34e   :  { %v2778_v57 = vpop.f32.mrf.mxu2 }
 0x34f   :  { %2960 = vst [vmem:[%s6894_s3 + $0x78] sm:$0xff] %v2934_v38  ;;  %v2779_v33 = vadd.f32 %v2778_v57, %v6827_v42 }
 0x350   :  { %v2821_v52 = vpop.f32.mrf.mxu3  ;;  %v2862_v49 = vpop.f32.mrf.mxu0 }
 0x351   :  { %v2863_v9 = vadd.f32 %v2862_v49, %v2820_v13  ;;  %v2905_v32 = vpop.f32.mrf.mxu1  ;;  %v2822_v35 = vadd.f32 %v2821_v52, %v2779_v33 }
 0x353   :  { %v2906_v28 = vadd.f32 %v2905_v32, %v2863_v9 }
 0x355   :  { %v2936_v45 = vmax.f32 %v2906_v28, 0.0 }
 0x356   :  { %v2781_v56 = vpop.f32.mrf.mxu2 }
 0x357   :  { %2962 = vst [vmem:[%s6894_s3 + $0x88] sm:$0xff] %v2936_v45  ;;  %v2782_v2 = vadd.f32 %v2781_v56, %v6830_v39 }
 0x358   :  { %v2824_v18 = vpop.f32.mrf.mxu3  ;;  %v2864_v21 = vpop.f32.mrf.mxu0 }
 0x359   :  { %v2865_v58 = vadd.f32 %v2864_v21, %v2822_v35  ;;  %v2907_v53 = vpop.f32.mrf.mxu1  ;;  %v2825_v62 = vadd.f32 %v2824_v18, %v2782_v2 }
 0x35b   :  { %v2908_v29 = vadd.f32 %v2907_v53, %v2865_v58 }
 0x35d   :  { %v2938_v30 = vmax.f32 %v2908_v29, 0.0 }
 0x35e   :  { %v2783_v10 = vpop.f32.mrf.mxu2 }
 0x35f   :  { %2964 = vst [vmem:[%s6894_s3 + $0x98] sm:$0xff] %v2938_v30  ;;  %v2784_v51 = vadd.f32 %v2783_v10, %v6835_v25 }
 0x360   :  { %v2826_v42 = vpop.f32.mrf.mxu3  ;;  %v2867_v16 = vpop.f32.mrf.mxu0 }
 0x361   :  { %v2868_v19 = vadd.f32 %v2867_v16, %v2825_v62  ;;  %v2910_v23 = vpop.f32.mrf.mxu1  ;;  %v2827_v1 = vadd.f32 %v2826_v42, %v2784_v51 }
 0x363   :  { %v2911_v3 = vadd.f32 %v2910_v23, %v2868_v19 }
 0x365   :  { %v2940_v24 = vmax.f32 %v2911_v3, 0.0 }
 0x366   :  { %v2786_v15 = vpop.f32.mrf.mxu2 }
 0x367   :  { %2966 = vst [vmem:[%s6894_s3 + $0xa8] sm:$0xff] %v2940_v24  ;;  %v2787_v48 = vadd.f32 %v2786_v15, %v6837_v61 }
 0x368   :  { %v2829_v39 = vpop.f32.mrf.mxu3  ;;  %v2869_v7 = vpop.f32.mrf.mxu0 }
 0x369   :  { %v2870_v6 = vadd.f32 %v2869_v7, %v2827_v1  ;;  %v2912_v59 = vpop.f32.mrf.mxu1  ;;  %v2830_v36 = vadd.f32 %v2829_v39, %v2787_v48 }
 0x36b   :  { %v2913_v34 = vadd.f32 %v2912_v59, %v2870_v6 }
 0x36d   :  { %v2942_v46 = vmax.f32 %v2913_v34, 0.0 }
 0x36e   :  { %v2788_v0 = vpop.f32.mrf.mxu2 }
 0x36f   :  { %2968 = vst [vmem:[%s6894_s3 + $0xb8] sm:$0xff] %v2942_v46 }
 0x370   :  { %v2831_v25 = vpop.f32.mrf.mxu3  ;;  %v2872_v12 = vpop.f32.mrf.mxu0 }
 0x371   :  { %v2873_v41 = vadd.f32 %v2872_v12, %v2830_v36  ;;  %v2915_v50 = vpop.f32.mrf.mxu1 }
 0x373   :  { %v2916_v31 = vadd.f32 %v2915_v50, %v2873_v41 }
 0x375   :  { %v2944_v17 = vmax.f32 %v2916_v31, 0.0 }
 0x377   :  { %2970 = vst [vmem:[%s6894_s3 + $0xc8] sm:$0xff] %v2944_v17 }
 0x378   :  { %v2874_v11 = vpop.f32.mrf.mxu0 }
 0x379   :  { %v2917_v61 = vpop.f32.mrf.mxu1 }

// kernel: alexnet_extractor_forward.7
= control target key start
LH: loop header
LB: loop body
LE: loop exit
PB: predicated region body
PF: predicated region fallthrough
CT: control target
= control target key end

     0   :  { %s366_s0 = inlined_call_operand.vmem [shape: f32[9,24,256], index: 0, kind: input, shape index: {}]   ;;  %s367_s1 = inlined_call_operand.vmem [shape: f32[24,256], index: 1, kind: output, shape index: {}]  }
   0x1   :  { %v8_v0 = vld [vmem:[%s366_s0] sm:$0xff]  ;;  %v128_v1 = vld [vmem:[%s366_s0 + $0x30] sm:$0xff]  ;;  %v9_v6 = vld [vmem:[%s366_s0 + $0x8] sm:$0xff] }
   0x2   :  { %v134_v2 = vld [vmem:[%s366_s0 + $0x60] sm:$0xff]  ;;  %v21_v3 = vmax.f32 %v8_v0, %v128_v1  ;;  %v140_v4 = vld [vmem:[%s366_s0 + $0x90] sm:$0xff]  ;;  %v129_v7 = vld [vmem:[%s366_s0 + $0x38] sm:$0xff] }
   0x3   :  { %v135_v8 = vld [vmem:[%s366_s0 + $0x68] sm:$0xff]  ;;  %v146_v9 = vld [vmem:[%s366_s0 + $0xc0] sm:$0xff]  ;;  %v22_v10 = vmax.f32 %v9_v6, %v129_v7  ;;  %v152_v12 = vld [vmem:[%s366_s0 + $0xf0] sm:$0xff] }
   0x4   :  { %v34_v5 = vmax.f32 %v21_v3, %v134_v2  ;;  %v141_v13 = vld [vmem:[%s366_s0 + $0x98] sm:$0xff]  ;;  %v10_v15 = vld [vmem:[%s366_s0 + $0x10] sm:$0xff]  ;;  %v130_v16 = vld [vmem:[%s366_s0 + $0x40] sm:$0xff] }
   0x5   :  { %v35_v14 = vmax.f32 %v22_v10, %v135_v8  ;;  %v136_v17 = vld [vmem:[%s366_s0 + $0x70] sm:$0xff]  ;;  %v147_v19 = vld [vmem:[%s366_s0 + $0xc8] sm:$0xff]  ;;  %v23_v20 = vmax.f32 %v10_v15, %v130_v16  ;;  %v158_v21 = vld [vmem:[%s366_s0 + $0x120] sm:$0xff] }
   0x6   :  { %v47_v11 = vmax.f32 %v34_v5, %v140_v4  ;;  %v153_v23 = vld [vmem:[%s366_s0 + $0xf8] sm:$0xff]  ;;  %v142_v24 = vld [vmem:[%s366_s0 + $0xa0] sm:$0xff]  ;;  %v131_v28 = vld [vmem:[%s366_s0 + $0x48] sm:$0xff] }
   0x7   :  { %v48_v22 = vmax.f32 %v35_v14, %v141_v13  ;;  %v36_v26 = vmax.f32 %v23_v20, %v136_v17  ;;  %v11_v27 = vld [vmem:[%s366_s0 + $0x18] sm:$0xff]  ;;  %v164_v30 = vld [vmem:[%s366_s0 + $0x150] sm:$0xff]  ;;  %v170_v31 = vld [vmem:[%s366_s0 + $0x180] sm:$0xff] }
   0x8   :  { %v60_v18 = vmax.f32 %v47_v11, %v146_v9  ;;  %v137_v29 = vld [vmem:[%s366_s0 + $0x78] sm:$0xff]  ;;  %v148_v33 = vld [vmem:[%s366_s0 + $0xd0] sm:$0xff]  ;;  %v24_v34 = vmax.f32 %v11_v27, %v131_v28  ;;  %v159_v36 = vld [vmem:[%s366_s0 + $0x128] sm:$0xff] }
   0x9   :  { %v61_v32 = vmax.f32 %v48_v22, %v147_v19  ;;  %v49_v37 = vmax.f32 %v36_v26, %v142_v24  ;;  %v154_v38 = vld [vmem:[%s366_s0 + $0x100] sm:$0xff]  ;;  %v143_v39 = vld [vmem:[%s366_s0 + $0xa8] sm:$0xff]  ;;  %v132_v43 = vld [vmem:[%s366_s0 + $0x50] sm:$0xff] }
   0xa   :  { %v73_v25 = vmax.f32 %v60_v18, %v152_v12  ;;  %v37_v41 = vmax.f32 %v24_v34, %v137_v29  ;;  %v12_v42 = vld [vmem:[%s366_s0 + $0x20] sm:$0xff]  ;;  %v165_v46 = vld [vmem:[%s366_s0 + $0x158] sm:$0xff]  ;;  %v171_v47 = vld [vmem:[%s366_s0 + $0x188] sm:$0xff] }
   0xb   :  { %v74_v40 = vmax.f32 %v61_v32, %v153_v23  ;;  %v138_v44 = vld [vmem:[%s366_s0 + $0x80] sm:$0xff]  ;;  %v62_v48 = vmax.f32 %v49_v37, %v148_v33  ;;  %v149_v49 = vld [vmem:[%s366_s0 + $0xd8] sm:$0xff]  ;;  %v25_v50 = vmax.f32 %v12_v42, %v132_v43  ;;  %v160_v52 = vld [vmem:[%s366_s0 + $0x130] sm:$0xff] }
   0xc   :  { %v86_v35 = vmax.f32 %v73_v25, %v158_v21  ;;  %v50_v53 = vmax.f32 %v37_v41, %v143_v39  ;;  %v155_v54 = vld [vmem:[%s366_s0 + $0x108] sm:$0xff]  ;;  %v144_v55 = vld [vmem:[%s366_s0 + $0xb0] sm:$0xff]  ;;  %v133_v60 = vld [vmem:[%s366_s0 + $0x58] sm:$0xff] }
   0xd   :  { %v87_v51 = vmax.f32 %v74_v40, %v159_v36  ;;  %v75_v57 = vmax.f32 %v62_v48, %v154_v38  ;;  %v38_v58 = vmax.f32 %v25_v50, %v138_v44  ;;  %v13_v59 = vld [vmem:[%s366_s0 + $0x28] sm:$0xff]  ;;  %v166_v63 = vld [vmem:[%s366_s0 + $0x160] sm:$0xff]  ;;  %v161_v4 = vld [vmem:[%s366_s0 + $0x138] sm:$0xff] }
   0xe   :  { %v99_v45 = vmax.f32 %v86_v35, %v164_v30  ;;  %v139_v61 = vld [vmem:[%s366_s0 + $0x88] sm:$0xff]  ;;  %v63_v0 = vmax.f32 %v50_v53, %v149_v49  ;;  %v150_v1 = vld [vmem:[%s366_s0 + $0xe0] sm:$0xff]  ;;  %v26_v2 = vmax.f32 %v13_v59, %v133_v60  ;;  %v145_v6 = vld [vmem:[%s366_s0 + $0xb8] sm:$0xff] }
   0xf   :  { %v100_v62 = vmax.f32 %v87_v51, %v165_v46  ;;  %v88_v3 = vmax.f32 %v75_v57, %v160_v52  ;;  %v51_v5 = vmax.f32 %v38_v58, %v144_v55  ;;  %v172_v8 = vld [vmem:[%s366_s0 + $0x190] sm:$0xff]  ;;  %v167_v13 = vld [vmem:[%s366_s0 + $0x168] sm:$0xff]  ;;  %v162_v17 = vld [vmem:[%s366_s0 + $0x140] sm:$0xff] }
  0x10   :  { %v112_v56 = vmax.f32 %v99_v45, %v170_v31  ;;  %v76_v9 = vmax.f32 %v63_v0, %v155_v54  ;;  %v156_v10 = vld [vmem:[%s366_s0 + $0x110] sm:$0xff]  ;;  %v39_v11 = vmax.f32 %v26_v2, %v139_v61  ;;  %v151_v15 = vld [vmem:[%s366_s0 + $0xe8] sm:$0xff]  ;;  %v173_v20 = vld [vmem:[%s366_s0 + $0x198] sm:$0xff] }
  0x11   :  { %v113_v7 = vmax.f32 %v100_v62, %v171_v47  ;;  %v101_v12 = vmax.f32 %v88_v3, %v166_v63  ;;  %v64_v14 = vmax.f32 %v51_v5, %v150_v1  ;;  %v157_v22 = vld [vmem:[%s366_s0 + $0x118] sm:$0xff]  ;;  %v168_v24 = vld [vmem:[%s366_s0 + $0x170] sm:$0xff]  ;;  %v163_v27 = vld [vmem:[%s366_s0 + $0x148] sm:$0xff] }
  0x12   :  { %118 = vst [vmem:[%s367_s1] sm:$0xff] %v112_v56  ;;  %v89_v16 = vmax.f32 %v76_v9, %v161_v4  ;;  %v52_v18 = vmax.f32 %v39_v11, %v145_v6  ;;  %v174_v29 = vld [vmem:[%s366_s0 + $0x1a0] sm:$0xff]  ;;  %v169_v32 = vld [vmem:[%s366_s0 + $0x178] sm:$0xff]  ;;  %v175_v35 = vld [vmem:[%s366_s0 + $0x1a8] sm:$0xff] }
  0x13   :  { %119 = vst [vmem:[%s367_s1 + $0x8] sm:$0xff] %v113_v7  ;;  %v114_v19 = vmax.f32 %v101_v12, %v172_v8  ;;  %v77_v21 = vmax.f32 %v64_v14, %v156_v10 }
  0x14   :  { %v102_v23 = vmax.f32 %v89_v16, %v167_v13  ;;  %v65_v25 = vmax.f32 %v52_v18, %v151_v15 }
  0x15   :  { %120 = vst [vmem:[%s367_s1 + $0x10] sm:$0xff] %v114_v19  ;;  %v90_v26 = vmax.f32 %v77_v21, %v162_v17 }
  0x16   :  { %v115_v28 = vmax.f32 %v102_v23, %v173_v20  ;;  %v78_v30 = vmax.f32 %v65_v25, %v157_v22 }
  0x17   :  { %v103_v31 = vmax.f32 %v90_v26, %v168_v24 }
  0x18   :  { %121 = vst [vmem:[%s367_s1 + $0x18] sm:$0xff] %v115_v28  ;;  %v91_v33 = vmax.f32 %v78_v30, %v163_v27 }
  0x19   :  { %v116_v34 = vmax.f32 %v103_v31, %v174_v29 }
  0x1a   :  { %v104_v36 = vmax.f32 %v91_v33, %v169_v32 }
  0x1b   :  { %122 = vst [vmem:[%s367_s1 + $0x20] sm:$0xff] %v116_v34 }
  0x1c   :  { %v117_v37 = vmax.f32 %v104_v36, %v175_v35 }
  0x1e   :  { %123 = vst [vmem:[%s367_s1 + $0x28] sm:$0xff] %v117_v37 }

</bundles_post_ra>
